<compile_context>
chip_gen: v7x
topology: tpu7x:2x2x1
jax: 0.10.0
libtpu: 0.0.40
codegen_flags: <defaults>
</compile_context>

<pallas_src>
import math
import functools

import jax
import jax.numpy as jnp
from jax.experimental import pallas as pl
from jax.experimental.pallas import tpu as pltpu

# ------------------------- small synthetic DeBERTa config -------------------------
VOCAB = 128
HIDDEN = 128            # lane-dense (multiple of 128), like real DeBERTa's 768
N_HEADS = 4
HEAD_DIM = HIDDEN // N_HEADS
INTERMEDIATE = 256
N_LAYERS = 2
LN_EPS = 1e-7           # deberta layer_norm_eps
B, S = 2, 16            # batch, seq_len
NUM_LABELS = 2


# ================================ Pallas kernels ==================================

def _emb_ln_mask_kernel(x_ref, g_ref, b_ref, m_ref, o_ref, *, eps):
    # Embedding LayerNorm fused with the attention-mask multiply (f32 math).
    x = x_ref[...].astype(jnp.float32)                       # (B*S, H)
    mu = jnp.mean(x, axis=-1, keepdims=True)
    var = jnp.mean((x - mu) ** 2, axis=-1, keepdims=True)
    y = (x - mu) * jax.lax.rsqrt(var + eps) * g_ref[...] + b_ref[...]
    o_ref[...] = (y * m_ref[...]).astype(o_ref.dtype)


def _encoder_layer_kernel(x_ref, mask_ref,
                          wqkv_ref, bqkv_ref, wo_ref, bo_ref,
                          ln1g_ref, ln1b_ref,
                          w1_ref, b1_ref, w2_ref, b2_ref,
                          ln2g_ref, ln2b_ref,
                          o_ref, *, n_heads, head_dim, eps, scale):
    # One grid step = one batch element. Everything below lives in VMEM/vregs.
    x = x_ref[0].astype(jnp.float32)                          # (S, H)
    neg_bias = (mask_ref[0] - 1.0) * 1e9                      # (1, S) additive key mask (f32)

    def layernorm(v, g, b):
        mu = jnp.mean(v, axis=-1, keepdims=True)
        var = jnp.mean((v - mu) ** 2, axis=-1, keepdims=True)
        return (v - mu) * jax.lax.rsqrt(var + eps) * g + b

    hidden = n_heads * head_dim

    # ---- fused QKV projection: bf16 MXU inputs, f32 accumulation ----
    qkv = jnp.dot(x.astype(jnp.bfloat16), wqkv_ref[...],
                  preferred_element_type=jnp.float32) + bqkv_ref[...]   # (S, 3H)
    q = qkv[:, :hidden]
    k = qkv[:, hidden:2 * hidden]
    v = qkv[:, 2 * hidden:]

    # ---- multi-head attention; heads are static lane-axis slices (no transposes) ----
    trans_b_dims = (((1,), (1,)), ((), ()))                   # contract last dims: q . k^T
    ctx_heads = []
    for h in range(n_heads):
        sl = slice(h * head_dim, (h + 1) * head_dim)
        qh = q[:, sl].astype(jnp.bfloat16)
        kh = k[:, sl].astype(jnp.bfloat16)
        vh = v[:, sl].astype(jnp.bfloat16)
        s = jax.lax.dot_general(qh, kh, trans_b_dims,
                                preferred_element_type=jnp.float32) * scale   # (S, S) f32
        s = s + neg_bias
        s = s - jnp.max(s, axis=-1, keepdims=True)
        p = jnp.exp(s)
        p = p * pl.reciprocal(jnp.sum(p, axis=-1, keepdims=True), approx=True)
        ctx_heads.append(jnp.dot(p.astype(jnp.bfloat16), vh,
                                 preferred_element_type=jnp.float32))          # (S, D)
    ctx = jnp.concatenate(ctx_heads, axis=-1)                 # (S, H) f32

    # ---- output projection + residual + LayerNorm (fused epilogue) ----
    attn = jnp.dot(ctx.astype(jnp.bfloat16), wo_ref[...],
                   preferred_element_type=jnp.float32) + bo_ref[...]
    x1 = layernorm(attn + x, ln1g_ref[...], ln1b_ref[...])

    # ---- FFN: GELU(x1 @ w1 + b1) @ w2 + b2, residual + LayerNorm (fused) ----
    # HF DeBERTa uses exact erf-GELU; tanh approximation is used (matches the in-file ref).
    h1 = jnp.dot(x1.astype(jnp.bfloat16), w1_ref[...],
                 preferred_element_type=jnp.float32) + b1_ref[...]
    h1 = jax.nn.gelu(h1, approximate=True)
    ffn = jnp.dot(h1.astype(jnp.bfloat16), w2_ref[...],
                  preferred_element_type=jnp.float32) + b2_ref[...]
    o_ref[0] = layernorm(ffn + x1, ln2g_ref[...], ln2b_ref[...]).astype(o_ref.dtype)


# ================================ Pallas wrappers ==================================

def pallas_embedding_ln_mask(x, gamma2d, beta2d, mask_col):
    M, H = x.shape
    return pl.pallas_call(
        functools.partial(_emb_ln_mask_kernel, eps=LN_EPS),
        out_shape=jax.ShapeDtypeStruct((M, H), x.dtype),
        grid=(1,),
        in_specs=[
            pl.BlockSpec((M, H), lambda i: (0, 0)),
            pl.BlockSpec((1, H), lambda i: (0, 0)),
            pl.BlockSpec((1, H), lambda i: (0, 0)),
            pl.BlockSpec((M, 1), lambda i: (0, 0)),
        ],
        out_specs=pl.BlockSpec((M, H), lambda i: (0, 0)),
    )(x, gamma2d, beta2d, mask_col)


def pallas_encoder_layer(x, mask_rows, kl):
    Bb, Ss, H = x.shape
    inter = kl["w1"].shape[1]

    def full(shape):
        return pl.BlockSpec(shape, lambda b, _s=shape: (0,) * len(_s))

    kernel = functools.partial(
        _encoder_layer_kernel,
        n_heads=N_HEADS, head_dim=HEAD_DIM, eps=LN_EPS,
        scale=1.0 / math.sqrt(HEAD_DIM))

    return pl.pallas_call(
        kernel,
        out_shape=jax.ShapeDtypeStruct((Bb, Ss, H), x.dtype),
        grid=(Bb,),
        in_specs=[
            pl.BlockSpec((1, Ss, H), lambda b: (b, 0, 0)),    # x (per-batch token slab)
            pl.BlockSpec((1, 1, Ss), lambda b: (b, 0, 0)),    # key mask
            full((H, 3 * H)), full((1, 3 * H)),               # fused wqkv, bqkv
            full((H, H)), full((1, H)),                       # wo, bo
            full((1, H)), full((1, H)),                       # ln1 gamma/beta
            full((H, inter)), full((1, inter)),               # w1, b1
            full((inter, H)), full((1, H)),                   # w2, b2
            full((1, H)), full((1, H)),                       # ln2 gamma/beta
        ],
        out_specs=pl.BlockSpec((1, Ss, H), lambda b: (b, 0, 0)),
        compiler_params=pltpu.CompilerParams(
            dimension_semantics=("parallel",)),               # v7x: batch across 2 TCs
    )(x, mask_rows,
      kl["wqkv"], kl["bqkv"], kl["wo"], kl["bo"],
      kl["ln1_g"], kl["ln1_b"],
      kl["w1"], kl["b1"], kl["w2"], kl["b2"],
      kl["ln2_g"], kl["ln2_b"])


# ================================ model (glue in JAX) ==============================

def init_params(key):
    std = 0.02
    params = {}
    key, k = jax.random.split(key)
    params["word_emb"] = std * jax.random.normal(k, (VOCAB, HIDDEN), jnp.float32)
    params["emb_ln_g"] = jnp.ones((HIDDEN,), jnp.float32)
    params["emb_ln_b"] = jnp.zeros((HIDDEN,), jnp.float32)
    layers = []
    for _ in range(N_LAYERS):
        lk = {}
        for name, shape in [
            ("wq", (HIDDEN, HIDDEN)), ("wk", (HIDDEN, HIDDEN)), ("wv", (HIDDEN, HIDDEN)),
            ("wo", (HIDDEN, HIDDEN)),
            ("w1", (HIDDEN, INTERMEDIATE)), ("w2", (INTERMEDIATE, HIDDEN)),
        ]:
            key, k = jax.random.split(key)
            lk[name] = std * jax.random.normal(k, shape, jnp.float32)
        lk["bq"] = jnp.zeros((HIDDEN,), jnp.float32)
        lk["bk"] = jnp.zeros((HIDDEN,), jnp.float32)
        lk["bv"] = jnp.zeros((HIDDEN,), jnp.float32)
        lk["bo"] = jnp.zeros((HIDDEN,), jnp.float32)
        lk["b1"] = jnp.zeros((INTERMEDIATE,), jnp.float32)
        lk["b2"] = jnp.zeros((HIDDEN,), jnp.float32)
        lk["ln1_g"] = jnp.ones((HIDDEN,), jnp.float32)
        lk["ln1_b"] = jnp.zeros((HIDDEN,), jnp.float32)
        lk["ln2_g"] = jnp.ones((HIDDEN,), jnp.float32)
        lk["ln2_b"] = jnp.zeros((HIDDEN,), jnp.float32)
        layers.append(lk)
    params["layers"] = layers
    key, k = jax.random.split(key)
    params["cls_w"] = std * jax.random.normal(k, (HIDDEN, NUM_LABELS), jnp.float32)
    params["cls_b"] = jnp.zeros((NUM_LABELS,), jnp.float32)
    return params


def prepare_kernel_params(params):
    """One-time weight prep: fuse Q|K|V, cast matmul weights to bf16, 2-D-ify biases."""
    kp = {
        "word_emb": params["word_emb"],
        "emb_ln_g": params["emb_ln_g"].reshape(1, HIDDEN),
        "emb_ln_b": params["emb_ln_b"].reshape(1, HIDDEN),
        "cls_w": params["cls_w"],
        "cls_b": params["cls_b"],
        "layers": [],
    }
    for lk in params["layers"]:
        kp["layers"].append({
            "wqkv": jnp.concatenate([lk["wq"], lk["wk"], lk["wv"]], axis=1).astype(jnp.bfloat16),
            "bqkv": jnp.concatenate([lk["bq"], lk["bk"], lk["bv"]]).reshape(1, 3 * HIDDEN),
            "wo": lk["wo"].astype(jnp.bfloat16),
            "bo": lk["bo"].reshape(1, HIDDEN),
            "ln1_g": lk["ln1_g"].reshape(1, HIDDEN),
            "ln1_b": lk["ln1_b"].reshape(1, HIDDEN),
            "w1": lk["w1"].astype(jnp.bfloat16),
            "b1": lk["b1"].reshape(1, INTERMEDIATE),
            "w2": lk["w2"].astype(jnp.bfloat16),
            "b2": lk["b2"].reshape(1, HIDDEN),
            "ln2_g": lk["ln2_g"].reshape(1, HIDDEN),
            "ln2_b": lk["ln2_b"].reshape(1, HIDDEN),
        })
    return kp


def deberta_classifier_forward(kp, input_ids, attention_mask):
    mask_f = attention_mask.astype(jnp.float32)                      # (B, S)
    # --- embeddings: token gather (XLA) -> fused LayerNorm+mask (Pallas) ---
    x = kp["word_emb"][input_ids].reshape(B * S, HIDDEN)
    x = pallas_embedding_ln_mask(x, kp["emb_ln_g"], kp["emb_ln_b"],
                                 mask_f.reshape(B * S, 1))
    x = x.reshape(B, S, HIDDEN)
    mask_rows = mask_f.reshape(B, 1, S)
    # --- encoder: one fused Pallas kernel per layer ---
    for kl in kp["layers"]:
        x = pallas_encoder_layer(x, mask_rows, kl)
    # --- CLS token -> classifier head (left to XLA; 2-wide output in Pallas is
    #     pure launch overhead with fully masked lane stores) ---
    cls = x[:, 0, :]                                                  # (B, HIDDEN)
    return cls @ kp["cls_w"] + kp["cls_b"]                            # (B, 2)


# ------------------------------- pure-JAX reference --------------------------------

def _split_heads(x):
    return x.reshape(B, S, N_HEADS, HEAD_DIM).transpose(0, 2, 1, 3)


def _merge_heads(x):
    return x.transpose(0, 2, 1, 3).reshape(B * S, HIDDEN)


def _ref_forward(params, input_ids, attention_mask):
    mask_f = attention_mask.astype(jnp.float32)

    def ln(x, g, b):
        mu = jnp.mean(x, -1, keepdims=True)
        var = jnp.mean((x - mu) ** 2, -1, keepdims=True)
        return (x - mu) * jax.lax.rsqrt(var + LN_EPS) * g + b

    x = params["word_emb"][input_ids].reshape(B * S, HIDDEN)
    x = ln(x, params["emb_ln_g"], params["emb_ln_b"]) * mask_f.reshape(B * S, 1)
    for lk in params["layers"]:
        q = _split_heads(x @ lk["wq"] + lk["bq"])
        k = _split_heads(x @ lk["wk"] + lk["bk"])
        v = _split_heads(x @ lk["wv"] + lk["bv"])
        s = jnp.einsum("bhqd,bhkd->bhqk", q, k) / math.sqrt(HEAD_DIM)
        s = s + (mask_f[:, None, None, :] - 1.0) * 1e9
        p = jax.nn.softmax(s, axis=-1)
        ctx = _merge_heads(jnp.einsum("bhqk,bhkd->bhqd", p, v))
        x = ln(ctx @ lk["wo"] + lk["bo"] + x, lk["ln1_g"], lk["ln1_b"])
        h = jax.nn.gelu(x @ lk["w1"] + lk["b1"], approximate=True)
        x = ln(h @ lk["w2"] + lk["b2"] + x, lk["ln2_g"], lk["ln2_b"])
    cls = x.reshape(B, S, HIDDEN)[:, 0, :]
    return cls @ params["cls_w"] + params["cls_b"]


# ===================================== main ========================================

if __name__ == "__main__":
    key = jax.random.PRNGKey(0)
    key, k_ids = jax.random.split(key)
    input_ids = jax.random.randint(k_ids, (B, S), 0, VOCAB, dtype=jnp.int32)
    # mask out the tail of the second sequence to exercise the attention mask
    attention_mask = jnp.ones((B, S), jnp.int32).at[1, S - 4:].set(0)

    params = init_params(jax.random.PRNGKey(42))
    kparams = prepare_kernel_params(params)

    forward = jax.jit(deberta_classifier_forward)
    logits = forward(kparams, input_ids, attention_mask)
    logits = jax.block_until_ready(logits)
    assert logits.shape == (B, NUM_LABELS) and logits.dtype == jnp.float32

    ref = _ref_forward(params, input_ids, attention_mask)
    # bf16 MXU inputs + approx softmax reciprocal vs the pure-f32 reference -> loose tol
    assert jnp.allclose(logits, ref, atol=2e-3, rtol=2e-3), (logits, ref)

    print("KERNEL_OK")
</pallas_src>

<mosaic_0001>
module attributes {stable_mosaic.version = 11 : i64} {
  func.func @_emb_ln_mask_kernel(%arg0: i32, %arg1: memref<32x128xf32, #tpu.memory_space<vmem>>, %arg2: memref<1x128xf32, #tpu.memory_space<vmem>>, %arg3: memref<1x128xf32, #tpu.memory_space<vmem>>, %arg4: memref<32x1xf32, #tpu.memory_space<vmem>>, %arg5: memref<32x128xf32, #tpu.memory_space<vmem>>) attributes {dimension_semantics = [#tpu.dimension_semantics<arbitrary>], iteration_bounds = array<i64: 1>, scalar_prefetch = 0 : i64, scratch_operands = 0 : i64, tpu.core_type = #tpu.core_type<tc>, window_params = [{pipeline_mode = #tpu.pipeline_mode<synchronous>, transform_indices = @transform_0, window_bounds = array<i64: 32, 128>}, {pipeline_mode = #tpu.pipeline_mode<synchronous>, transform_indices = @transform_1, window_bounds = array<i64: 1, 128>}, {pipeline_mode = #tpu.pipeline_mode<synchronous>, transform_indices = @transform_2, window_bounds = array<i64: 1, 128>}, {pipeline_mode = #tpu.pipeline_mode<synchronous>, transform_indices = @transform_3, window_bounds = array<i64: 32, 1>}, {pipeline_mode = #tpu.pipeline_mode<synchronous>, transform_indices = @transform_4, window_bounds = array<i64: 32, 128>}]} {
    %c0 = arith.constant 0 : index
    %c0_0 = arith.constant 0 : index
    %0 = vector.load %arg1[%c0, %c0_0] : memref<32x128xf32, #tpu.memory_space<vmem>>, vector<32x128xf32>
    %cst = arith.constant dense<0.000000e+00> : vector<32xf32>
    %1 = vector.multi_reduction <add>, %0, %cst [1] : vector<32x128xf32> to vector<32xf32>
    %2 = vector.shape_cast %1 : vector<32xf32> to vector<32x1xf32>
    %cst_1 = arith.constant 1.280000e+02 : f32
    %3 = vector.broadcast %cst_1 : f32 to vector<32x1xf32>
    %4 = arith.divf %2, %3 : vector<32x1xf32>
    %5 = vector.broadcast %4 : vector<32x1xf32> to vector<32x128xf32>
    %6 = arith.subf %0, %5 : vector<32x128xf32>
    %7 = arith.mulf %6, %6 : vector<32x128xf32>
    %cst_2 = arith.constant dense<0.000000e+00> : vector<32xf32>
    %8 = vector.multi_reduction <add>, %7, %cst_2 [1] : vector<32x128xf32> to vector<32xf32>
    %9 = vector.shape_cast %8 : vector<32xf32> to vector<32x1xf32>
    %cst_3 = arith.constant 1.280000e+02 : f32
    %10 = vector.broadcast %cst_3 : f32 to vector<32x1xf32>
    %11 = arith.divf %9, %10 : vector<32x1xf32>
    %12 = vector.broadcast %4 : vector<32x1xf32> to vector<32x128xf32>
    %13 = arith.subf %0, %12 : vector<32x128xf32>
    %cst_4 = arith.constant 1.000000e-07 : f32
    %14 = vector.broadcast %cst_4 : f32 to vector<32x1xf32>
    %15 = arith.addf %11, %14 : vector<32x1xf32>
    %16 = math.rsqrt %15 : vector<32x1xf32>
    %17 = vector.broadcast %16 : vector<32x1xf32> to vector<32x128xf32>
    %18 = arith.mulf %13, %17 : vector<32x128xf32>
    %c0_5 = arith.constant 0 : index
    %c0_6 = arith.constant 0 : index
    %19 = vector.load %arg2[%c0_5, %c0_6] : memref<1x128xf32, #tpu.memory_space<vmem>>, vector<1x128xf32>
    %20 = vector.broadcast %19 : vector<1x128xf32> to vector<32x128xf32>
    %21 = arith.mulf %18, %20 : vector<32x128xf32>
    %c0_7 = arith.constant 0 : index
    %c0_8 = arith.constant 0 : index
    %22 = vector.load %arg3[%c0_7, %c0_8] : memref<1x128xf32, #tpu.memory_space<vmem>>, vector<1x128xf32>
    %23 = vector.broadcast %22 : vector<1x128xf32> to vector<32x128xf32>
    %24 = arith.addf %21, %23 : vector<32x128xf32>
    %c0_9 = arith.constant 0 : index
    %c0_10 = arith.constant 0 : index
    %25 = vector.load %arg4[%c0_9, %c0_10] : memref<32x1xf32, #tpu.memory_space<vmem>>, vector<32x1xf32>
    %26 = vector.broadcast %25 : vector<32x1xf32> to vector<32x128xf32>
    %27 = arith.mulf %24, %26 : vector<32x128xf32>
    %c0_11 = arith.constant 0 : index
    %c0_12 = arith.constant 0 : index
    %28 = vector.load %arg5[%c0_11, %c0_12] : memref<32x128xf32, #tpu.memory_space<vmem>>, vector<32x128xf32>
    tpu.vector_store %arg5[%c0_11, %c0_12], %27 {strides = array<i32>} : memref<32x128xf32, #tpu.memory_space<vmem>>, vector<32x128xf32>,
    return
  }
  func.func @transform_0(%arg0: i32) -> (i32, i32) {
    %c0_i32 = arith.constant 0 : i32
    %c0_i32_0 = arith.constant 0 : i32
    %c0_i32_1 = arith.constant 0 : i32
    return %c0_i32, %c0_i32_0 : i32, i32
  }
  func.func @transform_1(%arg0: i32) -> (i32, i32) {
    %c0_i32 = arith.constant 0 : i32
    %c0_i32_0 = arith.constant 0 : i32
    %c0_i32_1 = arith.constant 0 : i32
    return %c0_i32, %c0_i32_0 : i32, i32
  }
  func.func @transform_2(%arg0: i32) -> (i32, i32) {
    %c0_i32 = arith.constant 0 : i32
    %c0_i32_0 = arith.constant 0 : i32
    %c0_i32_1 = arith.constant 0 : i32
    return %c0_i32, %c0_i32_0 : i32, i32
  }
  func.func @transform_3(%arg0: i32) -> (i32, i32) {
    %c0_i32 = arith.constant 0 : i32
    %c0_i32_0 = arith.constant 0 : i32
    %c0_i32_1 = arith.constant 0 : i32
    return %c0_i32, %c0_i32_0 : i32, i32
  }
  func.func @transform_4(%arg0: i32) -> (i32, i32) {
    %c0_i32 = arith.constant 0 : i32
    %c0_i32_0 = arith.constant 0 : i32
    %c0_i32_1 = arith.constant 0 : i32
    return %c0_i32, %c0_i32_0 : i32, i32
  }
}

module attributes {stable_mosaic.version = 11 : i64} {
  func.func @_encoder_layer_kernel(%arg0: i32, %arg1: memref<1x16x128xf32, #tpu.memory_space<vmem>>, %arg2: memref<1x1x16xf32, #tpu.memory_space<vmem>>, %arg3: memref<128x384xbf16, #tpu.memory_space<vmem>>, %arg4: memref<1x384xf32, #tpu.memory_space<vmem>>, %arg5: memref<128x128xbf16, #tpu.memory_space<vmem>>, %arg6: memref<1x128xf32, #tpu.memory_space<vmem>>, %arg7: memref<1x128xf32, #tpu.memory_space<vmem>>, %arg8: memref<1x128xf32, #tpu.memory_space<vmem>>, %arg9: memref<128x256xbf16, #tpu.memory_space<vmem>>, %arg10: memref<1x256xf32, #tpu.memory_space<vmem>>, %arg11: memref<256x128xbf16, #tpu.memory_space<vmem>>, %arg12: memref<1x128xf32, #tpu.memory_space<vmem>>, %arg13: memref<1x128xf32, #tpu.memory_space<vmem>>, %arg14: memref<1x128xf32, #tpu.memory_space<vmem>>, %arg15: memref<1x16x128xf32, #tpu.memory_space<vmem>>) attributes {dimension_semantics = [#tpu.dimension_semantics<parallel>], iteration_bounds = array<i64: 2>, scalar_prefetch = 0 : i64, scratch_operands = 0 : i64, tpu.core_type = #tpu.core_type<tc>, window_params = [{transform_indices = @transform_0, window_bounds = array<i64: 1, 16, 128>}, {transform_indices = @transform_1, window_bounds = array<i64: 1, 1, 16>}, {pipeline_mode = #tpu.pipeline_mode<synchronous>, transform_indices = @transform_2, window_bounds = array<i64: 128, 384>}, {pipeline_mode = #tpu.pipeline_mode<synchronous>, transform_indices = @transform_3, window_bounds = array<i64: 1, 384>}, {pipeline_mode = #tpu.pipeline_mode<synchronous>, transform_indices = @transform_4, window_bounds = array<i64: 128, 128>}, {pipeline_mode = #tpu.pipeline_mode<synchronous>, transform_indices = @transform_5, window_bounds = array<i64: 1, 128>}, {pipeline_mode = #tpu.pipeline_mode<synchronous>, transform_indices = @transform_6, window_bounds = array<i64: 1, 128>}, {pipeline_mode = #tpu.pipeline_mode<synchronous>, transform_indices = @transform_7, window_bounds = array<i64: 1, 128>}, {pipeline_mode = #tpu.pipeline_mode<synchronous>, transform_indices = @transform_8, window_bounds = array<i64: 128, 256>}, {pipeline_mode = #tpu.pipeline_mode<synchronous>, transform_indices = @transform_9, window_bounds = array<i64: 1, 256>}, {pipeline_mode = #tpu.pipeline_mode<synchronous>, transform_indices = @transform_10, window_bounds = array<i64: 256, 128>}, {pipeline_mode = #tpu.pipeline_mode<synchronous>, transform_indices = @transform_11, window_bounds = array<i64: 1, 128>}, {pipeline_mode = #tpu.pipeline_mode<synchronous>, transform_indices = @transform_12, window_bounds = array<i64: 1, 128>}, {pipeline_mode = #tpu.pipeline_mode<synchronous>, transform_indices = @transform_13, window_bounds = array<i64: 1, 128>}, {transform_indices = @transform_14, window_bounds = array<i64: 1, 16, 128>}]} {
    %c0 = arith.constant 0 : index
    %c0_0 = arith.constant 0 : index
    %c0_1 = arith.constant 0 : index
    %0 = vector.load %arg1[%c0, %c0_0, %c0_1] : memref<1x16x128xf32, #tpu.memory_space<vmem>>, vector<1x16x128xf32>
    %1 = vector.shape_cast %0 : vector<1x16x128xf32> to vector<16x128xf32>
    %c0_2 = arith.constant 0 : index
    %c0_3 = arith.constant 0 : index
    %c0_4 = arith.constant 0 : index
    %2 = vector.load %arg2[%c0_2, %c0_3, %c0_4] : memref<1x1x16xf32, #tpu.memory_space<vmem>>, vector<1x1x16xf32>
    %3 = vector.shape_cast %2 : vector<1x1x16xf32> to vector<1x16xf32>
    %cst = arith.constant 1.000000e+00 : f32
    %4 = vector.broadcast %cst : f32 to vector<1x16xf32>
    %5 = arith.subf %3, %4 : vector<1x16xf32>
    %cst_5 = arith.constant 1.000000e+09 : f32
    %6 = vector.broadcast %cst_5 : f32 to vector<1x16xf32>
    %7 = arith.mulf %5, %6 : vector<1x16xf32>
    %8 = arith.truncf %1 : vector<16x128xf32> to vector<16x128xbf16>
    %c0_6 = arith.constant 0 : index
    %c0_7 = arith.constant 0 : index
    %9 = vector.load %arg3[%c0_6, %c0_7] : memref<128x384xbf16, #tpu.memory_space<vmem>>, vector<128x384xbf16>
    %cst_8 = arith.constant dense<0.000000e+00> : vector<16x384xf32>
    %10 = tpu.matmul %8, %9, %cst_8 {dimension_numbers = #tpu.dot_dimension_numbers<[1], [0], [0], [1], [0, 0, 1, 1], [], []>} : vector<16x128xbf16>, vector<128x384xbf16>, vector<16x384xf32> -> vector<16x384xf32>
    %c0_9 = arith.constant 0 : index
    %c0_10 = arith.constant 0 : index
    %11 = vector.load %arg4[%c0_9, %c0_10] : memref<1x384xf32, #tpu.memory_space<vmem>>, vector<1x384xf32>
    %12 = vector.broadcast %11 : vector<1x384xf32> to vector<16x384xf32>
    %13 = arith.addf %10, %12 : vector<16x384xf32>
    %14 = vector.extract_strided_slice %13 {offsets = [0, 0], sizes = [16, 128], strides = [1, 1]} : vector<16x384xf32> to vector<16x128xf32>
    %15 = vector.extract_strided_slice %13 {offsets = [0, 128], sizes = [16, 128], strides = [1, 1]} : vector<16x384xf32> to vector<16x128xf32>
    %16 = vector.extract_strided_slice %13 {offsets = [0, 256], sizes = [16, 128], strides = [1, 1]} : vector<16x384xf32> to vector<16x128xf32>
    %17 = vector.extract_strided_slice %14 {offsets = [0, 0], sizes = [16, 32], strides = [1, 1]} : vector<16x128xf32> to vector<16x32xf32>
    %18 = arith.truncf %17 : vector<16x32xf32> to vector<16x32xbf16>
    %19 = vector.extract_strided_slice %15 {offsets = [0, 0], sizes = [16, 32], strides = [1, 1]} : vector<16x128xf32> to vector<16x32xf32>
    %20 = arith.truncf %19 : vector<16x32xf32> to vector<16x32xbf16>
    %21 = vector.extract_strided_slice %16 {offsets = [0, 0], sizes = [16, 32], strides = [1, 1]} : vector<16x128xf32> to vector<16x32xf32>
    %22 = arith.truncf %21 : vector<16x32xf32> to vector<16x32xbf16>
    %cst_11 = arith.constant dense<0.000000e+00> : vector<16x16xf32>
    %23 = tpu.matmul %18, %20, %cst_11 {dimension_numbers = #tpu.dot_dimension_numbers<[1], [1], [0], [0], [0, 0, 1, 0], [], []>} : vector<16x32xbf16>, vector<16x32xbf16>, vector<16x16xf32> -> vector<16x16xf32>
    %cst_12 = arith.constant 0.176776692 : f32
    %24 = vector.broadcast %cst_12 : f32 to vector<16x16xf32>
    %25 = arith.mulf %23, %24 : vector<16x16xf32>
    %26 = vector.broadcast %7 : vector<1x16xf32> to vector<16x16xf32>
    %27 = arith.addf %25, %26 : vector<16x16xf32>
    %cst_13 = arith.constant dense<0xFF800000> : vector<16xf32>
    %28 = vector.multi_reduction <maximumf>, %27, %cst_13 [1] : vector<16x16xf32> to vector<16xf32>
    %29 = vector.shape_cast %28 : vector<16xf32> to vector<16x1xf32>
    %30 = vector.broadcast %29 : vector<16x1xf32> to vector<16x16xf32>
    %31 = arith.subf %27, %30 : vector<16x16xf32>
    %32 = math.exp %31 : vector<16x16xf32>
    %cst_14 = arith.constant dense<0.000000e+00> : vector<16xf32>
    %33 = vector.multi_reduction <add>, %32, %cst_14 [1] : vector<16x16xf32> to vector<16xf32>
    %34 = vector.shape_cast %33 : vector<16xf32> to vector<16x1xf32>
    %35 = tpu.reciprocal %34 {approx = true} : vector<16x1xf32> -> vector<16x1xf32>
    %36 = vector.broadcast %35 : vector<16x1xf32> to vector<16x16xf32>
    %37 = arith.mulf %32, %36 : vector<16x16xf32>
    %38 = arith.truncf %37 : vector<16x16xf32> to vector<16x16xbf16>
    %cst_15 = arith.constant dense<0.000000e+00> : vector<16x32xf32>
    %39 = tpu.matmul %38, %22, %cst_15 {dimension_numbers = #tpu.dot_dimension_numbers<[1], [0], [0], [1], [0, 0, 1, 1], [], []>} : vector<16x16xbf16>, vector<16x32xbf16>, vector<16x32xf32> -> vector<16x32xf32>
    %40 = vector.extract_strided_slice %14 {offsets = [0, 32], sizes = [16, 32], strides = [1, 1]} : vector<16x128xf32> to vector<16x32xf32>
    %41 = arith.truncf %40 : vector<16x32xf32> to vector<16x32xbf16>
    %42 = vector.extract_strided_slice %15 {offsets = [0, 32], sizes = [16, 32], strides = [1, 1]} : vector<16x128xf32> to vector<16x32xf32>
    %43 = arith.truncf %42 : vector<16x32xf32> to vector<16x32xbf16>
    %44 = vector.extract_strided_slice %16 {offsets = [0, 32], sizes = [16, 32], strides = [1, 1]} : vector<16x128xf32> to vector<16x32xf32>
    %45 = arith.truncf %44 : vector<16x32xf32> to vector<16x32xbf16>
    %cst_16 = arith.constant dense<0.000000e+00> : vector<16x16xf32>
    %46 = tpu.matmul %41, %43, %cst_16 {dimension_numbers = #tpu.dot_dimension_numbers<[1], [1], [0], [0], [0, 0, 1, 0], [], []>} : vector<16x32xbf16>, vector<16x32xbf16>, vector<16x16xf32> -> vector<16x16xf32>
    %cst_17 = arith.constant 0.176776692 : f32
    %47 = vector.broadcast %cst_17 : f32 to vector<16x16xf32>
    %48 = arith.mulf %46, %47 : vector<16x16xf32>
    %49 = vector.broadcast %7 : vector<1x16xf32> to vector<16x16xf32>
    %50 = arith.addf %48, %49 : vector<16x16xf32>
    %cst_18 = arith.constant dense<0xFF800000> : vector<16xf32>
    %51 = vector.multi_reduction <maximumf>, %50, %cst_18 [1] : vector<16x16xf32> to vector<16xf32>
    %52 = vector.shape_cast %51 : vector<16xf32> to vector<16x1xf32>
    %53 = vector.broadcast %52 : vector<16x1xf32> to vector<16x16xf32>
    %54 = arith.subf %50, %53 : vector<16x16xf32>
    %55 = math.exp %54 : vector<16x16xf32>
    %cst_19 = arith.constant dense<0.000000e+00> : vector<16xf32>
    %56 = vector.multi_reduction <add>, %55, %cst_19 [1] : vector<16x16xf32> to vector<16xf32>
    %57 = vector.shape_cast %56 : vector<16xf32> to vector<16x1xf32>
    %58 = tpu.reciprocal %57 {approx = true} : vector<16x1xf32> -> vector<16x1xf32>
    %59 = vector.broadcast %58 : vector<16x1xf32> to vector<16x16xf32>
    %60 = arith.mulf %55, %59 : vector<16x16xf32>
    %61 = arith.truncf %60 : vector<16x16xf32> to vector<16x16xbf16>
    %cst_20 = arith.constant dense<0.000000e+00> : vector<16x32xf32>
    %62 = tpu.matmul %61, %45, %cst_20 {dimension_numbers = #tpu.dot_dimension_numbers<[1], [0], [0], [1], [0, 0, 1, 1], [], []>} : vector<16x16xbf16>, vector<16x32xbf16>, vector<16x32xf32> -> vector<16x32xf32>
    %63 = vector.extract_strided_slice %14 {offsets = [0, 64], sizes = [16, 32], strides = [1, 1]} : vector<16x128xf32> to vector<16x32xf32>
    %64 = arith.truncf %63 : vector<16x32xf32> to vector<16x32xbf16>
    %65 = vector.extract_strided_slice %15 {offsets = [0, 64], sizes = [16, 32], strides = [1, 1]} : vector<16x128xf32> to vector<16x32xf32>
    %66 = arith.truncf %65 : vector<16x32xf32> to vector<16x32xbf16>
    %67 = vector.extract_strided_slice %16 {offsets = [0, 64], sizes = [16, 32], strides = [1, 1]} : vector<16x128xf32> to vector<16x32xf32>
    %68 = arith.truncf %67 : vector<16x32xf32> to vector<16x32xbf16>
    %cst_21 = arith.constant dense<0.000000e+00> : vector<16x16xf32>
    %69 = tpu.matmul %64, %66, %cst_21 {dimension_numbers = #tpu.dot_dimension_numbers<[1], [1], [0], [0], [0, 0, 1, 0], [], []>} : vector<16x32xbf16>, vector<16x32xbf16>, vector<16x16xf32> -> vector<16x16xf32>
    %cst_22 = arith.constant 0.176776692 : f32
    %70 = vector.broadcast %cst_22 : f32 to vector<16x16xf32>
    %71 = arith.mulf %69, %70 : vector<16x16xf32>
    %72 = vector.broadcast %7 : vector<1x16xf32> to vector<16x16xf32>
    %73 = arith.addf %71, %72 : vector<16x16xf32>
    %cst_23 = arith.constant dense<0xFF800000> : vector<16xf32>
    %74 = vector.multi_reduction <maximumf>, %73, %cst_23 [1] : vector<16x16xf32> to vector<16xf32>
    %75 = vector.shape_cast %74 : vector<16xf32> to vector<16x1xf32>
    %76 = vector.broadcast %75 : vector<16x1xf32> to vector<16x16xf32>
    %77 = arith.subf %73, %76 : vector<16x16xf32>
    %78 = math.exp %77 : vector<16x16xf32>
    %cst_24 = arith.constant dense<0.000000e+00> : vector<16xf32>
    %79 = vector.multi_reduction <add>, %78, %cst_24 [1] : vector<16x16xf32> to vector<16xf32>
    %80 = vector.shape_cast %79 : vector<16xf32> to vector<16x1xf32>
    %81 = tpu.reciprocal %80 {approx = true} : vector<16x1xf32> -> vector<16x1xf32>
    %82 = vector.broadcast %81 : vector<16x1xf32> to vector<16x16xf32>
    %83 = arith.mulf %78, %82 : vector<16x16xf32>
    %84 = arith.truncf %83 : vector<16x16xf32> to vector<16x16xbf16>
    %cst_25 = arith.constant dense<0.000000e+00> : vector<16x32xf32>
    %85 = tpu.matmul %84, %68, %cst_25 {dimension_numbers = #tpu.dot_dimension_numbers<[1], [0], [0], [1], [0, 0, 1, 1], [], []>} : vector<16x16xbf16>, vector<16x32xbf16>, vector<16x32xf32> -> vector<16x32xf32>
    %86 = vector.extract_strided_slice %14 {offsets = [0, 96], sizes = [16, 32], strides = [1, 1]} : vector<16x128xf32> to vector<16x32xf32>
    %87 = arith.truncf %86 : vector<16x32xf32> to vector<16x32xbf16>
    %88 = vector.extract_strided_slice %15 {offsets = [0, 96], sizes = [16, 32], strides = [1, 1]} : vector<16x128xf32> to vector<16x32xf32>
    %89 = arith.truncf %88 : vector<16x32xf32> to vector<16x32xbf16>
    %90 = vector.extract_strided_slice %16 {offsets = [0, 96], sizes = [16, 32], strides = [1, 1]} : vector<16x128xf32> to vector<16x32xf32>
    %91 = arith.truncf %90 : vector<16x32xf32> to vector<16x32xbf16>
    %cst_26 = arith.constant dense<0.000000e+00> : vector<16x16xf32>
    %92 = tpu.matmul %87, %89, %cst_26 {dimension_numbers = #tpu.dot_dimension_numbers<[1], [1], [0], [0], [0, 0, 1, 0], [], []>} : vector<16x32xbf16>, vector<16x32xbf16>, vector<16x16xf32> -> vector<16x16xf32>
    %cst_27 = arith.constant 0.176776692 : f32
    %93 = vector.broadcast %cst_27 : f32 to vector<16x16xf32>
    %94 = arith.mulf %92, %93 : vector<16x16xf32>
    %95 = vector.broadcast %7 : vector<1x16xf32> to vector<16x16xf32>
    %96 = arith.addf %94, %95 : vector<16x16xf32>
    %cst_28 = arith.constant dense<0xFF800000> : vector<16xf32>
    %97 = vector.multi_reduction <maximumf>, %96, %cst_28 [1] : vector<16x16xf32> to vector<16xf32>
    %98 = vector.shape_cast %97 : vector<16xf32> to vector<16x1xf32>
    %99 = vector.broadcast %98 : vector<16x1xf32> to vector<16x16xf32>
    %100 = arith.subf %96, %99 : vector<16x16xf32>
    %101 = math.exp %100 : vector<16x16xf32>
    %cst_29 = arith.constant dense<0.000000e+00> : vector<16xf32>
    %102 = vector.multi_reduction <add>, %101, %cst_29 [1] : vector<16x16xf32> to vector<16xf32>
    %103 = vector.shape_cast %102 : vector<16xf32> to vector<16x1xf32>
    %104 = tpu.reciprocal %103 {approx = true} : vector<16x1xf32> -> vector<16x1xf32>
    %105 = vector.broadcast %104 : vector<16x1xf32> to vector<16x16xf32>
    %106 = arith.mulf %101, %105 : vector<16x16xf32>
    %107 = arith.truncf %106 : vector<16x16xf32> to vector<16x16xbf16>
    %cst_30 = arith.constant dense<0.000000e+00> : vector<16x32xf32>
    %108 = tpu.matmul %107, %91, %cst_30 {dimension_numbers = #tpu.dot_dimension_numbers<[1], [0], [0], [1], [0, 0, 1, 1], [], []>} : vector<16x16xbf16>, vector<16x32xbf16>, vector<16x32xf32> -> vector<16x32xf32>
    %109 = tpu.concatenate %39, %62, %85, %108 in 1 : vector<16x32xf32>, vector<16x32xf32>, vector<16x32xf32>, vector<16x32xf32> -> vector<16x128xf32>
    %110 = arith.truncf %109 : vector<16x128xf32> to vector<16x128xbf16>
    %c0_31 = arith.constant 0 : index
    %c0_32 = arith.constant 0 : index
    %111 = vector.load %arg5[%c0_31, %c0_32] : memref<128x128xbf16, #tpu.memory_space<vmem>>, vector<128x128xbf16>
    %cst_33 = arith.constant dense<0.000000e+00> : vector<16x128xf32>
    %112 = tpu.matmul %110, %111, %cst_33 {dimension_numbers = #tpu.dot_dimension_numbers<[1], [0], [0], [1], [0, 0, 1, 1], [], []>} : vector<16x128xbf16>, vector<128x128xbf16>, vector<16x128xf32> -> vector<16x128xf32>
    %c0_34 = arith.constant 0 : index
    %c0_35 = arith.constant 0 : index
    %113 = vector.load %arg6[%c0_34, %c0_35] : memref<1x128xf32, #tpu.memory_space<vmem>>, vector<1x128xf32>
    %114 = vector.broadcast %113 : vector<1x128xf32> to vector<16x128xf32>
    %115 = arith.addf %112, %114 : vector<16x128xf32>
    %116 = arith.addf %115, %1 : vector<16x128xf32>
    %c0_36 = arith.constant 0 : index
    %c0_37 = arith.constant 0 : index
    %117 = vector.load %arg7[%c0_36, %c0_37] : memref<1x128xf32, #tpu.memory_space<vmem>>, vector<1x128xf32>
    %c0_38 = arith.constant 0 : index
    %c0_39 = arith.constant 0 : index
    %118 = vector.load %arg8[%c0_38, %c0_39] : memref<1x128xf32, #tpu.memory_space<vmem>>, vector<1x128xf32>
    %cst_40 = arith.constant dense<0.000000e+00> : vector<16xf32>
    %119 = vector.multi_reduction <add>, %116, %cst_40 [1] : vector<16x128xf32> to vector<16xf32>
    %120 = vector.shape_cast %119 : vector<16xf32> to vector<16x1xf32>
    %cst_41 = arith.constant 1.280000e+02 : f32
    %121 = vector.broadcast %cst_41 : f32 to vector<16x1xf32>
    %122 = arith.divf %120, %121 : vector<16x1xf32>
    %123 = vector.broadcast %122 : vector<16x1xf32> to vector<16x128xf32>
    %124 = arith.subf %116, %123 : vector<16x128xf32>
    %125 = arith.mulf %124, %124 : vector<16x128xf32>
    %cst_42 = arith.constant dense<0.000000e+00> : vector<16xf32>
    %126 = vector.multi_reduction <add>, %125, %cst_42 [1] : vector<16x128xf32> to vector<16xf32>
    %127 = vector.shape_cast %126 : vector<16xf32> to vector<16x1xf32>
    %cst_43 = arith.constant 1.280000e+02 : f32
    %128 = vector.broadcast %cst_43 : f32 to vector<16x1xf32>
    %129 = arith.divf %127, %128 : vector<16x1xf32>
    %130 = vector.broadcast %122 : vector<16x1xf32> to vector<16x128xf32>
    %131 = arith.subf %116, %130 : vector<16x128xf32>
    %cst_44 = arith.constant 1.000000e-07 : f32
    %132 = vector.broadcast %cst_44 : f32 to vector<16x1xf32>
    %133 = arith.addf %129, %132 : vector<16x1xf32>
    %134 = math.rsqrt %133 : vector<16x1xf32>
    %135 = vector.broadcast %134 : vector<16x1xf32> to vector<16x128xf32>
    %136 = arith.mulf %131, %135 : vector<16x128xf32>
    %137 = vector.broadcast %117 : vector<1x128xf32> to vector<16x128xf32>
    %138 = arith.mulf %136, %137 : vector<16x128xf32>
    %139 = vector.broadcast %118 : vector<1x128xf32> to vector<16x128xf32>
    %140 = arith.addf %138, %139 : vector<16x128xf32>
    %141 = arith.truncf %140 : vector<16x128xf32> to vector<16x128xbf16>
    %c0_45 = arith.constant 0 : index
    %c0_46 = arith.constant 0 : index
    %142 = vector.load %arg9[%c0_45, %c0_46] : memref<128x256xbf16, #tpu.memory_space<vmem>>, vector<128x256xbf16>
    %cst_47 = arith.constant dense<0.000000e+00> : vector<16x256xf32>
    %143 = tpu.matmul %141, %142, %cst_47 {dimension_numbers = #tpu.dot_dimension_numbers<[1], [0], [0], [1], [0, 0, 1, 1], [], []>} : vector<16x128xbf16>, vector<128x256xbf16>, vector<16x256xf32> -> vector<16x256xf32>
    %c0_48 = arith.constant 0 : index
    %c0_49 = arith.constant 0 : index
    %144 = vector.load %arg10[%c0_48, %c0_49] : memref<1x256xf32, #tpu.memory_space<vmem>>, vector<1x256xf32>
    %145 = vector.broadcast %144 : vector<1x256xf32> to vector<16x256xf32>
    %146 = arith.addf %143, %145 : vector<16x256xf32>
    %147 = arith.mulf %146, %146 : vector<16x256xf32>
    %148 = arith.mulf %146, %147 : vector<16x256xf32>
    %cst_50 = arith.constant 4.471500e-02 : f32
    %149 = vector.broadcast %cst_50 : f32 to vector<16x256xf32>
    %150 = arith.mulf %149, %148 : vector<16x256xf32>
    %151 = arith.addf %146, %150 : vector<16x256xf32>
    %cst_51 = arith.constant 0.797884583 : f32
    %152 = vector.broadcast %cst_51 : f32 to vector<16x256xf32>
    %153 = arith.mulf %152, %151 : vector<16x256xf32>
    %154 = math.tanh %153 : vector<16x256xf32>
    %cst_52 = arith.constant 1.000000e+00 : f32
    %155 = vector.broadcast %cst_52 : f32 to vector<16x256xf32>
    %156 = arith.addf %155, %154 : vector<16x256xf32>
    %cst_53 = arith.constant 5.000000e-01 : f32
    %157 = vector.broadcast %cst_53 : f32 to vector<16x256xf32>
    %158 = arith.mulf %157, %156 : vector<16x256xf32>
    %159 = arith.mulf %146, %158 : vector<16x256xf32>
    %160 = arith.truncf %159 : vector<16x256xf32> to vector<16x256xbf16>
    %c0_54 = arith.constant 0 : index
    %c0_55 = arith.constant 0 : index
    %161 = vector.load %arg11[%c0_54, %c0_55] : memref<256x128xbf16, #tpu.memory_space<vmem>>, vector<256x128xbf16>
    %cst_56 = arith.constant dense<0.000000e+00> : vector<16x128xf32>
    %162 = tpu.matmul %160, %161, %cst_56 {dimension_numbers = #tpu.dot_dimension_numbers<[1], [0], [0], [1], [0, 0, 1, 1], [], []>} : vector<16x256xbf16>, vector<256x128xbf16>, vector<16x128xf32> -> vector<16x128xf32>
    %c0_57 = arith.constant 0 : index
    %c0_58 = arith.constant 0 : index
    %163 = vector.load %arg12[%c0_57, %c0_58] : memref<1x128xf32, #tpu.memory_space<vmem>>, vector<1x128xf32>
    %164 = vector.broadcast %163 : vector<1x128xf32> to vector<16x128xf32>
    %165 = arith.addf %162, %164 : vector<16x128xf32>
    %166 = arith.addf %165, %140 : vector<16x128xf32>
    %c0_59 = arith.constant 0 : index
    %c0_60 = arith.constant 0 : index
    %167 = vector.load %arg13[%c0_59, %c0_60] : memref<1x128xf32, #tpu.memory_space<vmem>>, vector<1x128xf32>
    %c0_61 = arith.constant 0 : index
    %c0_62 = arith.constant 0 : index
    %168 = vector.load %arg14[%c0_61, %c0_62] : memref<1x128xf32, #tpu.memory_space<vmem>>, vector<1x128xf32>
    %cst_63 = arith.constant dense<0.000000e+00> : vector<16xf32>
    %169 = vector.multi_reduction <add>, %166, %cst_63 [1] : vector<16x128xf32> to vector<16xf32>
    %170 = vector.shape_cast %169 : vector<16xf32> to vector<16x1xf32>
    %cst_64 = arith.constant 1.280000e+02 : f32
    %171 = vector.broadcast %cst_64 : f32 to vector<16x1xf32>
    %172 = arith.divf %170, %171 : vector<16x1xf32>
    %173 = vector.broadcast %172 : vector<16x1xf32> to vector<16x128xf32>
    %174 = arith.subf %166, %173 : vector<16x128xf32>
    %175 = arith.mulf %174, %174 : vector<16x128xf32>
    %cst_65 = arith.constant dense<0.000000e+00> : vector<16xf32>
    %176 = vector.multi_reduction <add>, %175, %cst_65 [1] : vector<16x128xf32> to vector<16xf32>
    %177 = vector.shape_cast %176 : vector<16xf32> to vector<16x1xf32>
    %cst_66 = arith.constant 1.280000e+02 : f32
    %178 = vector.broadcast %cst_66 : f32 to vector<16x1xf32>
    %179 = arith.divf %177, %178 : vector<16x1xf32>
    %180 = vector.broadcast %172 : vector<16x1xf32> to vector<16x128xf32>
    %181 = arith.subf %166, %180 : vector<16x128xf32>
    %cst_67 = arith.constant 1.000000e-07 : f32
    %182 = vector.broadcast %cst_67 : f32 to vector<16x1xf32>
    %183 = arith.addf %179, %182 : vector<16x1xf32>
    %184 = math.rsqrt %183 : vector<16x1xf32>
    %185 = vector.broadcast %184 : vector<16x1xf32> to vector<16x128xf32>
    %186 = arith.mulf %181, %185 : vector<16x128xf32>
    %187 = vector.broadcast %167 : vector<1x128xf32> to vector<16x128xf32>
    %188 = arith.mulf %186, %187 : vector<16x128xf32>
    %189 = vector.broadcast %168 : vector<1x128xf32> to vector<16x128xf32>
    %190 = arith.addf %188, %189 : vector<16x128xf32>
    %c0_68 = arith.constant 0 : index
    %c0_69 = arith.constant 0 : index
    %c0_70 = arith.constant 0 : index
    %191 = vector.load %arg15[%c0_68, %c0_69, %c0_70] : memref<1x16x128xf32, #tpu.memory_space<vmem>>, vector<1x16x128xf32>
    %192 = vector.shape_cast %191 : vector<1x16x128xf32> to vector<16x128xf32>
    %193 = vector.shape_cast %190 : vector<16x128xf32> to vector<1x16x128xf32>
    tpu.vector_store %arg15[%c0_68, %c0_69, %c0_70], %193 {strides = array<i32>} : memref<1x16x128xf32, #tpu.memory_space<vmem>>, vector<1x16x128xf32>,
    return
  }
  func.func @transform_0(%arg0: i32) -> (i32, i32, i32) {
    %c0_i32 = arith.constant 0 : i32
    %c0_i32_0 = arith.constant 0 : i32
    %c0_i32_1 = arith.constant 0 : i32
    return %arg0, %c0_i32, %c0_i32_0 : i32, i32, i32
  }
  func.func @transform_1(%arg0: i32) -> (i32, i32, i32) {
    %c0_i32 = arith.constant 0 : i32
    %c0_i32_0 = arith.constant 0 : i32
    %c0_i32_1 = arith.constant 0 : i32
    return %arg0, %c0_i32, %c0_i32_0 : i32, i32, i32
  }
  func.func @transform_2(%arg0: i32) -> (i32, i32) {
    %c0_i32 = arith.constant 0 : i32
    %c0_i32_0 = arith.constant 0 : i32
    %c0_i32_1 = arith.constant 0 : i32
    return %c0_i32, %c0_i32_0 : i32, i32
  }
  func.func @transform_3(%arg0: i32) -> (i32, i32) {
    %c0_i32 = arith.constant 0 : i32
    %c0_i32_0 = arith.constant 0 : i32
    %c0_i32_1 = arith.constant 0 : i32
    return %c0_i32, %c0_i32_0 : i32, i32
  }
  func.func @transform_4(%arg0: i32) -> (i32, i32) {
    %c0_i32 = arith.constant 0 : i32
    %c0_i32_0 = arith.constant 0 : i32
    %c0_i32_1 = arith.constant 0 : i32
    return %c0_i32, %c0_i32_0 : i32, i32
  }
  func.func @transform_5(%arg0: i32) -> (i32, i32) {
    %c0_i32 = arith.constant 0 : i32
    %c0_i32_0 = arith.constant 0 : i32
    %c0_i32_1 = arith.constant 0 : i32
    return %c0_i32, %c0_i32_0 : i32, i32
  }
  func.func @transform_6(%arg0: i32) -> (i32, i32) {
    %c0_i32 = arith.constant 0 : i32
    %c0_i32_0 = arith.constant 0 : i32
    %c0_i32_1 = arith.constant 0 : i32
    return %c0_i32, %c0_i32_0 : i32, i32
  }
  func.func @transform_7(%arg0: i32) -> (i32, i32) {
    %c0_i32 = arith.constant 0 : i32
    %c0_i32_0 = arith.constant 0 : i32
    %c0_i32_1 = arith.constant 0 : i32
    return %c0_i32, %c0_i32_0 : i32, i32
  }
  func.func @transform_8(%arg0: i32) -> (i32, i32) {
    %c0_i32 = arith.constant 0 : i32
    %c0_i32_0 = arith.constant 0 : i32
    %c0_i32_1 = arith.constant 0 : i32
    return %c0_i32, %c0_i32_0 : i32, i32
  }
  func.func @transform_9(%arg0: i32) -> (i32, i32) {
    %c0_i32 = arith.constant 0 : i32
    %c0_i32_0 = arith.constant 0 : i32
    %c0_i32_1 = arith.constant 0 : i32
    return %c0_i32, %c0_i32_0 : i32, i32
  }
  func.func @transform_10(%arg0: i32) -> (i32, i32) {
    %c0_i32 = arith.constant 0 : i32
    %c0_i32_0 = arith.constant 0 : i32
    %c0_i32_1 = arith.constant 0 : i32
    return %c0_i32, %c0_i32_0 : i32, i32
  }
  func.func @transform_11(%arg0: i32) -> (i32, i32) {
    %c0_i32 = arith.constant 0 : i32
    %c0_i32_0 = arith.constant 0 : i32
    %c0_i32_1 = arith.constant 0 : i32
    return %c0_i32, %c0_i32_0 : i32, i32
  }
  func.func @transform_12(%arg0: i32) -> (i32, i32) {
    %c0_i32 = arith.constant 0 : i32
    %c0_i32_0 = arith.constant 0 : i32
    %c0_i32_1 = arith.constant 0 : i32
    return %c0_i32, %c0_i32_0 : i32, i32
  }
  func.func @transform_13(%arg0: i32) -> (i32, i32) {
    %c0_i32 = arith.constant 0 : i32
    %c0_i32_0 = arith.constant 0 : i32
    %c0_i32_1 = arith.constant 0 : i32
    return %c0_i32, %c0_i32_0 : i32, i32
  }
  func.func @transform_14(%arg0: i32) -> (i32, i32, i32) {
    %c0_i32 = arith.constant 0 : i32
    %c0_i32_0 = arith.constant 0 : i32
    %c0_i32_1 = arith.constant 0 : i32
    return %arg0, %c0_i32, %c0_i32_0 : i32, i32, i32
  }
}

module attributes {stable_mosaic.version = 11 : i64} {
  func.func @_encoder_layer_kernel(%arg0: i32, %arg1: memref<1x16x128xf32, #tpu.memory_space<vmem>>, %arg2: memref<1x1x16xf32, #tpu.memory_space<vmem>>, %arg3: memref<128x384xbf16, #tpu.memory_space<vmem>>, %arg4: memref<1x384xf32, #tpu.memory_space<vmem>>, %arg5: memref<128x128xbf16, #tpu.memory_space<vmem>>, %arg6: memref<1x128xf32, #tpu.memory_space<vmem>>, %arg7: memref<1x128xf32, #tpu.memory_space<vmem>>, %arg8: memref<1x128xf32, #tpu.memory_space<vmem>>, %arg9: memref<128x256xbf16, #tpu.memory_space<vmem>>, %arg10: memref<1x256xf32, #tpu.memory_space<vmem>>, %arg11: memref<256x128xbf16, #tpu.memory_space<vmem>>, %arg12: memref<1x128xf32, #tpu.memory_space<vmem>>, %arg13: memref<1x128xf32, #tpu.memory_space<vmem>>, %arg14: memref<1x128xf32, #tpu.memory_space<vmem>>, %arg15: memref<1x16x128xf32, #tpu.memory_space<vmem>>) attributes {dimension_semantics = [#tpu.dimension_semantics<parallel>], iteration_bounds = array<i64: 2>, scalar_prefetch = 0 : i64, scratch_operands = 0 : i64, tpu.core_type = #tpu.core_type<tc>, window_params = [{transform_indices = @transform_0, window_bounds = array<i64: 1, 16, 128>}, {transform_indices = @transform_1, window_bounds = array<i64: 1, 1, 16>}, {pipeline_mode = #tpu.pipeline_mode<synchronous>, transform_indices = @transform_2, window_bounds = array<i64: 128, 384>}, {pipeline_mode = #tpu.pipeline_mode<synchronous>, transform_indices = @transform_3, window_bounds = array<i64: 1, 384>}, {pipeline_mode = #tpu.pipeline_mode<synchronous>, transform_indices = @transform_4, window_bounds = array<i64: 128, 128>}, {pipeline_mode = #tpu.pipeline_mode<synchronous>, transform_indices = @transform_5, window_bounds = array<i64: 1, 128>}, {pipeline_mode = #tpu.pipeline_mode<synchronous>, transform_indices = @transform_6, window_bounds = array<i64: 1, 128>}, {pipeline_mode = #tpu.pipeline_mode<synchronous>, transform_indices = @transform_7, window_bounds = array<i64: 1, 128>}, {pipeline_mode = #tpu.pipeline_mode<synchronous>, transform_indices = @transform_8, window_bounds = array<i64: 128, 256>}, {pipeline_mode = #tpu.pipeline_mode<synchronous>, transform_indices = @transform_9, window_bounds = array<i64: 1, 256>}, {pipeline_mode = #tpu.pipeline_mode<synchronous>, transform_indices = @transform_10, window_bounds = array<i64: 256, 128>}, {pipeline_mode = #tpu.pipeline_mode<synchronous>, transform_indices = @transform_11, window_bounds = array<i64: 1, 128>}, {pipeline_mode = #tpu.pipeline_mode<synchronous>, transform_indices = @transform_12, window_bounds = array<i64: 1, 128>}, {pipeline_mode = #tpu.pipeline_mode<synchronous>, transform_indices = @transform_13, window_bounds = array<i64: 1, 128>}, {transform_indices = @transform_14, window_bounds = array<i64: 1, 16, 128>}]} {
    %c0 = arith.constant 0 : index
    %c0_0 = arith.constant 0 : index
    %c0_1 = arith.constant 0 : index
    %0 = vector.load %arg1[%c0, %c0_0, %c0_1] : memref<1x16x128xf32, #tpu.memory_space<vmem>>, vector<1x16x128xf32>
    %1 = vector.shape_cast %0 : vector<1x16x128xf32> to vector<16x128xf32>
    %c0_2 = arith.constant 0 : index
    %c0_3 = arith.constant 0 : index
    %c0_4 = arith.constant 0 : index
    %2 = vector.load %arg2[%c0_2, %c0_3, %c0_4] : memref<1x1x16xf32, #tpu.memory_space<vmem>>, vector<1x1x16xf32>
    %3 = vector.shape_cast %2 : vector<1x1x16xf32> to vector<1x16xf32>
    %cst = arith.constant 1.000000e+00 : f32
    %4 = vector.broadcast %cst : f32 to vector<1x16xf32>
    %5 = arith.subf %3, %4 : vector<1x16xf32>
    %cst_5 = arith.constant 1.000000e+09 : f32
    %6 = vector.broadcast %cst_5 : f32 to vector<1x16xf32>
    %7 = arith.mulf %5, %6 : vector<1x16xf32>
    %8 = arith.truncf %1 : vector<16x128xf32> to vector<16x128xbf16>
    %c0_6 = arith.constant 0 : index
    %c0_7 = arith.constant 0 : index
    %9 = vector.load %arg3[%c0_6, %c0_7] : memref<128x384xbf16, #tpu.memory_space<vmem>>, vector<128x384xbf16>
    %cst_8 = arith.constant dense<0.000000e+00> : vector<16x384xf32>
    %10 = tpu.matmul %8, %9, %cst_8 {dimension_numbers = #tpu.dot_dimension_numbers<[1], [0], [0], [1], [0, 0, 1, 1], [], []>} : vector<16x128xbf16>, vector<128x384xbf16>, vector<16x384xf32> -> vector<16x384xf32>
    %c0_9 = arith.constant 0 : index
    %c0_10 = arith.constant 0 : index
    %11 = vector.load %arg4[%c0_9, %c0_10] : memref<1x384xf32, #tpu.memory_space<vmem>>, vector<1x384xf32>
    %12 = vector.broadcast %11 : vector<1x384xf32> to vector<16x384xf32>
    %13 = arith.addf %10, %12 : vector<16x384xf32>
    %14 = vector.extract_strided_slice %13 {offsets = [0, 0], sizes = [16, 128], strides = [1, 1]} : vector<16x384xf32> to vector<16x128xf32>
    %15 = vector.extract_strided_slice %13 {offsets = [0, 128], sizes = [16, 128], strides = [1, 1]} : vector<16x384xf32> to vector<16x128xf32>
    %16 = vector.extract_strided_slice %13 {offsets = [0, 256], sizes = [16, 128], strides = [1, 1]} : vector<16x384xf32> to vector<16x128xf32>
    %17 = vector.extract_strided_slice %14 {offsets = [0, 0], sizes = [16, 32], strides = [1, 1]} : vector<16x128xf32> to vector<16x32xf32>
    %18 = arith.truncf %17 : vector<16x32xf32> to vector<16x32xbf16>
    %19 = vector.extract_strided_slice %15 {offsets = [0, 0], sizes = [16, 32], strides = [1, 1]} : vector<16x128xf32> to vector<16x32xf32>
    %20 = arith.truncf %19 : vector<16x32xf32> to vector<16x32xbf16>
    %21 = vector.extract_strided_slice %16 {offsets = [0, 0], sizes = [16, 32], strides = [1, 1]} : vector<16x128xf32> to vector<16x32xf32>
    %22 = arith.truncf %21 : vector<16x32xf32> to vector<16x32xbf16>
    %cst_11 = arith.constant dense<0.000000e+00> : vector<16x16xf32>
    %23 = tpu.matmul %18, %20, %cst_11 {dimension_numbers = #tpu.dot_dimension_numbers<[1], [1], [0], [0], [0, 0, 1, 0], [], []>} : vector<16x32xbf16>, vector<16x32xbf16>, vector<16x16xf32> -> vector<16x16xf32>
    %cst_12 = arith.constant 0.176776692 : f32
    %24 = vector.broadcast %cst_12 : f32 to vector<16x16xf32>
    %25 = arith.mulf %23, %24 : vector<16x16xf32>
    %26 = vector.broadcast %7 : vector<1x16xf32> to vector<16x16xf32>
    %27 = arith.addf %25, %26 : vector<16x16xf32>
    %cst_13 = arith.constant dense<0xFF800000> : vector<16xf32>
    %28 = vector.multi_reduction <maximumf>, %27, %cst_13 [1] : vector<16x16xf32> to vector<16xf32>
    %29 = vector.shape_cast %28 : vector<16xf32> to vector<16x1xf32>
    %30 = vector.broadcast %29 : vector<16x1xf32> to vector<16x16xf32>
    %31 = arith.subf %27, %30 : vector<16x16xf32>
    %32 = math.exp %31 : vector<16x16xf32>
    %cst_14 = arith.constant dense<0.000000e+00> : vector<16xf32>
    %33 = vector.multi_reduction <add>, %32, %cst_14 [1] : vector<16x16xf32> to vector<16xf32>
    %34 = vector.shape_cast %33 : vector<16xf32> to vector<16x1xf32>
    %35 = tpu.reciprocal %34 {approx = true} : vector<16x1xf32> -> vector<16x1xf32>
    %36 = vector.broadcast %35 : vector<16x1xf32> to vector<16x16xf32>
    %37 = arith.mulf %32, %36 : vector<16x16xf32>
    %38 = arith.truncf %37 : vector<16x16xf32> to vector<16x16xbf16>
    %cst_15 = arith.constant dense<0.000000e+00> : vector<16x32xf32>
    %39 = tpu.matmul %38, %22, %cst_15 {dimension_numbers = #tpu.dot_dimension_numbers<[1], [0], [0], [1], [0, 0, 1, 1], [], []>} : vector<16x16xbf16>, vector<16x32xbf16>, vector<16x32xf32> -> vector<16x32xf32>
    %40 = vector.extract_strided_slice %14 {offsets = [0, 32], sizes = [16, 32], strides = [1, 1]} : vector<16x128xf32> to vector<16x32xf32>
    %41 = arith.truncf %40 : vector<16x32xf32> to vector<16x32xbf16>
    %42 = vector.extract_strided_slice %15 {offsets = [0, 32], sizes = [16, 32], strides = [1, 1]} : vector<16x128xf32> to vector<16x32xf32>
    %43 = arith.truncf %42 : vector<16x32xf32> to vector<16x32xbf16>
    %44 = vector.extract_strided_slice %16 {offsets = [0, 32], sizes = [16, 32], strides = [1, 1]} : vector<16x128xf32> to vector<16x32xf32>
    %45 = arith.truncf %44 : vector<16x32xf32> to vector<16x32xbf16>
    %cst_16 = arith.constant dense<0.000000e+00> : vector<16x16xf32>
    %46 = tpu.matmul %41, %43, %cst_16 {dimension_numbers = #tpu.dot_dimension_numbers<[1], [1], [0], [0], [0, 0, 1, 0], [], []>} : vector<16x32xbf16>, vector<16x32xbf16>, vector<16x16xf32> -> vector<16x16xf32>
    %cst_17 = arith.constant 0.176776692 : f32
    %47 = vector.broadcast %cst_17 : f32 to vector<16x16xf32>
    %48 = arith.mulf %46, %47 : vector<16x16xf32>
    %49 = vector.broadcast %7 : vector<1x16xf32> to vector<16x16xf32>
    %50 = arith.addf %48, %49 : vector<16x16xf32>
    %cst_18 = arith.constant dense<0xFF800000> : vector<16xf32>
    %51 = vector.multi_reduction <maximumf>, %50, %cst_18 [1] : vector<16x16xf32> to vector<16xf32>
    %52 = vector.shape_cast %51 : vector<16xf32> to vector<16x1xf32>
    %53 = vector.broadcast %52 : vector<16x1xf32> to vector<16x16xf32>
    %54 = arith.subf %50, %53 : vector<16x16xf32>
    %55 = math.exp %54 : vector<16x16xf32>
    %cst_19 = arith.constant dense<0.000000e+00> : vector<16xf32>
    %56 = vector.multi_reduction <add>, %55, %cst_19 [1] : vector<16x16xf32> to vector<16xf32>
    %57 = vector.shape_cast %56 : vector<16xf32> to vector<16x1xf32>
    %58 = tpu.reciprocal %57 {approx = true} : vector<16x1xf32> -> vector<16x1xf32>
    %59 = vector.broadcast %58 : vector<16x1xf32> to vector<16x16xf32>
    %60 = arith.mulf %55, %59 : vector<16x16xf32>
    %61 = arith.truncf %60 : vector<16x16xf32> to vector<16x16xbf16>
    %cst_20 = arith.constant dense<0.000000e+00> : vector<16x32xf32>
    %62 = tpu.matmul %61, %45, %cst_20 {dimension_numbers = #tpu.dot_dimension_numbers<[1], [0], [0], [1], [0, 0, 1, 1], [], []>} : vector<16x16xbf16>, vector<16x32xbf16>, vector<16x32xf32> -> vector<16x32xf32>
    %63 = vector.extract_strided_slice %14 {offsets = [0, 64], sizes = [16, 32], strides = [1, 1]} : vector<16x128xf32> to vector<16x32xf32>
    %64 = arith.truncf %63 : vector<16x32xf32> to vector<16x32xbf16>
    %65 = vector.extract_strided_slice %15 {offsets = [0, 64], sizes = [16, 32], strides = [1, 1]} : vector<16x128xf32> to vector<16x32xf32>
    %66 = arith.truncf %65 : vector<16x32xf32> to vector<16x32xbf16>
    %67 = vector.extract_strided_slice %16 {offsets = [0, 64], sizes = [16, 32], strides = [1, 1]} : vector<16x128xf32> to vector<16x32xf32>
    %68 = arith.truncf %67 : vector<16x32xf32> to vector<16x32xbf16>
    %cst_21 = arith.constant dense<0.000000e+00> : vector<16x16xf32>
    %69 = tpu.matmul %64, %66, %cst_21 {dimension_numbers = #tpu.dot_dimension_numbers<[1], [1], [0], [0], [0, 0, 1, 0], [], []>} : vector<16x32xbf16>, vector<16x32xbf16>, vector<16x16xf32> -> vector<16x16xf32>
    %cst_22 = arith.constant 0.176776692 : f32
    %70 = vector.broadcast %cst_22 : f32 to vector<16x16xf32>
    %71 = arith.mulf %69, %70 : vector<16x16xf32>
    %72 = vector.broadcast %7 : vector<1x16xf32> to vector<16x16xf32>
    %73 = arith.addf %71, %72 : vector<16x16xf32>
    %cst_23 = arith.constant dense<0xFF800000> : vector<16xf32>
    %74 = vector.multi_reduction <maximumf>, %73, %cst_23 [1] : vector<16x16xf32> to vector<16xf32>
    %75 = vector.shape_cast %74 : vector<16xf32> to vector<16x1xf32>
    %76 = vector.broadcast %75 : vector<16x1xf32> to vector<16x16xf32>
    %77 = arith.subf %73, %76 : vector<16x16xf32>
    %78 = math.exp %77 : vector<16x16xf32>
    %cst_24 = arith.constant dense<0.000000e+00> : vector<16xf32>
    %79 = vector.multi_reduction <add>, %78, %cst_24 [1] : vector<16x16xf32> to vector<16xf32>
    %80 = vector.shape_cast %79 : vector<16xf32> to vector<16x1xf32>
    %81 = tpu.reciprocal %80 {approx = true} : vector<16x1xf32> -> vector<16x1xf32>
    %82 = vector.broadcast %81 : vector<16x1xf32> to vector<16x16xf32>
    %83 = arith.mulf %78, %82 : vector<16x16xf32>
    %84 = arith.truncf %83 : vector<16x16xf32> to vector<16x16xbf16>
    %cst_25 = arith.constant dense<0.000000e+00> : vector<16x32xf32>
    %85 = tpu.matmul %84, %68, %cst_25 {dimension_numbers = #tpu.dot_dimension_numbers<[1], [0], [0], [1], [0, 0, 1, 1], [], []>} : vector<16x16xbf16>, vector<16x32xbf16>, vector<16x32xf32> -> vector<16x32xf32>
    %86 = vector.extract_strided_slice %14 {offsets = [0, 96], sizes = [16, 32], strides = [1, 1]} : vector<16x128xf32> to vector<16x32xf32>
    %87 = arith.truncf %86 : vector<16x32xf32> to vector<16x32xbf16>
    %88 = vector.extract_strided_slice %15 {offsets = [0, 96], sizes = [16, 32], strides = [1, 1]} : vector<16x128xf32> to vector<16x32xf32>
    %89 = arith.truncf %88 : vector<16x32xf32> to vector<16x32xbf16>
    %90 = vector.extract_strided_slice %16 {offsets = [0, 96], sizes = [16, 32], strides = [1, 1]} : vector<16x128xf32> to vector<16x32xf32>
    %91 = arith.truncf %90 : vector<16x32xf32> to vector<16x32xbf16>
    %cst_26 = arith.constant dense<0.000000e+00> : vector<16x16xf32>
    %92 = tpu.matmul %87, %89, %cst_26 {dimension_numbers = #tpu.dot_dimension_numbers<[1], [1], [0], [0], [0, 0, 1, 0], [], []>} : vector<16x32xbf16>, vector<16x32xbf16>, vector<16x16xf32> -> vector<16x16xf32>
    %cst_27 = arith.constant 0.176776692 : f32
    %93 = vector.broadcast %cst_27 : f32 to vector<16x16xf32>
    %94 = arith.mulf %92, %93 : vector<16x16xf32>
    %95 = vector.broadcast %7 : vector<1x16xf32> to vector<16x16xf32>
    %96 = arith.addf %94, %95 : vector<16x16xf32>
    %cst_28 = arith.constant dense<0xFF800000> : vector<16xf32>
    %97 = vector.multi_reduction <maximumf>, %96, %cst_28 [1] : vector<16x16xf32> to vector<16xf32>
    %98 = vector.shape_cast %97 : vector<16xf32> to vector<16x1xf32>
    %99 = vector.broadcast %98 : vector<16x1xf32> to vector<16x16xf32>
    %100 = arith.subf %96, %99 : vector<16x16xf32>
    %101 = math.exp %100 : vector<16x16xf32>
    %cst_29 = arith.constant dense<0.000000e+00> : vector<16xf32>
    %102 = vector.multi_reduction <add>, %101, %cst_29 [1] : vector<16x16xf32> to vector<16xf32>
    %103 = vector.shape_cast %102 : vector<16xf32> to vector<16x1xf32>
    %104 = tpu.reciprocal %103 {approx = true} : vector<16x1xf32> -> vector<16x1xf32>
    %105 = vector.broadcast %104 : vector<16x1xf32> to vector<16x16xf32>
    %106 = arith.mulf %101, %105 : vector<16x16xf32>
    %107 = arith.truncf %106 : vector<16x16xf32> to vector<16x16xbf16>
    %cst_30 = arith.constant dense<0.000000e+00> : vector<16x32xf32>
    %108 = tpu.matmul %107, %91, %cst_30 {dimension_numbers = #tpu.dot_dimension_numbers<[1], [0], [0], [1], [0, 0, 1, 1], [], []>} : vector<16x16xbf16>, vector<16x32xbf16>, vector<16x32xf32> -> vector<16x32xf32>
    %109 = tpu.concatenate %39, %62, %85, %108 in 1 : vector<16x32xf32>, vector<16x32xf32>, vector<16x32xf32>, vector<16x32xf32> -> vector<16x128xf32>
    %110 = arith.truncf %109 : vector<16x128xf32> to vector<16x128xbf16>
    %c0_31 = arith.constant 0 : index
    %c0_32 = arith.constant 0 : index
    %111 = vector.load %arg5[%c0_31, %c0_32] : memref<128x128xbf16, #tpu.memory_space<vmem>>, vector<128x128xbf16>
    %cst_33 = arith.constant dense<0.000000e+00> : vector<16x128xf32>
    %112 = tpu.matmul %110, %111, %cst_33 {dimension_numbers = #tpu.dot_dimension_numbers<[1], [0], [0], [1], [0, 0, 1, 1], [], []>} : vector<16x128xbf16>, vector<128x128xbf16>, vector<16x128xf32> -> vector<16x128xf32>
    %c0_34 = arith.constant 0 : index
    %c0_35 = arith.constant 0 : index
    %113 = vector.load %arg6[%c0_34, %c0_35] : memref<1x128xf32, #tpu.memory_space<vmem>>, vector<1x128xf32>
    %114 = vector.broadcast %113 : vector<1x128xf32> to vector<16x128xf32>
    %115 = arith.addf %112, %114 : vector<16x128xf32>
    %116 = arith.addf %115, %1 : vector<16x128xf32>
    %c0_36 = arith.constant 0 : index
    %c0_37 = arith.constant 0 : index
    %117 = vector.load %arg7[%c0_36, %c0_37] : memref<1x128xf32, #tpu.memory_space<vmem>>, vector<1x128xf32>
    %c0_38 = arith.constant 0 : index
    %c0_39 = arith.constant 0 : index
    %118 = vector.load %arg8[%c0_38, %c0_39] : memref<1x128xf32, #tpu.memory_space<vmem>>, vector<1x128xf32>
    %cst_40 = arith.constant dense<0.000000e+00> : vector<16xf32>
    %119 = vector.multi_reduction <add>, %116, %cst_40 [1] : vector<16x128xf32> to vector<16xf32>
    %120 = vector.shape_cast %119 : vector<16xf32> to vector<16x1xf32>
    %cst_41 = arith.constant 1.280000e+02 : f32
    %121 = vector.broadcast %cst_41 : f32 to vector<16x1xf32>
    %122 = arith.divf %120, %121 : vector<16x1xf32>
    %123 = vector.broadcast %122 : vector<16x1xf32> to vector<16x128xf32>
    %124 = arith.subf %116, %123 : vector<16x128xf32>
    %125 = arith.mulf %124, %124 : vector<16x128xf32>
    %cst_42 = arith.constant dense<0.000000e+00> : vector<16xf32>
    %126 = vector.multi_reduction <add>, %125, %cst_42 [1] : vector<16x128xf32> to vector<16xf32>
    %127 = vector.shape_cast %126 : vector<16xf32> to vector<16x1xf32>
    %cst_43 = arith.constant 1.280000e+02 : f32
    %128 = vector.broadcast %cst_43 : f32 to vector<16x1xf32>
    %129 = arith.divf %127, %128 : vector<16x1xf32>
    %130 = vector.broadcast %122 : vector<16x1xf32> to vector<16x128xf32>
    %131 = arith.subf %116, %130 : vector<16x128xf32>
    %cst_44 = arith.constant 1.000000e-07 : f32
    %132 = vector.broadcast %cst_44 : f32 to vector<16x1xf32>
    %133 = arith.addf %129, %132 : vector<16x1xf32>
    %134 = math.rsqrt %133 : vector<16x1xf32>
    %135 = vector.broadcast %134 : vector<16x1xf32> to vector<16x128xf32>
    %136 = arith.mulf %131, %135 : vector<16x128xf32>
    %137 = vector.broadcast %117 : vector<1x128xf32> to vector<16x128xf32>
    %138 = arith.mulf %136, %137 : vector<16x128xf32>
    %139 = vector.broadcast %118 : vector<1x128xf32> to vector<16x128xf32>
    %140 = arith.addf %138, %139 : vector<16x128xf32>
    %141 = arith.truncf %140 : vector<16x128xf32> to vector<16x128xbf16>
    %c0_45 = arith.constant 0 : index
    %c0_46 = arith.constant 0 : index
    %142 = vector.load %arg9[%c0_45, %c0_46] : memref<128x256xbf16, #tpu.memory_space<vmem>>, vector<128x256xbf16>
    %cst_47 = arith.constant dense<0.000000e+00> : vector<16x256xf32>
    %143 = tpu.matmul %141, %142, %cst_47 {dimension_numbers = #tpu.dot_dimension_numbers<[1], [0], [0], [1], [0, 0, 1, 1], [], []>} : vector<16x128xbf16>, vector<128x256xbf16>, vector<16x256xf32> -> vector<16x256xf32>
    %c0_48 = arith.constant 0 : index
    %c0_49 = arith.constant 0 : index
    %144 = vector.load %arg10[%c0_48, %c0_49] : memref<1x256xf32, #tpu.memory_space<vmem>>, vector<1x256xf32>
    %145 = vector.broadcast %144 : vector<1x256xf32> to vector<16x256xf32>
    %146 = arith.addf %143, %145 : vector<16x256xf32>
    %147 = arith.mulf %146, %146 : vector<16x256xf32>
    %148 = arith.mulf %146, %147 : vector<16x256xf32>
    %cst_50 = arith.constant 4.471500e-02 : f32
    %149 = vector.broadcast %cst_50 : f32 to vector<16x256xf32>
    %150 = arith.mulf %149, %148 : vector<16x256xf32>
    %151 = arith.addf %146, %150 : vector<16x256xf32>
    %cst_51 = arith.constant 0.797884583 : f32
    %152 = vector.broadcast %cst_51 : f32 to vector<16x256xf32>
    %153 = arith.mulf %152, %151 : vector<16x256xf32>
    %154 = math.tanh %153 : vector<16x256xf32>
    %cst_52 = arith.constant 1.000000e+00 : f32
    %155 = vector.broadcast %cst_52 : f32 to vector<16x256xf32>
    %156 = arith.addf %155, %154 : vector<16x256xf32>
    %cst_53 = arith.constant 5.000000e-01 : f32
    %157 = vector.broadcast %cst_53 : f32 to vector<16x256xf32>
    %158 = arith.mulf %157, %156 : vector<16x256xf32>
    %159 = arith.mulf %146, %158 : vector<16x256xf32>
    %160 = arith.truncf %159 : vector<16x256xf32> to vector<16x256xbf16>
    %c0_54 = arith.constant 0 : index
    %c0_55 = arith.constant 0 : index
    %161 = vector.load %arg11[%c0_54, %c0_55] : memref<256x128xbf16, #tpu.memory_space<vmem>>, vector<256x128xbf16>
    %cst_56 = arith.constant dense<0.000000e+00> : vector<16x128xf32>
    %162 = tpu.matmul %160, %161, %cst_56 {dimension_numbers = #tpu.dot_dimension_numbers<[1], [0], [0], [1], [0, 0, 1, 1], [], []>} : vector<16x256xbf16>, vector<256x128xbf16>, vector<16x128xf32> -> vector<16x128xf32>
    %c0_57 = arith.constant 0 : index
    %c0_58 = arith.constant 0 : index
    %163 = vector.load %arg12[%c0_57, %c0_58] : memref<1x128xf32, #tpu.memory_space<vmem>>, vector<1x128xf32>
    %164 = vector.broadcast %163 : vector<1x128xf32> to vector<16x128xf32>
    %165 = arith.addf %162, %164 : vector<16x128xf32>
    %166 = arith.addf %165, %140 : vector<16x128xf32>
    %c0_59 = arith.constant 0 : index
    %c0_60 = arith.constant 0 : index
    %167 = vector.load %arg13[%c0_59, %c0_60] : memref<1x128xf32, #tpu.memory_space<vmem>>, vector<1x128xf32>
    %c0_61 = arith.constant 0 : index
    %c0_62 = arith.constant 0 : index
    %168 = vector.load %arg14[%c0_61, %c0_62] : memref<1x128xf32, #tpu.memory_space<vmem>>, vector<1x128xf32>
    %cst_63 = arith.constant dense<0.000000e+00> : vector<16xf32>
    %169 = vector.multi_reduction <add>, %166, %cst_63 [1] : vector<16x128xf32> to vector<16xf32>
    %170 = vector.shape_cast %169 : vector<16xf32> to vector<16x1xf32>
    %cst_64 = arith.constant 1.280000e+02 : f32
    %171 = vector.broadcast %cst_64 : f32 to vector<16x1xf32>
    %172 = arith.divf %170, %171 : vector<16x1xf32>
    %173 = vector.broadcast %172 : vector<16x1xf32> to vector<16x128xf32>
    %174 = arith.subf %166, %173 : vector<16x128xf32>
    %175 = arith.mulf %174, %174 : vector<16x128xf32>
    %cst_65 = arith.constant dense<0.000000e+00> : vector<16xf32>
    %176 = vector.multi_reduction <add>, %175, %cst_65 [1] : vector<16x128xf32> to vector<16xf32>
    %177 = vector.shape_cast %176 : vector<16xf32> to vector<16x1xf32>
    %cst_66 = arith.constant 1.280000e+02 : f32
    %178 = vector.broadcast %cst_66 : f32 to vector<16x1xf32>
    %179 = arith.divf %177, %178 : vector<16x1xf32>
    %180 = vector.broadcast %172 : vector<16x1xf32> to vector<16x128xf32>
    %181 = arith.subf %166, %180 : vector<16x128xf32>
    %cst_67 = arith.constant 1.000000e-07 : f32
    %182 = vector.broadcast %cst_67 : f32 to vector<16x1xf32>
    %183 = arith.addf %179, %182 : vector<16x1xf32>
    %184 = math.rsqrt %183 : vector<16x1xf32>
    %185 = vector.broadcast %184 : vector<16x1xf32> to vector<16x128xf32>
    %186 = arith.mulf %181, %185 : vector<16x128xf32>
    %187 = vector.broadcast %167 : vector<1x128xf32> to vector<16x128xf32>
    %188 = arith.mulf %186, %187 : vector<16x128xf32>
    %189 = vector.broadcast %168 : vector<1x128xf32> to vector<16x128xf32>
    %190 = arith.addf %188, %189 : vector<16x128xf32>
    %c0_68 = arith.constant 0 : index
    %c0_69 = arith.constant 0 : index
    %c0_70 = arith.constant 0 : index
    %191 = vector.load %arg15[%c0_68, %c0_69, %c0_70] : memref<1x16x128xf32, #tpu.memory_space<vmem>>, vector<1x16x128xf32>
    %192 = vector.shape_cast %191 : vector<1x16x128xf32> to vector<16x128xf32>
    %193 = vector.shape_cast %190 : vector<16x128xf32> to vector<1x16x128xf32>
    tpu.vector_store %arg15[%c0_68, %c0_69, %c0_70], %193 {strides = array<i32>} : memref<1x16x128xf32, #tpu.memory_space<vmem>>, vector<1x16x128xf32>,
    return
  }
  func.func @transform_0(%arg0: i32) -> (i32, i32, i32) {
    %c0_i32 = arith.constant 0 : i32
    %c0_i32_0 = arith.constant 0 : i32
    %c0_i32_1 = arith.constant 0 : i32
    return %arg0, %c0_i32, %c0_i32_0 : i32, i32, i32
  }
  func.func @transform_1(%arg0: i32) -> (i32, i32, i32) {
    %c0_i32 = arith.constant 0 : i32
    %c0_i32_0 = arith.constant 0 : i32
    %c0_i32_1 = arith.constant 0 : i32
    return %arg0, %c0_i32, %c0_i32_0 : i32, i32, i32
  }
  func.func @transform_2(%arg0: i32) -> (i32, i32) {
    %c0_i32 = arith.constant 0 : i32
    %c0_i32_0 = arith.constant 0 : i32
    %c0_i32_1 = arith.constant 0 : i32
    return %c0_i32, %c0_i32_0 : i32, i32
  }
  func.func @transform_3(%arg0: i32) -> (i32, i32) {
    %c0_i32 = arith.constant 0 : i32
    %c0_i32_0 = arith.constant 0 : i32
    %c0_i32_1 = arith.constant 0 : i32
    return %c0_i32, %c0_i32_0 : i32, i32
  }
  func.func @transform_4(%arg0: i32) -> (i32, i32) {
    %c0_i32 = arith.constant 0 : i32
    %c0_i32_0 = arith.constant 0 : i32
    %c0_i32_1 = arith.constant 0 : i32
    return %c0_i32, %c0_i32_0 : i32, i32
  }
  func.func @transform_5(%arg0: i32) -> (i32, i32) {
    %c0_i32 = arith.constant 0 : i32
    %c0_i32_0 = arith.constant 0 : i32
    %c0_i32_1 = arith.constant 0 : i32
    return %c0_i32, %c0_i32_0 : i32, i32
  }
  func.func @transform_6(%arg0: i32) -> (i32, i32) {
    %c0_i32 = arith.constant 0 : i32
    %c0_i32_0 = arith.constant 0 : i32
    %c0_i32_1 = arith.constant 0 : i32
    return %c0_i32, %c0_i32_0 : i32, i32
  }
  func.func @transform_7(%arg0: i32) -> (i32, i32) {
    %c0_i32 = arith.constant 0 : i32
    %c0_i32_0 = arith.constant 0 : i32
    %c0_i32_1 = arith.constant 0 : i32
    return %c0_i32, %c0_i32_0 : i32, i32
  }
  func.func @transform_8(%arg0: i32) -> (i32, i32) {
    %c0_i32 = arith.constant 0 : i32
    %c0_i32_0 = arith.constant 0 : i32
    %c0_i32_1 = arith.constant 0 : i32
    return %c0_i32, %c0_i32_0 : i32, i32
  }
  func.func @transform_9(%arg0: i32) -> (i32, i32) {
    %c0_i32 = arith.constant 0 : i32
    %c0_i32_0 = arith.constant 0 : i32
    %c0_i32_1 = arith.constant 0 : i32
    return %c0_i32, %c0_i32_0 : i32, i32
  }
  func.func @transform_10(%arg0: i32) -> (i32, i32) {
    %c0_i32 = arith.constant 0 : i32
    %c0_i32_0 = arith.constant 0 : i32
    %c0_i32_1 = arith.constant 0 : i32
    return %c0_i32, %c0_i32_0 : i32, i32
  }
  func.func @transform_11(%arg0: i32) -> (i32, i32) {
    %c0_i32 = arith.constant 0 : i32
    %c0_i32_0 = arith.constant 0 : i32
    %c0_i32_1 = arith.constant 0 : i32
    return %c0_i32, %c0_i32_0 : i32, i32
  }
  func.func @transform_12(%arg0: i32) -> (i32, i32) {
    %c0_i32 = arith.constant 0 : i32
    %c0_i32_0 = arith.constant 0 : i32
    %c0_i32_1 = arith.constant 0 : i32
    return %c0_i32, %c0_i32_0 : i32, i32
  }
  func.func @transform_13(%arg0: i32) -> (i32, i32) {
    %c0_i32 = arith.constant 0 : i32
    %c0_i32_0 = arith.constant 0 : i32
    %c0_i32_1 = arith.constant 0 : i32
    return %c0_i32, %c0_i32_0 : i32, i32
  }
  func.func @transform_14(%arg0: i32) -> (i32, i32, i32) {
    %c0_i32 = arith.constant 0 : i32
    %c0_i32_0 = arith.constant 0 : i32
    %c0_i32_1 = arith.constant 0 : i32
    return %arg0, %c0_i32, %c0_i32_0 : i32, i32, i32
  }
}

</mosaic_0001>

<bundles_post_ra>
// kernel: deberta_classifier_forward.3
= control target key start
LH: loop header
LB: loop body
LE: loop exit
PB: predicated region body
PF: predicated region fallthrough
CT: control target
= control target key end

     0   :  { %9 = vsyncpa [#allocation3], 0  ;;  %s175_s15 = smov [#allocation2]   ;;  %s253_s0 = inlined_call_operand.vmem [shape: f32[32,128], index: 0, kind: input, shape index: {}]   ;;  %s254_s1 = inlined_call_operand.vmem [shape: f32[1,128], index: 1, kind: input, shape index: {}]   ;;  %s255_s2 = inlined_call_operand.hbm [shape: f32[1,128], index: 2, kind: input, shape index: {}]   ;;  %s256_s3 = inlined_call_operand.vmem [shape: f32[32,1], index: 3, kind: input, shape index: {}]   ;;  %s257_s4 = inlined_call_operand.vmem [shape: f32[32,128], index: 4, kind: output, shape index: {}]  }
   0x1   :  { %s20_s16 = sshll.u32 %s175_s15, 4  ;;  %s151_s19 = scalar_lea.hbm %s255_s2, 16  ;;  %s21_s16 = int_to_ptr.vmem [resolvable:$true] %s20_s16 }
   0x2   :  { %p152_p0 = scmp.ne.s32.totalorder %s255_s2, %s151_s19  ;;  %p155_p1 = scmp.lt.u32.totalorder %s151_s19, %s255_s2 }
   0x4   :  { %p157_p2 = pnand %p155_p1, %p152_p0 }
   0x6   :  { %160 = shalt.err (!%p157_p2)
}
   0x7   :  { %s161_s24 = scalar_lea.vmem %s21_s16, 16  ;;  %s165_s25 = scalar_lea.vmem %s21_s16, 32 }
   0x8   :  { %p162_p3 = scmp.ne.s32.totalorder %s21_s16, %s161_s24  ;;  %p166_p4 = scmp.lt.s32.totalorder %s21_s16, %s21_s16 }
   0x9   :  { %p167_p5 = scmp.lt.s32.totalorder %s165_s25, %s161_s24 }
   0xb   :  { %p168_p6 = por %p167_p5, %p166_p4 }
   0xd   :  { %p169_p7 = pnand %p168_p6, %p162_p3 }
   0xf   :  { %172 = shalt.err (!%p169_p7)
}
  0x10   :  { %23 = dma.hbm_to_vmem [thread:$0]  %s255_s2, 16, %s21_s16, [#allocation3]  }
  0x11   :  { %173 = dma.done.wait [#allocation3], 16  }
  0x12   :  { %174 = vsyncadd [#allocation3], 4294967280  ;;  %v29_v0 = vld [vmem:[%s253_s0] sm:$0xff]  ;;  %v31_v1 = vld [vmem:[%s253_s0 + $0x10] sm:$0xff]  ;;  %v176_v4 = vmov 0  }
  0x13   :  { %33 = vadd.xlane.f32.xlu0 %v29_v0  ;;  %37 = vadd.xlane.f32.xlu1 %v31_v1  ;;  %v30_v2 = vld [vmem:[%s253_s0 + $0x8] sm:$0xff]  ;;  %v32_v3 = vld [vmem:[%s253_s0 + $0x18] sm:$0xff]  ;;  %v102_v18 = vld [vmem:[%s256_s3 + $0x10] sm:$0xff] }
  0x14   :  { %142 = vset.pattern.permute.xlu1 %v176_v4  ;;  %141 = vset.pattern.permute.xlu0 %v176_v4  ;;  %v101_v17 = vld [vmem:[%s256_s3 + $0x8] sm:$0xff]  ;;  %v100_v19 = vld [vmem:[%s256_s3] sm:$0xff]  ;;  %v103_v24 = vld [vmem:[%s256_s3 + $0x18] sm:$0xff] }
  0x15   :  { %v137_v35 = vld [vmem:[%s254_s1] ss:$0 sm:$0xff] }
  0x16   :  { %v138_v37 = vld [vmem:[#allocation2] ss:$0 sm:$0xff] }
  0x17   :  { %35 = vadd.xlane.f32.xlu0 %v30_v2  ;;  %39 = vadd.xlane.f32.xlu1 %v32_v3 }
  0xa0   :  { %v34_v5 = vpop.xlane.xlu0 %33  ;;  %v38_v6 = vpop.xlane.xlu1 %37 }
  0xa1   :  { %v42_v7 = vmul.f32 0.0078125, %v34_v5  ;;  %v44_v8 = vmul.f32 0.0078125, %v38_v6 }
  0xa3   :  { %v46_v9 = vsub.f32 %v29_v0, %v42_v7  ;;  %v48_v10 = vsub.f32 %v31_v1, %v44_v8 }
  0xa4   :  { %v36_v11 = vpop.xlane.xlu0 %35  ;;  %v40_v20 = vpop.xlane.xlu1 %39 }
  0xa5   :  { %v43_v12 = vmul.f32 0.0078125, %v36_v11  ;;  %v50_v13 = vmul.f32 %v46_v9, %v46_v9  ;;  %v52_v15 = vmul.f32 %v48_v10, %v48_v10  ;;  %v45_v21 = vmul.f32 0.0078125, %v40_v20 }
  0xa7   :  { %v47_v14 = vsub.f32 %v30_v2, %v43_v12  ;;  %54 = vadd.xlane.f32.xlu0 %v50_v13  ;;  %v49_v22 = vsub.f32 %v32_v3, %v45_v21 }
  0xa9   :  { %v51_v16 = vmul.f32 %v47_v14, %v47_v14  ;;  %v53_v23 = vmul.f32 %v49_v22, %v49_v22 }
  0xab   :  { %58 = vadd.xlane.f32.xlu0 %v52_v15  ;;  %56 = vadd.xlane.f32.xlu1 %v51_v16 }
  0xbc   :  { %111 = vperm.xlu1 %142, %v101_v17  }
  0xc0   :  { %116 = vperm.xlu1 %142, %v102_v18  }
  0xc1   :  { %106 = vperm.xlu0 %141, %v100_v19  }
  0xe4   :  { %60 = vadd.xlane.f32.xlu1 %v53_v23 }
  0xf5   :  { %121 = vperm.xlu1 %142, %v103_v24  }
 0x134   :  { %v55_v25 = vpop.xlane.xlu0 %54 }
 0x135   :  { %v62_v26 = vmul.f32 0.0078125, %v55_v25 }
 0x137   :  { %v66_v27 = vadd.f32 1e-07, %v62_v26 }
 0x138   :  { %v57_v28 = vpop.xlane.xlu1 %56  ;;  %v59_v29 = vpop.xlane.xlu0 %58 }
 0x139   :  { %143 = vrsqrt.f32 %v66_v27  ;;  %v63_v30 = vmul.f32 0.0078125, %v57_v28  ;;  %v64_v31 = vmul.f32 0.0078125, %v59_v29 }
 0x13b   :  { %v67_v32 = vadd.f32 1e-07, %v63_v30  ;;  %v68_v33 = vadd.f32 1e-07, %v64_v31 }
 0x13c   :  { %v112_v43 = vpop.permute.xlu1 %111 }
 0x13d   :  { %145 = vrsqrt.f32 %v67_v32 }
 0x13e   :  { %147 = vrsqrt.f32 %v68_v33 }
 0x140   :  { %v107_v40 = vpop.permute.xlu0 %106  ;;  %v117_v52 = vpop.permute.xlu1 %116 }
 0x143   :  { %v144_v34 = vpop.eup %143 }
 0x144   :  { %v74_v36 = vmul.f32 %v144_v34, %v46_v9 }
 0x146   :  { %v85_v38 = vmul.f32 %v137_v35, %v74_v36 }
 0x147   :  { %v146_v39 = vpop.eup %145 }
 0x148   :  { %v148_v41 = vpop.eup %147  ;;  %v75_v42 = vmul.f32 %v146_v39, %v47_v14  ;;  %v96_v44 = vadd.f32 %v138_v37, %v85_v38 }
 0x149   :  { %v76_v45 = vmul.f32 %v148_v41, %v48_v10 }
 0x14a   :  { %v86_v46 = vmul.f32 %v137_v35, %v75_v42  ;;  %v124_v47 = vmul.f32 %v107_v40, %v96_v44 }
 0x14b   :  { %v87_v48 = vmul.f32 %v137_v35, %v76_v45 }
 0x14c   :  { %v97_v49 = vadd.f32 %v138_v37, %v86_v46  ;;  %128 = vst [vmem:[%s257_s4] sm:$0xff] %v124_v47 }
 0x14d   :  { %v98_v50 = vadd.f32 %v138_v37, %v87_v48 }
 0x14e   :  { %v125_v51 = vmul.f32 %v112_v43, %v97_v49 }
 0x14f   :  { %v126_v53 = vmul.f32 %v117_v52, %v98_v50 }
 0x150   :  { %129 = vst [vmem:[%s257_s4 + $0x8] sm:$0xff] %v125_v51 }
 0x151   :  { %130 = vst [vmem:[%s257_s4 + $0x10] sm:$0xff] %v126_v53 }
 0x171   :  { %v61_v54 = vpop.xlane.xlu1 %60 }
 0x172   :  { %v65_v55 = vmul.f32 0.0078125, %v61_v54 }
 0x174   :  { %v69_v56 = vadd.f32 1e-07, %v65_v55 }
 0x175   :  { %v122_v61 = vpop.permute.xlu1 %121 }
 0x176   :  { %149 = vrsqrt.f32 %v69_v56 }
 0x180   :  { %v150_v57 = vpop.eup %149 }
 0x181   :  { %v77_v58 = vmul.f32 %v150_v57, %v49_v22 }
 0x183   :  { %v88_v59 = vmul.f32 %v137_v35, %v77_v58 }
 0x185   :  { %v99_v60 = vadd.f32 %v138_v37, %v88_v59 }
 0x187   :  { %v127_v62 = vmul.f32 %v122_v61, %v99_v60 }
 0x189   :  { %131 = vst [vmem:[%s257_s4 + $0x18] sm:$0xff] %v127_v62 }
 0x18a   :  { %136 = vsyncpa [#allocation3], 1 }

// kernel: deberta_classifier_forward.4
= control target key start
LH: loop header
LB: loop body
LE: loop exit
PB: predicated region body
PF: predicated region fallthrough
CT: control target
= control target key end

     0   :  { %19 = vsyncpa [#allocation3], 0  ;;  %s2478_s29 = smov 0   ;;  %s2877_s0 = inlined_call_operand.vmem [shape: f32[2,16,128], index: 0, kind: input, shape index: {}]   ;;  %s2878_s1 = inlined_call_operand.vmem [shape: f32[2,1,16], index: 1, kind: input, shape index: {}]   ;;  %s2879_s2 = inlined_call_operand.vmem [shape: bf16[128,384], index: 2, kind: input, shape index: {}]   ;;  %s2880_s3 = inlined_call_operand.vmem [shape: f32[1,384], index: 3, kind: input, shape index: {}]   ;;  %s2881_s4 = inlined_call_operand.hbm [shape: bf16[128,128], index: 4, kind: input, shape index: {}]   ;;  %s2882_s5 = inlined_call_operand.vmem [shape: f32[1,128], index: 5, kind: input, shape index: {}]   ;;  %s2883_s6 = inlined_call_operand.vmem [shape: f32[1,128], index: 6, kind: input, shape index: {}]   ;;  %s2884_s7 = inlined_call_operand.vmem [shape: f32[1,128], index: 7, kind: input, shape index: {}]   ;;  %s2885_s8 = inlined_call_operand.vmem [shape: bf16[128,256], index: 8, kind: input, shape index: {}]   ;;  %s2886_s9 = inlined_call_operand.vmem [shape: f32[1,256], index: 9, kind: input, shape index: {}]   ;;  %s2887_s10 = inlined_call_operand.vmem [shape: bf16[256,128], index: 10, kind: input, shape index: {}]   ;;  %s2888_s11 = inlined_call_operand.vmem [shape: f32[1,128], index: 11, kind: input, shape index: {}]   ;;  %s2889_s12 = inlined_call_operand.vmem [shape: f32[1,128], index: 12, kind: input, shape index: {}]   ;;  %s2890_s13 = inlined_call_operand.vmem [shape: f32[1,128], index: 13, kind: input, shape index: {}]   ;;  %s2891_s14 = inlined_call_operand.vmem [shape: f32[2,16,128], index: 14, kind: output, shape index: {}]  }
   0x1 LB: > { %s2484_s30 = sadd.s32 4294967295, %s2392_s29   ;;  %p1948_p0 = scmp.ge.s32.totalorder %s2392_s29, 1  ;;  %s2392_s29 = sphi %s2478_s29, %s25_s29  }
   0x2   : > { %p360_p1 = scmp.lt.s32.totalorder %s2392_s29, 3  ;;  %s2394_s15 = smov [#allocation2]  }
   0x3   : > { %s378_s16 = sshll.u32 %s2394_s15, 4  ;;  %p2892_p3 = scmp.eq.s32.totalorder %s2484_s30, 0  ;;  %s379_s16 = int_to_ptr.vmem [resolvable:$true] %s378_s16 }
   0x4   : > { %p2488_p2 = pnand %p1948_p0, %p360_p1  ;;  %s2354_s21 = scalar_lea.hbm %s2881_s4, 1024 }
   0x5   : > { %p2355_p6 = scmp.ne.s32.totalorder %s2881_s4, %s2354_s21  ;;  %p2361_p10 = scmp.lt.u32.totalorder %s2354_s21, %s2881_s4 }
   0x6   : > { %s2894_s17 = scalar_select %p2488_p2, 1, 0 }
   0x7   : > { %p2188_p4 = pneg %p2488_p2 }
   0x9   : > { %p2497_p5 = pnand %p2892_p3, %p2188_p4 }
   0xb   : > { %p2356_p7 = pneg %p2497_p5 }
   0xd   : > { %p2357_p8 = pnand %p2356_p7, %p2355_p6 }
   0xf   : > { %p2358_p9 = pneg %p2357_p8 }
  0x11   : > { %p2363_p11 = pnand %p2361_p10, %p2358_p9 }
  0x13   : > { %2366 = shalt.err (!%p2363_p11)
}
  0x14   : > { %s2367_s26 = scalar_lea.vmem %s379_s16, 1024  ;;  %p2375_p1 = scmp.lt.s32.totalorder %s379_s16, %s379_s16 }
  0x15   : > { %p2368_p12 = scmp.ne.s32.totalorder %s379_s16, %s2367_s26  ;;  %p2376_p4 = scmp.lt.s32.totalorder %s2367_s26, %s2367_s26 }
  0x17   : > { %p2370_p13 = pnand %p2368_p12, %p2356_p7  ;;  %p2377_p3 = por %p2376_p4, %p2375_p1 }
  0x19   : > { %p2371_p0 = pneg %p2370_p13 }
  0x1b   : > { %p2378_p2 = pnand %p2377_p3, %p2371_p0 }
  0x1d   : > { %2381 = shalt.err (!%p2378_p2)
}
  0x1e   : > { %s2395_s27 = smov 64   ;;  %s2396_s28 = smov 4  }
  0x1f   : > { %2191 = dma.hbm_to_vmem [thread:$0]  (!%p2497_p5), %s2881_s4, 1024, %s379_s16, [#allocation3], %s2395_s27, %s2395_s27, %s2396_s28  }
  0x20   : > { %p2896_p6 = scmp.ne.s32.totalorder %s2894_s17, 0 }
  0x21   : > { %p2897_p8 = scmp.eq.s32.totalorder (!%p2896_p6), %s2484_s30, 0 }
  0x22   : > { %435 = sbr.rel (%p2896_p6) target bundleno = 3061 (0xbf5), region = 76 }
  0x29   : > { %2387 = dma.done.wait (%p2897_p8), [#allocation3], 1024   ;;  %p2898_p7 = pmov %p2897_p8 }
  0x2a   : > { %v2397_v0 = vmov 0   ;;  %v2398_v1 = vmov 0.0   ;;  %v2226_v2 = vld [vmem:[%s2879_s2 + $0x4] ss:$12 sps:$4 sm:$0xff]   ;;  %v2228_v3 = vld [vmem:[%s2879_s2] ss:$12 sps:$4 sm:$0xff]   ;;  %v538_v29 = vlaneseq }
  0x2b   : > { %2389 = vsyncadd (%p2898_p7), [#allocation3], 4294966272  ;;  %713 = vmatprep.mubr.bf16.mxu0 %v2397_v0  ;;  %2096 = vmatprep.subr.bf16.mxu1 %v2398_v1  ;;  %v2229_v4 = vld [vmem:[%s2879_s2 + $0x1c] ss:$12 sps:$4 sm:$0xff]   ;;  %v2231_v5 = vld [vmem:[%s2879_s2 + $0x18] ss:$12 sps:$4 sm:$0xff]  }
  0x2c   : > { %681 = vmatprep.subr.bf16.mxu0 %v2226_v2  ;;  %v2232_v6 = vld [vmem:[%s2879_s2 + $0x34] ss:$12 sps:$4 sm:$0xff]   ;;  %v2234_v7 = vld [vmem:[%s2879_s2 + $0x30] ss:$12 sps:$4 sm:$0xff]   ;;  %v2235_v8 = vld [vmem:[%s2879_s2 + $0x4c] ss:$12 sps:$4 sm:$0xff]  }
  0x2d   : > { %682 = vmatpush1.bf16.msra.mxu0 %v2228_v3  ;;  %p484_p2 = scmp.lt.s32.totalorder %s2484_s30, 1  ;;  %v2237_v9 = vld [vmem:[%s2879_s2 + $0x48] ss:$12 sps:$4 sm:$0xff]   ;;  %v2238_v10 = vld [vmem:[%s2879_s2 + $0x64] ss:$12 sps:$4 sm:$0xff]   ;;  %vm2399_vm0 = vmmov 0  }
  0x2e   : > { %683 = vmatprep.subr.bf16.mxu0 %v2229_v4  ;;  %v2250_v11 = vld [vmem:[%s2879_s2 + $0x8] ss:$12 sps:$4 sm:$0xff]   ;;  %v2251_v12 = vld [vmem:[%s2879_s2 + $0x20] ss:$12 sps:$4 sm:$0xff]   ;;  %v2252_v15 = vld [vmem:[%s2879_s2 + $0x38] ss:$12 sps:$4 sm:$0xff]   ;;  %2112 = vmatprep.mubr.msk.bf16.mxu1 %vm2399_vm0, %v2398_v1 }
  0x2f   : > { %s2900_s30 = smov (!%p484_p2, %s2484_s30), 1  ;;  %2097 = vmatpush3.bf16.msra.mxu1 %v2250_v11  ;;  %v2240_v13 = vld [vmem:[%s2879_s2 + $0x60] ss:$12 sps:$4 sm:$0xff]   ;;  %v2241_v14 = vld [vmem:[%s2879_s2 + $0x7c] ss:$12 sps:$4 sm:$0xff]   ;;  %v2628_v30 = vshrl.u32 %v538_v29, 7 }
  0x30   : > { %2098 = vmatprep.subr.bf16.mxu1 %v2398_v1  ;;  %s2038_s15 = sshll.u32 %s2900_s30, 4  ;;  %v2243_v16 = vld [vmem:[%s2879_s2 + $0x78] ss:$12 sps:$4 sm:$0xff]   ;;  %v2244_v17 = vld [vmem:[%s2879_s2 + $0x94] ss:$12 sps:$4 sm:$0xff]   ;;  %vm768_vm1 = vcmask 261120   ;;  %s491_s16 = scalar_lea.vmem %s2878_s1, %s2900_s30 }
  0x31   : > { %684 = vmatpush1.bf16.msra.mxu0 %v2231_v5  ;;  %v2253_v18 = vld [vmem:[%s2879_s2 + $0x50] ss:$12 sps:$4 sm:$0xff]   ;;  %v2247_v20 = vld [vmem:[%s2879_s2 + $0xac] ss:$12 sps:$4 sm:$0xff]   ;;  %s488_s18 = scalar_lea.vmem %s2877_s0, %s2038_s15  ;;  %v2254_v21 = vld [vmem:[%s2879_s2 + $0x68] ss:$12 sps:$4 sm:$0xff]   ;;  %s496_s25 = scalar_lea.vmem %s2891_s14, %s2038_s15 }
  0x32   : > { %685 = vmatprep.subr.bf16.mxu0 %v2232_v6  ;;  %v2246_v19 = vld [vmem:[%s2879_s2 + $0x90] ss:$12 sps:$4 sm:$0xff]   ;;  %v2249_v22 = vld [vmem:[%s2879_s2 + $0xa8] ss:$12 sps:$4 sm:$0xff]   ;;  %v2601_v23 = vld [vmem:[%s488_s18] sm:$0xff]  ;;  %v2631_v31 = vsub.s32 0, %v2628_v30 }
  0x33   : > { %2099 = vmatpush3.bf16.msra.mxu1 %v2251_v12  ;;  %v2603_v24 = vld [vmem:[%s488_s18 + $0x8] sm:$0xff]  ;;  %v2256_v27 = vld [vmem:[%s2879_s2 + $0x98] ss:$12 sps:$4 sm:$0xff]   ;;  %v2257_v28 = vld [vmem:[%s2879_s2 + $0xb0] ss:$12 sps:$4 sm:$0xff]   ;;  %v544_v33 = vsub.s32 1, %v2628_v30 }
  0x34   : > { %2100 = vmatprep.subr.bf16.mxu1 %v2398_v1  ;;  %v2255_v25 = vld [vmem:[%s2879_s2 + $0x80] ss:$12 sps:$4 sm:$0xff]   ;;  %v503_v26 = vpack.c.bf16 %v2603_v24, %v2601_v23  ;;  %v548_v47 = vsub.s32 2, %v2628_v30  ;;  %vm826_vm2 = vcmask 130048   ;;  %s2400_s17 = smov 96   ;;  %s2401_s21 = smov 32  }
  0x35   : > { %686 = vmatpush1.bf16.msra.mxu0 %v2234_v7  ;;  %v536_v32 = vld [vmem:[%s2880_s3] sm:$0x7]  ;;  %s2402_s22 = smov 64   ;;  %vm1298_vm3 = vcmask 523264   ;;  %vm1301_vm4 = vcmask 785408  }
  0x36   : > { %687 = vmatprep.subr.bf16.mxu0 %v2235_v8  ;;  %v541_v34 = vrot.slane %v536_v32, %v2631_v31  ;;  %v545_v36 = vrot.slane %v536_v32, %v544_v33  ;;  %v549_v48 = vrot.slane %v536_v32, %v548_v47  ;;  %v500_v56 = vld [vmem:[%s491_s16] sm:$0x1] }
  0x37   : > { %2101 = vmatpush3.bf16.msra.mxu1 %v2252_v15  ;;  %v1957_v57 = vadd.f32 -1.0, %v500_v56 }
  0x38   : > { %2102 = vmatprep.subr.bf16.mxu1 %v2398_v1 }
  0x39   : > { %688 = vmatpush1.bf16.msra.mxu0 %v2237_v9  ;;  %v502_v58 = vmul.f32 1e+09, %v1957_v57 }
  0x3a   : > { %689 = vmatprep.subr.bf16.mxu0 %v2238_v10 }
  0x3b   : > { %2103 = vmatpush3.bf16.msra.mxu1 %v2253_v18  ;;  %v2655_v59 = vrot.slane %v502_v58, %v2631_v31 }
  0x3c   : > { %2104 = vmatprep.subr.bf16.mxu1 %v2398_v1 }
  0x3d   : > { %690 = vmatpush1.bf16.msra.mxu0 %v2240_v13 }
  0x3e   : > { %691 = vmatprep.subr.bf16.mxu0 %v2241_v14 }
  0x3f   : > { %2105 = vmatpush3.bf16.msra.mxu1 %v2254_v21 }
  0x40   : > { %2106 = vmatprep.subr.bf16.mxu1 %v2398_v1 }
  0x41   : > { %692 = vmatpush1.bf16.msra.mxu0 %v2243_v16 }
  0x42   : > { %693 = vmatprep.subr.bf16.mxu0 %v2244_v17 }
  0x43   : > { %2107 = vmatpush3.bf16.msra.mxu1 %v2255_v25 }
  0x44   : > { %2108 = vmatprep.subr.bf16.mxu1 %v2398_v1 }
  0x45   : > { %694 = vmatpush1.bf16.msra.mxu0 %v2246_v19 }
  0x46   : > { %695 = vmatprep.subr.bf16.mxu0 %v2247_v20 }
  0x47   : > { %2109 = vmatpush3.bf16.msra.mxu1 %v2256_v27 }
  0x48   : > { %2110 = vmatprep.subr.bf16.mxu1 %v2398_v1 }
  0x49   : > { %696 = vmatpush1.bf16.msra.mxu0 %v2249_v22 }
  0x4a   : > { %2140 = vmatprep.subr.bf16.mxu0 %v2398_v1 }
  0x4b   : > { %2111 = vmatpush3.bf16.msra.mxu1 %v2257_v28 }
  0x4c   : > { %714 = vmatmul.mubr.bf16.vlgmr.msra.gmra.mrb[0].mxu0 %v503_v26  ;;  %2116 = vmatprep.subr.bf16.mxu1 %v2398_v1 }
  0x4d   : > { %2142 = vmatprep.mubr.msk.bf16.mxu0 %vm2399_vm0, %v2398_v1 }
  0x4e   : > { %2113 = vmatmul.mubr.bf16.vlgmr.msra.gmra.mrb[0].mxu1 %v503_v26 }
  0x4f   : > { %2118 = vmatprep.mubr.msk.bf16.mxu1 %vm2399_vm0, %v2398_v1 }
 0x11f   : > { %v715_v35 = vpop.f32.mrb[0].mxu0 }
 0x120   : > { %v717_v37 = vpop.f32.mrb[1].mxu0  ;;  %v716_v39 = vadd.f32 %v715_v35, %v541_v34 }
 0x121   : > { %v719_v38 = vpop.f32.mrb[2].mxu0  ;;  %v718_v42 = vadd.f32 %v717_v37, %v545_v36  ;;  %v758_v49 = vpop.f32.mrb[0].mxu1 }
 0x122   : > { %v720_v40 = vadd.f32 %v719_v38, %v541_v34  ;;  %v721_v41 = vpop.f32.mrb[3].mxu0  ;;  %v759_v50 = vadd.f32 %v758_v49, %v549_v48  ;;  %v2114_v51 = vpop.f32.mrb[1].mxu1 }
 0x123   : > { %v722_v43 = vadd.f32 %v721_v41, %v545_v36  ;;  %v761_v52 = vpop.f32.mrb[2].mxu1 }
 0x124   : > { %v765_v44 = vpack.c.bf16 %v720_v40, %v716_v39  ;;  %v762_v53 = vadd.f32 %v761_v52, %v549_v48  ;;  %v2115_v54 = vpop.f32.mrb[3].mxu1 }
 0x125   : > { %v766_v45 = vpack.c.bf16 %v722_v43, %v718_v42 }
 0x126   : > { %v2646_v55 = vpack.c.bf16 %v762_v53, %v759_v50 }
 0x127   : > { %v773_v46 = vsel %vm768_vm1, %v766_v45, 0 }
 0x128   : > { %2117 = vmatpush3.bf16.xpose.msra.mxu1 %v773_v46 }
 0x129   : > { %2122 = vmatprep.subr.bf16.mxu1 %v2398_v1 }
 0x12f   : > { %2119 = vmatmul.mubr.msk.bf16.vlgmr.msra.gmra.mrb[4].mxu1 %vm768_vm1, %v765_v44 }
 0x130   : > { %2124 = vmatprep.mubr.msk.bf16.mxu1 %vm2399_vm0, %v2398_v1  ;;  %2123 = vmatpush3.bf16.msra.mxu1 %v2646_v55 }
 0x131   : > { %2128 = vmatprep.subr.bf16.mxu1 %v2398_v1 }
 0x202   : > { %v809_v60 = vpop.f32.mrb[4].mxu1 }
 0x203   : > { %v816_v61 = vmul.f32 0.17677669, %v809_v60  ;;  %v2120_v62 = vpop.f32.mrb[5].mxu1 }
 0x204   : > { %v812_v63 = vpop.f32.mrb[6].mxu1 }
 0x205   : > { %v817_v2 = vmul.f32 0.17677669, %v812_v63  ;;  %v2121_v3 = vpop.f32.mrb[7].mxu1  ;;  %v824_v4 = vadd.f32 %v2655_v59, %v816_v61 }
 0x207   : > { %v827_v5 = vsel %vm826_vm2, %v824_v4, -inf  ;;  %v825_v6 = vadd.f32 %v2655_v59, %v817_v2 }
 0x208   : > { %828 = vmax.xlane.f32.xlu0 %v827_v5 }
 0x209   : > { %v830_v7 = vsel %vm826_vm2, %v825_v6, -inf }
 0x20c   : > { %831 = vmax.xlane.f32.xlu0 %v830_v7 }
 0x222   : > { %898 = vrot.lane.b32.xlu0 %v766_v45, %s2400_s17 }
 0x226   : > { %1149 = vrot.lane.b32.xlu0 %v766_v45, %s2401_s21 }
 0x295   : > { %v829_v8 = vpop.xlane.xlu0 %828 }
 0x296   : > { %v833_v9 = vsub.f32 %v824_v4, %v829_v8 }
 0x298   : > { %v835_v10 = vmul.f32 1.442695, %v833_v9 }
 0x299   : > { %v832_v11 = vpop.xlane.xlu0 %831 }
 0x29a   : > { %2306 = vpow2.f32 %v835_v10  ;;  %v834_v12 = vsub.f32 %v825_v6, %v832_v11 }
 0x29c   : > { %v837_v13 = vmul.f32 1.442695, %v834_v12 }
 0x29d   : > { %v899_v21 = vpop.permute.xlu0 %898 }
 0x29e   : > { %2308 = vpow2.f32 %v837_v13  ;;  %v904_v35 = vsel %vm768_vm1, %v899_v21, 0 }
 0x2a1   : > { %v1150_v32 = vpop.permute.xlu0 %1149 }
 0x2a2   : > { %v1155_v37 = vsel %vm768_vm1, %v1150_v32, 0 }
 0x2a4   : > { %v2307_v14 = vpop.eup %2306 }
 0x2a5   : > { %v839_v15 = vsel %vm826_vm2, %v2307_v14, 0.0 }
 0x2a6   : > { %840 = vadd.xlane.f32.xlu1 %v839_v15 }
 0x2a8   : > { %v2309_v16 = vpop.eup %2308 }
 0x2a9   : > { %v842_v17 = vsel %vm826_vm2, %v2309_v16, 0.0 }
 0x2aa   : > { %843 = vadd.xlane.f32.xlu1 %v842_v17 }
 0x2bb   : > { %895 = vrot.lane.b32.xlu1 %v765_v44, %s2400_s17 }
 0x2bf   : > { %1024 = vrot.lane.b32.xlu1 %v766_v45, %s2402_s22 }
 0x2c3   : > { %1022 = vrot.lane.b32.xlu1 %v765_v44, %s2402_s22 }
 0x2c7   : > { %1147 = vrot.lane.b32.xlu1 %v765_v44, %s2401_s21 }
 0x333   : > { %v841_v18 = vpop.xlane.xlu1 %840 }
 0x334   : > { %2310 = vrcp.f32 %v841_v18 }
 0x337   : > { %v844_v19 = vpop.xlane.xlu1 %843 }
 0x338   : > { %2312 = vrcp.f32 %v844_v19 }
 0x33b   : > { %v896_v20 = vpop.permute.xlu1 %895 }
 0x33e   : > { %v2311_v25 = vpop.eup %2310 }
 0x33f   : > { %v1025_v22 = vpop.permute.xlu1 %1024  ;;  %v847_v28 = vmul.f32 %v2311_v25, %v2307_v14 }
 0x340   : > { %v1030_v26 = vsel %vm768_vm1, %v1025_v22, 0 }
 0x341   : > { %2141 = vmatpush3.bf16.xpose.msra.mxu0 %v1030_v26 }
 0x342   : > { %v2313_v27 = vpop.eup %2312  ;;  %2152 = vmatprep.subr.bf16.mxu0 %v2398_v1 }
 0x343   : > { %v848_v29 = vmul.f32 %v2313_v27, %v2309_v16  ;;  %v1023_v36 = vpop.permute.xlu1 %1022 }
 0x345   : > { %v849_v34 = vpack.c.bf16 %v848_v29, %v847_v28 }
 0x347   : > { %2125 = vmatmul.mubr.msk.bf16.vlgmr.msra.gmra.mrb[8].mxu1 %vm826_vm2, %v849_v34  ;;  %v1148_v38 = vpop.permute.xlu1 %1147 }
 0x348   : > { %2129 = vmatpush3.bf16.xpose.msra.mxu1 %v904_v35  ;;  %2143 = vmatmul.mubr.msk.bf16.vlgmr.msra.gmra.mrb[4].mxu0 %vm768_vm1, %v1023_v36 }
 0x349   : > { %2153 = vmatpush3.bf16.xpose.msra.mxu0 %v1155_v37  ;;  %2130 = vmatprep.mubr.msk.bf16.mxu1 %vm2399_vm0, %v2398_v1 }
 0x34a   : > { %2154 = vmatprep.mubr.msk.bf16.mxu0 %vm2399_vm0, %v2398_v1  ;;  %2134 = vmatprep.subr.bf16.mxu1 %v2398_v1 }
 0x34b   : > { %2164 = vmatprep.subr.bf16.mxu0 %v2398_v1 }
 0x34f   : > { %2131 = vmatmul.mubr.msk.bf16.vlgmr.msra.gmra.mrb[12].mxu1 %vm768_vm1, %v896_v20 }
 0x350   : > { %2155 = vmatmul.mubr.msk.bf16.vlgmr.msra.gmra.mrb[8].mxu0 %vm768_vm1, %v1148_v38  ;;  %2136 = vmatprep.mubr.msk.bf16.mxu1 %vm2399_vm0, %v2398_v1 }
 0x351   : > { %2180 = vmatprep.mubr.msk.bf16.mxu0 %vm2399_vm0, %v2398_v1 }
 0x41a   : > { %v2687_v39 = vpop.f32.mrb[8].mxu1 }
 0x41b   : > { %v2126_v40 = vpop.f32.mrb[9].mxu1  ;;  %v1066_v41 = vpop.f32.mrb[4].mxu0 }
 0x41c   : > { %v2689_v42 = vpop.f32.mrb[10].mxu1  ;;  %v2144_v43 = vpop.f32.mrb[5].mxu0  ;;  %v1073_v48 = vmul.f32 0.17677669, %v1066_v41 }
 0x41d   : > { %v2127_v44 = vpop.f32.mrb[11].mxu1  ;;  %v1069_v45 = vpop.f32.mrb[6].mxu0 }
 0x41e   : > { %v2145_v46 = vpop.f32.mrb[7].mxu0  ;;  %v1074_v62 = vmul.f32 0.17677669, %v1069_v45  ;;  %v1075_v3 = vadd.f32 %v1073_v48, %v2655_v59 }
 0x420   : > { %v1077_v7 = vsel %vm826_vm2, %v1075_v3, -inf  ;;  %v1076_v8 = vadd.f32 %v1074_v62, %v2655_v59 }
 0x422   : > { %v940_v47 = vpop.f32.mrb[12].mxu1  ;;  %v1080_v10 = vsel %vm826_vm2, %v1076_v8, -inf }
 0x423   : > { %v947_v49 = vmul.f32 0.17677669, %v940_v47  ;;  %v2132_v50 = vpop.f32.mrb[13].mxu1  ;;  %v1191_v51 = vpop.f32.mrb[8].mxu0 }
 0x424   : > { %v943_v52 = vpop.f32.mrb[14].mxu1  ;;  %v2156_v53 = vpop.f32.mrb[9].mxu0  ;;  %v1198_v6 = vmul.f32 0.17677669, %v1191_v51 }
 0x425   : > { %v948_v54 = vmul.f32 0.17677669, %v943_v52  ;;  %v2133_v56 = vpop.f32.mrb[15].mxu1  ;;  %v1194_v57 = vpop.f32.mrb[10].mxu0  ;;  %v949_v58 = vadd.f32 %v947_v49, %v2655_v59 }
 0x426   : > { %v1199_v60 = vmul.f32 0.17677669, %v1194_v57  ;;  %v2157_v61 = vpop.f32.mrb[11].mxu0  ;;  %v1200_v11 = vadd.f32 %v1198_v6, %v2655_v59 }
 0x427   : > { %v951_v63 = vsel %vm826_vm2, %v949_v58, -inf  ;;  %v950_v2 = vadd.f32 %v948_v54, %v2655_v59 }
 0x428   : > { %952 = vmax.xlane.f32.xlu0 %v951_v63  ;;  %v1201_v5 = vadd.f32 %v1199_v60, %v2655_v59  ;;  %v1202_v12 = vsel %vm826_vm2, %v1200_v11, -inf }
 0x429   : > { %v954_v4 = vsel %vm826_vm2, %v950_v2, -inf }
 0x42a   : > { %955 = vmax.xlane.f32.xlu1 %v954_v4  ;;  %v1205_v9 = vsel %vm826_vm2, %v1201_v5, -inf }
 0x42c   : > { %1078 = vmax.xlane.f32.xlu0 %v1077_v7 }
 0x42e   : > { %1206 = vmax.xlane.f32.xlu1 %v1205_v9 }
 0x430   : > { %1081 = vmax.xlane.f32.xlu0 %v1080_v10 }
 0x434   : > { %1203 = vmax.xlane.f32.xlu0 %v1202_v12  ;;  %v2258_v12 = vld [vmem:[#allocation2] sm:$0xff]  }
 0x435   : > { %2165 = vmatpush3.bf16.msra.mxu0 %v2258_v12  ;;  %v2272_v12 = vld [vmem:[%s2885_s8 + $0x20] ss:$8 sps:$4 sm:$0xff]  }
 0x436   : > { %2166 = vmatprep.subr.bf16.mxu0 %v2398_v1 }
 0x4b5   : > { %v953_v13 = vpop.xlane.xlu0 %952 }
 0x4b6   : > { %v957_v22 = vsub.f32 %v949_v58, %v953_v13  ;;  %v2259_v13 = vld [vmem:[#allocation2 + $0x8] sm:$0xff]  }
 0x4b7   : > { %v956_v14 = vpop.xlane.xlu1 %955  ;;  %2167 = vmatpush3.bf16.msra.mxu0 %v2259_v13  ;;  %v2277_v13 = vld [vmem:[%s2885_s8 + $0x34] ss:$8 sps:$4 sm:$0xff]  }
 0x4b8   : > { %v958_v25 = vsub.f32 %v950_v2, %v956_v14  ;;  %v959_v29 = vmul.f32 1.442695, %v957_v22  ;;  %v2260_v14 = vld [vmem:[#allocation2 + $0x10] sm:$0xff]   ;;  %2168 = vmatprep.subr.bf16.mxu0 %v2398_v1 }
 0x4b9   : > { %v1079_v15 = vpop.xlane.xlu0 %1078  ;;  %v2264_v22 = vld [vmem:[#allocation2 + $0x30] sm:$0xff]  }
 0x4ba   : > { %v1083_v16 = vsub.f32 %v1075_v3, %v1079_v15  ;;  %v961_v32 = vmul.f32 1.442695, %v958_v25  ;;  %v2261_v15 = vld [vmem:[#allocation2 + $0x18] sm:$0xff]  }
 0x4bb   : > { %v1207_v17 = vpop.xlane.xlu1 %1206  ;;  %2169 = vmatpush3.bf16.msra.mxu0 %v2260_v14  ;;  %v2275_v14 = vld [vmem:[%s2885_s8 + $0x30] ss:$8 sps:$4 sm:$0xff]  }
 0x4bc   : > { %v1085_v18 = vmul.f32 1.442695, %v1083_v16  ;;  %v1209_v19 = vsub.f32 %v1201_v5, %v1207_v17  ;;  %2170 = vmatprep.subr.bf16.mxu0 %v2398_v1  ;;  %v2262_v16 = vld [vmem:[#allocation2 + $0x20] sm:$0xff]  }
 0x4bd   : > { %v1082_v20 = vpop.xlane.xlu0 %1081 }
 0x4be   : > { %2314 = vpow2.f32 %v1085_v18  ;;  %v1084_v21 = vsub.f32 %v1076_v8, %v1082_v20  ;;  %v1212_v26 = vmul.f32 1.442695, %v1209_v19  ;;  %v2263_v18 = vld [vmem:[#allocation2 + $0x28] sm:$0xff]  }
 0x4bf   : > { %2171 = vmatpush3.bf16.msra.mxu0 %v2261_v15  ;;  %v2280_v15 = vld [vmem:[%s2885_s8 + $0x44] ss:$8 sps:$4 sm:$0xff]  }
 0x4c0   : > { %v1087_v27 = vmul.f32 1.442695, %v1084_v21  ;;  %2172 = vmatprep.subr.bf16.mxu0 %v2398_v1 }
 0x4c1   : > { %v1204_v28 = vpop.xlane.xlu0 %1203 }
 0x4c2   : > { %2316 = vpow2.f32 %v1087_v27  ;;  %v1208_v59 = vsub.f32 %v1200_v11, %v1204_v28  ;;  %v2265_v27 = vld [vmem:[#allocation2 + $0x38] sm:$0xff]  }
 0x4c3   : > { %2318 = vpow2.f32 %v1212_v26  ;;  %2173 = vmatpush3.bf16.msra.mxu0 %v2262_v16  ;;  %v2278_v16 = vld [vmem:[%s2885_s8 + $0x40] ss:$8 sps:$4 sm:$0xff]  }
 0x4c4   : > { %v1210_v34 = vmul.f32 1.442695, %v1208_v59  ;;  %2174 = vmatprep.subr.bf16.mxu0 %v2398_v1 }
 0x4c6   : > { %2320 = vpow2.f32 %v1210_v34 }
 0x4c7   : > { %2322 = vpow2.f32 %v959_v29  ;;  %2175 = vmatpush3.bf16.msra.mxu0 %v2263_v18  ;;  %v2286_v18 = vld [vmem:[%s2885_s8 + $0x64] ss:$8 sps:$4 sm:$0xff]  }
 0x4c8   : > { %v2315_v35 = vpop.eup %2314  ;;  %2324 = vpow2.f32 %v961_v32  ;;  %2176 = vmatprep.subr.bf16.mxu0 %v2398_v1 }
 0x4c9   : > { %v1089_v36 = vsel %vm826_vm2, %v2315_v35, 0.0 }
 0x4ca   : > { %1090 = vadd.xlane.f32.xlu0 %v1089_v36 }
 0x4cb   : > { %2177 = vmatpush3.bf16.msra.mxu0 %v2264_v22 }
 0x4cc   : > { %v2317_v37 = vpop.eup %2316  ;;  %2178 = vmatprep.subr.bf16.mxu0 %v2398_v1 }
 0x4cd   : > { %v1092_v38 = vsel %vm826_vm2, %v2317_v37, 0.0  ;;  %v2319_v40 = vpop.eup %2318 }
 0x4ce   : > { %1093 = vadd.xlane.f32.xlu1 %v1092_v38  ;;  %v1217_v45 = vsel %vm826_vm2, %v2319_v40, 0.0 }
 0x4cf   : > { %2179 = vmatpush3.bf16.msra.mxu0 %v2265_v27 }
 0x4d0   : > { %v2321_v41 = vpop.eup %2320 }
 0x4d1   : > { %v2323_v43 = vpop.eup %2322  ;;  %v1214_v44 = vsel %vm826_vm2, %v2321_v41, 0.0 }
 0x4d2   : > { %v2325_v46 = vpop.eup %2324  ;;  %1215 = vadd.xlane.f32.xlu0 %v1214_v44  ;;  %1218 = vadd.xlane.f32.xlu1 %v1217_v45  ;;  %v963_v47 = vsel %vm826_vm2, %v2323_v43, 0.0 }
 0x4d3   : > { %v966_v48 = vsel %vm826_vm2, %v2325_v46, 0.0 }
 0x4d6   : > { %964 = vadd.xlane.f32.xlu0 %v963_v47  ;;  %967 = vadd.xlane.f32.xlu1 %v966_v48 }
 0x4e7   : > { %1100 = vrot.lane.b32.xlu1 %v2646_v55, %s2402_s22 }
 0x4eb   : > { %1225 = vrot.lane.b32.xlu1 %v2646_v55, %s2401_s21 }
 0x4ec   : > { %975 = vrot.lane.b32.xlu0 %v2646_v55, %s2400_s17 }
 0x557   : > { %v1091_v49 = vpop.xlane.xlu0 %1090 }
 0x55b   : > { %v1094_v50 = vpop.xlane.xlu1 %1093 }
 0x55f   : > { %v1216_v51 = vpop.xlane.xlu0 %1215  ;;  %v1219_v52 = vpop.xlane.xlu1 %1218 }
 0x563   : > { %v965_v53 = vpop.xlane.xlu0 %964  ;;  %v968_v54 = vpop.xlane.xlu1 %967 }
 0x564   : > { %2326 = vrcp.f32 %v965_v53 }
 0x565   : > { %2328 = vrcp.f32 %v968_v54 }
 0x566   : > { %2330 = vrcp.f32 %v1094_v50 }
 0x567   : > { %v976_v56 = vpop.permute.xlu0 %975  ;;  %2332 = vrcp.f32 %v1091_v49  ;;  %v1101_v63 = vpop.permute.xlu1 %1100 }
 0x568   : > { %2135 = vmatpush3.bf16.msra.mxu1 %v976_v56  ;;  %2334 = vrcp.f32 %v1216_v51  ;;  %v1990_v56 = vld [vmem:[%s2882_s5] ss:$0 sm:$0xff] }
 0x569   : > { %2146 = vmatprep.subr.bf16.mxu1 %v2398_v1  ;;  %2336 = vrcp.f32 %v1219_v52 }
 0x56b   : > { %v1226_v8 = vpop.permute.xlu1 %1225 }
 0x56e   : > { %v2327_v57 = vpop.eup %2326 }
 0x56f   : > { %v2329_v58 = vpop.eup %2328  ;;  %v971_v60 = vmul.f32 %v2327_v57, %v2323_v43 }
 0x570   : > { %v972_v61 = vmul.f32 %v2329_v58, %v2325_v46  ;;  %v2331_v62 = vpop.eup %2330 }
 0x571   : > { %v2333_v2 = vpop.eup %2332  ;;  %v1098_v3 = vmul.f32 %v2331_v62, %v2317_v37 }
 0x572   : > { %v973_v55 = vpack.c.bf16 %v972_v61, %v971_v60  ;;  %v1097_v4 = vmul.f32 %v2333_v2, %v2315_v35  ;;  %v2335_v5 = vpop.eup %2334  ;;  %v2268_v2 = vld [vmem:[%s2885_s8 + $0x4] ss:$8 sps:$4 sm:$0xff]  }
 0x573   : > { %v2337_v7 = vpop.eup %2336  ;;  %v1222_v9 = vmul.f32 %v2335_v5, %v2321_v41 }
 0x574   : > { %2137 = vmatmul.mubr.msk.bf16.vlgmr.msra.gmra.mrb[16].mxu1 %vm826_vm2, %v973_v55  ;;  %v1099_v6 = vpack.c.bf16 %v1098_v3, %v1097_v4  ;;  %v1223_v10 = vmul.f32 %v2337_v7, %v2319_v40  ;;  %v2271_v3 = vld [vmem:[%s2885_s8 + $0x14] ss:$8 sps:$4 sm:$0xff]  }
 0x575   : > { %2147 = vmatpush3.bf16.msra.mxu1 %v1101_v63  ;;  %2148 = vmatprep.mubr.msk.bf16.mxu1 %vm2399_vm0, %v2398_v1  ;;  %v2266_v63 = vld [vmem:[%s2885_s8] ss:$8 sps:$4 sm:$0xff]  }
 0x576   : > { %2158 = vmatprep.subr.bf16.mxu1 %v2398_v1  ;;  %v1224_v11 = vpack.c.bf16 %v1223_v10, %v1222_v9 }
 0x57c   : > { %2149 = vmatmul.mubr.msk.bf16.vlgmr.msra.gmra.mrb[20].mxu1 %vm826_vm2, %v1099_v6 }
 0x57d   : > { %2159 = vmatpush3.bf16.msra.mxu1 %v1226_v8  ;;  %2160 = vmatprep.mubr.msk.bf16.mxu1 %vm2399_vm0, %v2398_v1 }
 0x57e   : > { %1569 = vmatprep.subr.bf16.mxu1 %v2268_v2 }
 0x584   : > { %2161 = vmatmul.mubr.msk.bf16.vlgmr.msra.gmra.mrb[24].mxu1 %vm826_vm2, %v1224_v11  ;;  %v2274_v11 = vld [vmem:[%s2885_s8 + $0x24] ss:$8 sps:$4 sm:$0xff]  }
 0x585   : > { %1601 = vmatprep.mubr.bf16.mxu1 %v2397_v0  ;;  %1570 = vmatpush1.bf16.msra.mxu1 %v2266_v63 }
 0x586   : > { %1571 = vmatprep.subr.bf16.mxu1 %v2271_v3 }
 0x647   : > { %v1015_v17 = vpop.f32.mrb[16].mxu1 }
 0x648   : > { %v2138_v0 = vpop.f32.mrb[17].mxu1 }
 0x649   : > { %v1018_v19 = vpop.f32.mrb[18].mxu1  ;;  %v2281_v0 = vld [vmem:[%s2885_s8 + $0x50] ss:$8 sps:$4 sm:$0xff]  }
 0x64a   : > { %v2211_v20 = vpack.i.bf16 %v1018_v19, %v1015_v17  ;;  %v2139_v21 = vpop.f32.mrb[19].mxu1  ;;  %v2283_v17 = vld [vmem:[%s2885_s8 + $0x54] ss:$8 sps:$4 sm:$0xff]   ;;  %v2284_v19 = vld [vmem:[%s2885_s8 + $0x60] ss:$8 sps:$4 sm:$0xff]  }
 0x64b   : > { %v2287_v21 = vld [vmem:[%s2885_s8 + $0x70] ss:$8 sps:$4 sm:$0xff]  }
 0x64c   : > { %2212 = vrot.lane.b32.xlu1 %v2211_v20, %s2401_s21  ;;  %v2289_v20 = vld [vmem:[%s2885_s8 + $0x74] ss:$8 sps:$4 sm:$0xff]  }
 0x64f   : > { %v1140_v25 = vpop.f32.mrb[20].mxu1 }
 0x650   : > { %v2150_v26 = vpop.f32.mrb[21].mxu1 }
 0x651   : > { %v1143_v28 = vpop.f32.mrb[22].mxu1 }
 0x652   : > { %v2216_v59 = vpack.i.bf16 %v1143_v28, %v1140_v25  ;;  %v2151_v29 = vpop.f32.mrb[23].mxu1 }
 0x654   : > { %2217 = vrot.lane.b32.xlu0 %v2216_v59, %s2402_s22 }
 0x657   : > { %v1265_v32 = vpop.f32.mrb[24].mxu1 }
 0x658   : > { %v2162_v34 = vpop.f32.mrb[25].mxu1 }
 0x659   : > { %v1268_v35 = vpop.f32.mrb[26].mxu1  ;;  %v1999_v34 = vld [vmem:[%s2883_s6] ss:$0 sm:$0xff] }
 0x65a   : > { %v2221_v36 = vpack.i.bf16 %v1268_v35, %v1265_v32  ;;  %v2163_v37 = vpop.f32.mrb[27].mxu1 }
 0x65c   : > { %2222 = vrot.lane.b32.xlu1 %v2221_v36, %s2400_s17 }
 0x6be   : > { %v2213_v38 = vpop.permute.xlu1 %2212 }
 0x6bf   : > { %v2215_v41 = vunpack.i.h.bf16 %v2213_v38  ;;  %v2214_v43 = vunpack.i.l.bf16 %v2213_v38  ;;  %v2000_v38 = vld [vmem:[%s2884_s7] ss:$0 sm:$0xff] }
 0x6c1   : > { %v1297_v46 = vsel %vm768_vm1, %v2689_v42, %v2215_v41  ;;  %v1296_v47 = vsel %vm768_vm1, %v2687_v39, %v2214_v43 }
 0x6c6   : > { %v2218_v40 = vpop.permute.xlu0 %2217 }
 0x6c7   : > { %v2220_v1 = vunpack.i.h.bf16 %v2218_v40  ;;  %v2219_v44 = vunpack.i.l.bf16 %v2218_v40 }
 0x6c9   : > { %v1300_v50 = vsel %vm1298_vm3, %v1297_v46, %v2220_v1  ;;  %v1299_v51 = vsel %vm1298_vm3, %v1296_v47, %v2219_v44  ;;  %v2290_v44 = vld [vmem:[%s2887_s10 + $0x40] sm:$0xff]   ;;  %v2292_v46 = vld [vmem:[%s2887_s10 + $0x48] sm:$0xff]  }
 0x6ca   : > { %2074 = vmatprep.subr.bf16.mxu0 %v2290_v44  ;;  %v2293_v47 = vld [vmem:[%s2887_s10 + $0x8] sm:$0xff]  }
 0x6ce   : > { %v2223_v45 = vpop.permute.xlu1 %2222 }
 0x6cf   : > { %v2225_v48 = vunpack.i.h.bf16 %v2223_v45  ;;  %v2224_v49 = vunpack.i.l.bf16 %v2223_v45  ;;  %v2291_v45 = vld [vmem:[%s2887_s10] sm:$0xff]  }
 0x6d1   : > { %v1303_v52 = vsel %vm1301_vm4, %v1300_v50, %v2225_v48  ;;  %v1302_v53 = vsel %vm1301_vm4, %v1299_v51, %v2224_v49  ;;  %v2294_v48 = vld [vmem:[%s2887_s10 + $0x50] sm:$0xff]   ;;  %v2296_v50 = vld [vmem:[%s2887_s10 + $0x58] sm:$0xff]  }
 0x6d2   : > { %v1304_v54 = vpack.c.bf16 %v1303_v52, %v1302_v53  ;;  %v2295_v49 = vld [vmem:[%s2887_s10 + $0x10] sm:$0xff]   ;;  %v2297_v51 = vld [vmem:[%s2887_s10 + $0x18] sm:$0xff]   ;;  %v2298_v52 = vld [vmem:[%s2887_s10 + $0x60] sm:$0xff]  }
 0x6d3   : > { %v2299_v53 = vld [vmem:[%s2887_s10 + $0x20] sm:$0xff]  }
 0x6d4   : > { %2181 = vmatmul.mubr.bf16.vlgmr.msra.gmra.mrb[12].mxu0 %v1304_v54  ;;  %v2300_v54 = vld [vmem:[%s2887_s10 + $0x68] sm:$0xff]  }
 0x6d5   : > { %2075 = vmatpush3.bf16.msra.mxu0 %v2291_v45 }
 0x6d6   : > { %2076 = vmatprep.subr.bf16.mxu0 %v2292_v46 }
 0x6d9   : > { %2077 = vmatpush3.bf16.msra.mxu0 %v2293_v47 }
 0x6da   : > { %2078 = vmatprep.subr.bf16.mxu0 %v2294_v48  ;;  %v2017_v48 = vld [vmem:[%s2888_s11] ss:$0 sm:$0xff] }
 0x6dd   : > { %2079 = vmatpush3.bf16.msra.mxu0 %v2295_v49 }
 0x6de   : > { %2080 = vmatprep.subr.bf16.mxu0 %v2296_v50 }
 0x6e1   : > { %2081 = vmatpush3.bf16.msra.mxu0 %v2297_v51 }
 0x6e2   : > { %2082 = vmatprep.subr.bf16.mxu0 %v2298_v52 }
 0x6e5   : > { %2083 = vmatpush3.bf16.msra.mxu0 %v2299_v53 }
 0x6e6   : > { %2084 = vmatprep.subr.bf16.mxu0 %v2300_v54 }
 0x7a7   : > { %v1410_v57 = vpop.f32.mrb[12].mxu0 }
 0x7a8   : > { %v1411_v58 = vadd.f32 %v1990_v56, %v1410_v57  ;;  %v2182_v60 = vpop.f32.mrb[13].mxu0  ;;  %v2302_v57 = vld [vmem:[%s2887_s10 + $0x70] sm:$0xff]  }
 0x7a9   : > { %v1413_v61 = vpop.f32.mrb[14].mxu0  ;;  %v2304_v60 = vld [vmem:[%s2887_s10 + $0x78] sm:$0xff]  }
 0x7aa   : > { %v1414_v42 = vadd.f32 %v1990_v56, %v1413_v61  ;;  %v2183_v55 = vpop.f32.mrb[15].mxu0  ;;  %v1417_v39 = vadd.f32 %v1411_v58, %v2601_v23  ;;  %v2269_v23 = vld [vmem:[%s2885_s8 + $0x10] ss:$8 sps:$4 sm:$0xff]   ;;  %v2301_v56 = vld [vmem:[%s2887_s10 + $0x28] sm:$0xff]  }
 0x7ab   : > { %1572 = vmatpush1.bf16.msra.mxu1 %v2269_v23  ;;  %2085 = vmatpush3.bf16.msra.mxu0 %v2301_v56  ;;  %v2303_v58 = vld [vmem:[%s2887_s10 + $0x30] sm:$0xff]   ;;  %v2305_v61 = vld [vmem:[%s2887_s10 + $0x38] sm:$0xff]  }
 0x7ac   : > { %1421 = vadd.xlane.f32.xlu0 %v1417_v39  ;;  %v1418_v62 = vadd.f32 %v1414_v42, %v2603_v24  ;;  %1573 = vmatprep.subr.bf16.mxu1 %v2274_v11  ;;  %v1477_v42 = vld [vmem:[%s2886_s9] sm:$0x3] }
 0x7ad   : > { %2086 = vmatprep.subr.bf16.mxu0 %v2302_v57  ;;  %v1482_v55 = vrot.slane %v1477_v42, %v2631_v31 }
 0x7ae   : > { %1423 = vadd.xlane.f32.xlu1 %v1418_v62 }
 0x7af   : > { %1574 = vmatpush1.bf16.msra.mxu1 %v2272_v12  ;;  %2087 = vmatpush3.bf16.msra.mxu0 %v2303_v58 }
 0x7b0   : > { %1575 = vmatprep.subr.bf16.mxu1 %v2277_v13  ;;  %2088 = vmatprep.subr.bf16.mxu0 %v2304_v60 }
 0x7b3   : > { %1576 = vmatpush1.bf16.msra.mxu1 %v2275_v14  ;;  %2089 = vmatpush3.bf16.msra.mxu0 %v2305_v61 }
 0x7b4   : > { %1577 = vmatprep.subr.bf16.mxu1 %v2280_v15 }
 0x7b7   : > { %1578 = vmatpush1.bf16.msra.mxu1 %v2278_v16 }
 0x7b8   : > { %1579 = vmatprep.subr.bf16.mxu1 %v2283_v17 }
 0x7bb   : > { %1580 = vmatpush1.bf16.msra.mxu1 %v2281_v0 }
 0x7bc   : > { %1581 = vmatprep.subr.bf16.mxu1 %v2286_v18 }
 0x7bf   : > { %1582 = vmatpush1.bf16.msra.mxu1 %v2284_v19 }
 0x7c0   : > { %1583 = vmatprep.subr.bf16.mxu1 %v2289_v20 }
 0x7c3   : > { %1584 = vmatpush1.bf16.msra.mxu1 %v2287_v21 }
 0x839   : > { %v1422_v24 = vpop.xlane.xlu0 %1421 }
 0x83a   : > { %v1426_v4 = vmul.f32 0.0078125, %v1422_v24 }
 0x83b   : > { %v1424_v5 = vpop.xlane.xlu1 %1423 }
 0x83c   : > { %v1428_v6 = vsub.f32 %v1417_v39, %v1426_v4  ;;  %v1427_v7 = vmul.f32 0.0078125, %v1424_v5  ;;  %v1486_v39 = vrot.slane %v1477_v42, %v544_v33 }
 0x83e   : > { %v1429_v8 = vsub.f32 %v1418_v62, %v1427_v7  ;;  %v1430_v9 = vmul.f32 %v1428_v6, %v1428_v6 }
 0x840   : > { %1432 = vadd.xlane.f32.xlu0 %v1430_v9  ;;  %v1431_v10 = vmul.f32 %v1429_v8, %v1429_v8 }
 0x844   : > { %1434 = vadd.xlane.f32.xlu0 %v1431_v10 }
 0x8cd   : > { %v1433_v22 = vpop.xlane.xlu0 %1432 }
 0x8ce   : > { %v1436_v25 = vmul.f32 0.0078125, %v1433_v22 }
 0x8d0   : > { %v1438_v26 = vadd.f32 1e-07, %v1436_v25 }
 0x8d1   : > { %v1435_v27 = vpop.xlane.xlu0 %1434 }
 0x8d2   : > { %2338 = vrsqrt.f32 %v1438_v26  ;;  %v1437_v28 = vmul.f32 0.0078125, %v1435_v27 }
 0x8d4   : > { %v1439_v59 = vadd.f32 1e-07, %v1437_v28 }
 0x8d6   : > { %2340 = vrsqrt.f32 %v1439_v59 }
 0x8dc   : > { %v2339_v29 = vpop.eup %2338 }
 0x8dd   : > { %v1442_v32 = vmul.f32 %v2339_v29, %v1428_v6 }
 0x8df   : > { %v1450_v37 = vmul.f32 %v1999_v34, %v1442_v32 }
 0x8e0   : > { %v2341_v35 = vpop.eup %2340 }
 0x8e1   : > { %v1443_v36 = vmul.f32 %v2341_v35, %v1429_v8  ;;  %v2798_v41 = vadd.f32 %v2000_v38, %v1450_v37 }
 0x8e3   : > { %v1451_v40 = vmul.f32 %v1999_v34, %v1443_v36 }
 0x8e5   : > { %v2800_v43 = vadd.f32 %v2000_v38, %v1451_v40 }
 0x8e7   : > { %v1460_v1 = vpack.c.bf16 %v2800_v43, %v2798_v41 }
 0x8e9   : > { %1602 = vmatmul.mubr.bf16.vlgmr.msra.gmra.mrb[28].mxu1 %v1460_v1 }
 0x9bc   : > { %v1603_v62 = vpop.f32.mrb[28].mxu1 }
 0x9bd   : > { %v1604_v63 = vadd.f32 %v1603_v62, %v1482_v55  ;;  %v1605_v2 = vpop.f32.mrb[29].mxu1 }
 0x9be   : > { %v1606_v3 = vadd.f32 %v1605_v2, %v1486_v39  ;;  %v1607_v23 = vpop.f32.mrb[30].mxu1 }
 0x9bf   : > { %v1612_v24 = vmul.f32 %v1604_v63, %v1604_v63  ;;  %v1608_v4 = vadd.f32 %v1607_v23, %v1482_v55  ;;  %v1609_v5 = vpop.f32.mrb[31].mxu1 }
 0x9c0   : > { %v1613_v6 = vmul.f32 %v1606_v3, %v1606_v3  ;;  %v1610_v7 = vadd.f32 %v1609_v5, %v1486_v39 }
 0x9c1   : > { %v1616_v8 = vmul.f32 %v1612_v24, %v1604_v63  ;;  %v1614_v9 = vmul.f32 %v1608_v4, %v1608_v4 }
 0x9c2   : > { %v1617_v10 = vmul.f32 %v1613_v6, %v1606_v3  ;;  %v1615_v11 = vmul.f32 %v1610_v7, %v1610_v7  ;;  %v2034_v6 = vld [vmem:[%s2889_s12] ss:$0 sm:$0xff] }
 0x9c3   : > { %v1620_v12 = vmul.f32 0.044715, %v1616_v8  ;;  %v1618_v13 = vmul.f32 %v1614_v9, %v1608_v4  ;;  %v2035_v9 = vld [vmem:[%s2890_s13] ss:$0 sm:$0xff] }
 0x9c4   : > { %v1621_v31 = vmul.f32 0.044715, %v1617_v10  ;;  %v1619_v14 = vmul.f32 %v1615_v11, %v1610_v7 }
 0x9c5   : > { %v1624_v30 = vadd.f32 %v1620_v12, %v1604_v63  ;;  %v1622_v33 = vmul.f32 0.044715, %v1618_v13 }
 0x9c6   : > { %v1625_v15 = vadd.f32 %v1621_v31, %v1606_v3  ;;  %v1623_v16 = vmul.f32 0.044715, %v1619_v14 }
 0x9c7   : > { %v1628_v17 = vmul.f32 0.7978846, %v1624_v30  ;;  %v1626_v0 = vadd.f32 %v1622_v33, %v1608_v4 }
 0x9c8   : > { %v1629_v18 = vmul.f32 0.7978846, %v1625_v15  ;;  %v1627_v19 = vadd.f32 %v1623_v16, %v1610_v7 }
 0x9c9   : > { %2342 = vtanh.f32 %v1628_v17  ;;  %v1630_v20 = vmul.f32 0.7978846, %v1626_v0 }
 0x9ca   : > { %2344 = vtanh.f32 %v1629_v18  ;;  %v1631_v21 = vmul.f32 0.7978846, %v1627_v19 }
 0x9cb   : > { %2346 = vtanh.f32 %v1630_v20 }
 0x9cc   : > { %2348 = vtanh.f32 %v1631_v21 }
 0x9d3   : > { %v2343_v22 = vpop.eup %2342 }
 0x9d4   : > { %v2345_v25 = vpop.eup %2344  ;;  %v1636_v26 = vadd.f32 1.0, %v2343_v22 }
 0x9d5   : > { %v2347_v27 = vpop.eup %2346  ;;  %v1637_v28 = vadd.f32 1.0, %v2345_v25 }
 0x9d6   : > { %v2349_v59 = vpop.eup %2348  ;;  %v1640_v29 = vmul.f32 0.5, %v1636_v26  ;;  %v1638_v32 = vadd.f32 1.0, %v2347_v27 }
 0x9d7   : > { %v1639_v34 = vadd.f32 1.0, %v2349_v59  ;;  %v1641_v35 = vmul.f32 0.5, %v1637_v28 }
 0x9d8   : > { %v1642_v36 = vmul.f32 0.5, %v1638_v32  ;;  %v1644_v38 = vmul.f32 %v1640_v29, %v1604_v63 }
 0x9d9   : > { %v1643_v37 = vmul.f32 0.5, %v1639_v34  ;;  %v1645_v1 = vmul.f32 %v1641_v35, %v1606_v3 }
 0x9da   : > { %v1646_v40 = vmul.f32 %v1642_v36, %v1608_v4 }
 0x9db   : > { %v1647_v44 = vmul.f32 %v1643_v37, %v1610_v7 }
 0x9dc   : > { %v1648_v45 = vpack.c.bf16 %v1646_v40, %v1644_v38 }
 0x9dd   : > { %v1649_v46 = vpack.c.bf16 %v1647_v44, %v1645_v1 }
 0x9df   : > { %1817 = vmatprep.mubr.bf16.mxu0 %v1649_v46 }
 0x9e0   : > { %1818 = vmatmul.mubr.bf16.vlgmr.msra.gmra.mrb[16].mxu0 %v1648_v45 }
 0xab3   : > { %v2090_v47 = vpop.f32.mrb[16].mxu0 }
 0xab4   : > { %v2091_v49 = vpop.f32.mrb[17].mxu0 }
 0xab5   : > { %v2092_v50 = vadd.f32 %v2091_v49, %v2090_v47  ;;  %v2093_v51 = vpop.f32.mrb[18].mxu0 }
 0xab6   : > { %v2094_v52 = vpop.f32.mrb[19].mxu0 }
 0xab7   : > { %v1820_v53 = vadd.f32 %v2092_v50, %v2017_v48  ;;  %v2095_v54 = vadd.f32 %v2094_v52, %v2093_v51 }
 0xab9   : > { %v1823_v56 = vadd.f32 %v2095_v54, %v2017_v48  ;;  %v1826_v57 = vadd.f32 %v1820_v53, %v2798_v41 }
 0xabb   : > { %1830 = vadd.xlane.f32.xlu0 %v1826_v57  ;;  %v1827_v58 = vadd.f32 %v1823_v56, %v2800_v43 }
 0xabd   : > { %1832 = vadd.xlane.f32.xlu1 %v1827_v58 }
 0xb48   : > { %v1831_v60 = vpop.xlane.xlu0 %1830 }
 0xb49   : > { %v1834_v61 = vmul.f32 0.0078125, %v1831_v60 }
 0xb4a   : > { %v1833_v42 = vpop.xlane.xlu1 %1832 }
 0xb4b   : > { %v1836_v55 = vsub.f32 %v1826_v57, %v1834_v61  ;;  %v1835_v39 = vmul.f32 0.0078125, %v1833_v42 }
 0xb4d   : > { %v1837_v62 = vsub.f32 %v1827_v58, %v1835_v39  ;;  %v1838_v63 = vmul.f32 %v1836_v55, %v1836_v55 }
 0xb4f   : > { %1840 = vadd.xlane.f32.xlu0 %v1838_v63  ;;  %v1839_v2 = vmul.f32 %v1837_v62, %v1837_v62 }
 0xb51   : > { %1842 = vadd.xlane.f32.xlu1 %v1839_v2 }
 0xbdc   : > { %v1841_v3 = vpop.xlane.xlu0 %1840 }
 0xbdd   : > { %v1844_v23 = vmul.f32 0.0078125, %v1841_v3 }
 0xbde   : > { %v1843_v24 = vpop.xlane.xlu1 %1842 }
 0xbdf   : > { %v1846_v4 = vadd.f32 1e-07, %v1844_v23  ;;  %v1845_v41 = vmul.f32 0.0078125, %v1843_v24 }
 0xbe1   : > { %2350 = vrsqrt.f32 %v1846_v4  ;;  %v1847_v5 = vadd.f32 1e-07, %v1845_v41 }
 0xbe3   : > { %2352 = vrsqrt.f32 %v1847_v5 }
 0xbeb   : > { %v2351_v43 = vpop.eup %2350 }
 0xbec   : > { %v1850_v7 = vmul.f32 %v2351_v43, %v1836_v55 }
 0xbed   : > { %v2353_v8 = vpop.eup %2352 }
 0xbee   : > { %v1858_v10 = vmul.f32 %v2034_v6, %v1850_v7  ;;  %v1851_v11 = vmul.f32 %v2353_v8, %v1837_v62 }
 0xbf0   : > { %v1866_v12 = vadd.f32 %v2035_v9, %v1858_v10  ;;  %v1859_v13 = vmul.f32 %v2034_v6, %v1851_v11 }
 0xbf2   : > { %1868 = vst [vmem:[%s496_s25] sm:$0xff] %v1866_v12  ;;  %v1867_v31 = vadd.f32 %v2035_v9, %v1859_v13 }
 0xbf4   : > { %1869 = vst [vmem:[%s496_s25 + $0x8] sm:$0xff] %v1867_v31 }
 0xbf5 PF: > { %s25_s29 = sadd.s32 1, %s2392_s29  }
 0xbf6   : > { %p22_p3 = scmp.ge.s32.totalorder %s25_s29, 4  }
 0xbf8   :  { %24 = sbr.rel (!%p22_p3) target bundleno = 1 (0x1), region = 114 }
 0xbff   :  { %1891 = vsyncpa [#allocation3], 1 }
 0xc00   :  { %1893 = vsyncpa [#allocation3 + $0x1], 1 }

// kernel: deberta_classifier_forward.5
= control target key start
LH: loop header
LB: loop body
LE: loop exit
PB: predicated region body
PF: predicated region fallthrough
CT: control target
= control target key end

     0   :  { %s2401_s29 = smov 0   ;;  %s2785_s0 = inlined_call_operand.vmem [shape: f32[2,16,128], index: 0, kind: input, shape index: {}]   ;;  %s2786_s1 = inlined_call_operand.vmem [shape: f32[2,1,16], index: 1, kind: input, shape index: {}]   ;;  %s2787_s2 = inlined_call_operand.vmem [shape: bf16[128,384], index: 2, kind: input, shape index: {}]   ;;  %s2788_s3 = inlined_call_operand.vmem [shape: f32[1,384], index: 3, kind: input, shape index: {}]   ;;  %s2789_s4 = inlined_call_operand.vmem [shape: bf16[128,128], index: 4, kind: input, shape index: {}]   ;;  %s2790_s5 = inlined_call_operand.vmem [shape: f32[1,128], index: 5, kind: input, shape index: {}]   ;;  %s2791_s6 = inlined_call_operand.vmem [shape: f32[1,128], index: 6, kind: input, shape index: {}]   ;;  %s2792_s7 = inlined_call_operand.vmem [shape: f32[1,128], index: 7, kind: input, shape index: {}]   ;;  %s2793_s8 = inlined_call_operand.vmem [shape: bf16[128,256], index: 8, kind: input, shape index: {}]   ;;  %s2794_s9 = inlined_call_operand.vmem [shape: f32[1,256], index: 9, kind: input, shape index: {}]   ;;  %s2795_s10 = inlined_call_operand.vmem [shape: bf16[256,128], index: 10, kind: input, shape index: {}]   ;;  %s2796_s11 = inlined_call_operand.vmem [shape: f32[1,128], index: 11, kind: input, shape index: {}]   ;;  %s2797_s12 = inlined_call_operand.vmem [shape: f32[1,128], index: 12, kind: input, shape index: {}]   ;;  %s2798_s13 = inlined_call_operand.vmem [shape: f32[1,128], index: 13, kind: input, shape index: {}]   ;;  %s2799_s14 = inlined_call_operand.vmem [shape: f32[2,16,128], index: 14, kind: output, shape index: {}]  }
   0x1 LB: > { %s1919_s30 = sadd.s32 4294967295, %s2318_s29   ;;  %p1923_p0 = scmp.ge.s32.totalorder %s2318_s29, 1  ;;  %s2318_s29 = sphi %s2401_s29, %s24_s29  }
   0x2   : > { %p420_p1 = scmp.lt.s32.totalorder %s2318_s29, 3 }
   0x4   : > { %p421_p2 = pnand %p1923_p0, %p420_p1 }
   0x5   : > { %v2184_v0 = vld [vmem:[%s2787_s2 + $0x4] ss:$12 sps:$4 sm:$0xff] (!%p421_p2)   ;;  %v2186_v1 = vld [vmem:[%s2787_s2] ss:$12 sps:$4 sm:$0xff] (!%p421_p2)   ;;  %v2320_v2 = vmov (!%p421_p2), 0   ;;  %v2321_v4 = vmov (!%p421_p2), 0.0   ;;  %v523_v29 = vlaneseq (!%p421_p2) }
   0x6   : > { %424 = sbr.rel (%p421_p2) target bundleno = 3023 (0xbcf), region = 76  ;;  %698 = vmatprep.mubr.bf16.mxu0 (!%p421_p2), %v2320_v2  ;;  %666 = vmatprep.subr.bf16.mxu0 (!%p421_p2), %v2184_v0  ;;  %v2187_v3 = vld [vmem:[%s2787_s2 + $0x1c] ss:$12 sps:$4 sm:$0xff] (!%p421_p2)   ;;  %v2189_v5 = vld [vmem:[%s2787_s2 + $0x18] ss:$12 sps:$4 sm:$0xff] (!%p421_p2)   ;;  %p469_p3 = scmp.lt.s32.totalorder (!%p421_p2), %s1919_s30, 1 }
   0x7   : > { %2067 = vmatprep.subr.bf16.mxu1 (!%p421_p2), %v2321_v4  ;;  %667 = vmatpush1.bf16.msra.mxu0 (!%p421_p2), %v2186_v1  ;;  %v2190_v6 = vld [vmem:[%s2787_s2 + $0x34] ss:$12 sps:$4 sm:$0xff] (!%p421_p2)   ;;  %v2192_v7 = vld [vmem:[%s2787_s2 + $0x30] ss:$12 sps:$4 sm:$0xff] (!%p421_p2)   ;;  %v2193_v8 = vld [vmem:[%s2787_s2 + $0x4c] ss:$12 sps:$4 sm:$0xff] (!%p421_p2)  }
   0x8   : > { %668 = vmatprep.subr.bf16.mxu0 (!%p421_p2), %v2187_v3  ;;  %v2195_v9 = vld [vmem:[%s2787_s2 + $0x48] ss:$12 sps:$4 sm:$0xff] (!%p421_p2)   ;;  %v2196_v10 = vld [vmem:[%s2787_s2 + $0x64] ss:$12 sps:$4 sm:$0xff] (!%p421_p2)   ;;  %v2209_v12 = vld [vmem:[%s2787_s2 + $0x20] ss:$12 sps:$4 sm:$0xff] (!%p421_p2)  }
   0x9   : > { %v2208_v11 = vld [vmem:[%s2787_s2 + $0x8] ss:$12 sps:$4 sm:$0xff] (!%p421_p2)   ;;  %v2198_v13 = vld [vmem:[%s2787_s2 + $0x60] ss:$12 sps:$4 sm:$0xff] (!%p421_p2)   ;;  %v2210_v15 = vld [vmem:[%s2787_s2 + $0x38] ss:$12 sps:$4 sm:$0xff] (!%p421_p2)  }
   0xa   : > { %2068 = vmatpush3.bf16.msra.mxu1 (!%p421_p2), %v2208_v11  ;;  %v2199_v14 = vld [vmem:[%s2787_s2 + $0x7c] ss:$12 sps:$4 sm:$0xff] (!%p421_p2)   ;;  %v2201_v16 = vld [vmem:[%s2787_s2 + $0x78] ss:$12 sps:$4 sm:$0xff] (!%p421_p2)   ;;  %v2202_v17 = vld [vmem:[%s2787_s2 + $0x94] ss:$12 sps:$4 sm:$0xff] (!%p421_p2)  }
   0xb   : > { %669 = vmatpush1.bf16.msra.mxu0 (!%p421_p2), %v2189_v5  ;;  %2069 = vmatprep.subr.bf16.mxu1 (!%p421_p2), %v2321_v4  ;;  %v2211_v18 = vld [vmem:[%s2787_s2 + $0x50] ss:$12 sps:$4 sm:$0xff] (!%p421_p2)   ;;  %v2205_v20 = vld [vmem:[%s2787_s2 + $0xac] ss:$12 sps:$4 sm:$0xff] (!%p421_p2)   ;;  %v2212_v21 = vld [vmem:[%s2787_s2 + $0x68] ss:$12 sps:$4 sm:$0xff] (!%p421_p2)  }
   0xc   : > { %670 = vmatprep.subr.bf16.mxu0 (!%p421_p2), %v2190_v6  ;;  %v2204_v19 = vld [vmem:[%s2787_s2 + $0x90] ss:$12 sps:$4 sm:$0xff] (!%p421_p2)   ;;  %v2207_v22 = vld [vmem:[%s2787_s2 + $0xa8] ss:$12 sps:$4 sm:$0xff] (!%p421_p2)   ;;  %v2213_v25 = vld [vmem:[%s2787_s2 + $0x80] ss:$12 sps:$4 sm:$0xff] (!%p421_p2)  }
   0xd   : > { %s2801_s30 = smov (!%p469_p3, %s1919_s30), 1  ;;  %v2214_v27 = vld [vmem:[%s2787_s2 + $0x98] ss:$12 sps:$4 sm:$0xff]   ;;  %v2215_v28 = vld [vmem:[%s2787_s2 + $0xb0] ss:$12 sps:$4 sm:$0xff]   ;;  %vm2322_vm0 = vmmov 0  }
   0xe   : > { %s2009_s27 = sshll.u32 %s2801_s30, 4  ;;  %2070 = vmatpush3.bf16.msra.mxu1 %v2209_v12  ;;  %2083 = vmatprep.mubr.msk.bf16.mxu1 %vm2322_vm0, %v2321_v4  ;;  %v2512_v30 = vshrl.u32 %v523_v29, 7  ;;  %v521_v32 = vld [vmem:[%s2788_s3] sm:$0x7]  ;;  %vm753_vm1 = vcmask 261120   ;;  %s476_s17 = scalar_lea.vmem %s2786_s1, %s2801_s30  ;;  %vm811_vm2 = vcmask 130048  }
   0xf   : > { %671 = vmatpush1.bf16.msra.mxu0 %v2192_v7  ;;  %2071 = vmatprep.subr.bf16.mxu1 %v2321_v4  ;;  %s473_s15 = scalar_lea.vmem %s2785_s0, %s2009_s27  ;;  %v485_v56 = vld [vmem:[%s476_s17] sm:$0x1]  ;;  %s2323_s18 = smov 96   ;;  %vm1283_vm3 = vcmask 523264   ;;  %vm1286_vm4 = vcmask 785408  }
  0x10   : > { %672 = vmatprep.subr.bf16.mxu0 %v2193_v8  ;;  %v2485_v23 = vld [vmem:[%s473_s15] sm:$0xff]  ;;  %v2487_v24 = vld [vmem:[%s473_s15 + $0x8] sm:$0xff]  ;;  %v2515_v31 = vsub.s32 0, %v2512_v30  ;;  %v529_v33 = vsub.s32 1, %v2512_v30  ;;  %v533_v47 = vsub.s32 2, %v2512_v30  ;;  %v1928_v57 = vadd.f32 -1.0, %v485_v56 }
  0x11   : > { %v488_v26 = vpack.c.bf16 %v2487_v24, %v2485_v23  ;;  %s2324_s19 = smov 32   ;;  %s2325_s20 = smov 64  }
  0x12   : > { %2072 = vmatpush3.bf16.msra.mxu1 %v2210_v15  ;;  %v526_v34 = vrot.slane %v521_v32, %v2515_v31  ;;  %v530_v36 = vrot.slane %v521_v32, %v529_v33  ;;  %v534_v48 = vrot.slane %v521_v32, %v533_v47  ;;  %v487_v58 = vmul.f32 1e+09, %v1928_v57 }
  0x13   : > { %673 = vmatpush1.bf16.msra.mxu0 %v2195_v9  ;;  %2073 = vmatprep.subr.bf16.mxu1 %v2321_v4 }
  0x14   : > { %674 = vmatprep.subr.bf16.mxu0 %v2196_v10  ;;  %v2539_v59 = vrot.slane %v487_v58, %v2515_v31 }
  0x16   : > { %2074 = vmatpush3.bf16.msra.mxu1 %v2211_v18 }
  0x17   : > { %675 = vmatpush1.bf16.msra.mxu0 %v2198_v13  ;;  %2075 = vmatprep.subr.bf16.mxu1 %v2321_v4 }
  0x18   : > { %676 = vmatprep.subr.bf16.mxu0 %v2199_v14 }
  0x1a   : > { %2076 = vmatpush3.bf16.msra.mxu1 %v2212_v21 }
  0x1b   : > { %677 = vmatpush1.bf16.msra.mxu0 %v2201_v16  ;;  %2077 = vmatprep.subr.bf16.mxu1 %v2321_v4 }
  0x1c   : > { %678 = vmatprep.subr.bf16.mxu0 %v2202_v17 }
  0x1e   : > { %2078 = vmatpush3.bf16.msra.mxu1 %v2213_v25 }
  0x1f   : > { %679 = vmatpush1.bf16.msra.mxu0 %v2204_v19  ;;  %2079 = vmatprep.subr.bf16.mxu1 %v2321_v4 }
  0x20   : > { %680 = vmatprep.subr.bf16.mxu0 %v2205_v20 }
  0x22   : > { %2080 = vmatpush3.bf16.msra.mxu1 %v2214_v27 }
  0x23   : > { %681 = vmatpush1.bf16.msra.mxu0 %v2207_v22  ;;  %2081 = vmatprep.subr.bf16.mxu1 %v2321_v4 }
  0x24   : > { %2111 = vmatprep.subr.bf16.mxu0 %v2321_v4 }
  0x26   : > { %699 = vmatmul.mubr.bf16.vlgmr.msra.gmra.mrb[0].mxu0 %v488_v26  ;;  %2082 = vmatpush3.bf16.msra.mxu1 %v2215_v28 }
  0x27   : > { %2087 = vmatprep.subr.bf16.mxu1 %v2321_v4  ;;  %2113 = vmatprep.mubr.msk.bf16.mxu0 %vm2322_vm0, %v2321_v4 }
  0x29   : > { %2084 = vmatmul.mubr.bf16.vlgmr.msra.gmra.mrb[0].mxu1 %v488_v26 }
  0x2a   : > { %2089 = vmatprep.mubr.msk.bf16.mxu1 %vm2322_vm0, %v2321_v4 }
  0xf9   : > { %v700_v35 = vpop.f32.mrb[0].mxu0 }
  0xfa   : > { %v702_v37 = vpop.f32.mrb[1].mxu0  ;;  %v701_v39 = vadd.f32 %v700_v35, %v526_v34 }
  0xfb   : > { %v704_v38 = vpop.f32.mrb[2].mxu0  ;;  %v703_v42 = vadd.f32 %v702_v37, %v530_v36 }
  0xfc   : > { %v705_v40 = vadd.f32 %v704_v38, %v526_v34  ;;  %v706_v41 = vpop.f32.mrb[3].mxu0  ;;  %v743_v49 = vpop.f32.mrb[0].mxu1 }
  0xfd   : > { %v707_v43 = vadd.f32 %v706_v41, %v530_v36  ;;  %v744_v50 = vadd.f32 %v743_v49, %v534_v48  ;;  %v2085_v51 = vpop.f32.mrb[1].mxu1 }
  0xfe   : > { %v750_v44 = vpack.c.bf16 %v705_v40, %v701_v39  ;;  %v746_v52 = vpop.f32.mrb[2].mxu1 }
  0xff   : > { %v751_v45 = vpack.c.bf16 %v707_v43, %v703_v42  ;;  %v747_v53 = vadd.f32 %v746_v52, %v534_v48  ;;  %v2086_v54 = vpop.f32.mrb[3].mxu1 }
 0x101   : > { %v758_v46 = vsel %vm753_vm1, %v751_v45, 0  ;;  %v2530_v55 = vpack.c.bf16 %v747_v53, %v744_v50 }
 0x102   : > { %2088 = vmatpush3.bf16.xpose.msra.mxu1 %v758_v46 }
 0x103   : > { %2093 = vmatprep.subr.bf16.mxu1 %v2321_v4 }
 0x109   : > { %2090 = vmatmul.mubr.msk.bf16.vlgmr.msra.gmra.mrb[4].mxu1 %vm753_vm1, %v750_v44 }
 0x10a   : > { %2095 = vmatprep.mubr.msk.bf16.mxu1 %vm2322_vm0, %v2321_v4  ;;  %2094 = vmatpush3.bf16.msra.mxu1 %v2530_v55 }
 0x10b   : > { %2099 = vmatprep.subr.bf16.mxu1 %v2321_v4 }
 0x1dc   : > { %v794_v60 = vpop.f32.mrb[4].mxu1 }
 0x1dd   : > { %v801_v61 = vmul.f32 0.17677669, %v794_v60  ;;  %v2091_v62 = vpop.f32.mrb[5].mxu1 }
 0x1de   : > { %v797_v63 = vpop.f32.mrb[6].mxu1 }
 0x1df   : > { %v802_v0 = vmul.f32 0.17677669, %v797_v63  ;;  %v2092_v1 = vpop.f32.mrb[7].mxu1  ;;  %v809_v3 = vadd.f32 %v2539_v59, %v801_v61 }
 0x1e1   : > { %v812_v5 = vsel %vm811_vm2, %v809_v3, -inf  ;;  %v810_v6 = vadd.f32 %v2539_v59, %v802_v0 }
 0x1e2   : > { %813 = vmax.xlane.f32.xlu0 %v812_v5 }
 0x1e3   : > { %v815_v7 = vsel %vm811_vm2, %v810_v6, -inf }
 0x1e6   : > { %816 = vmax.xlane.f32.xlu0 %v815_v7 }
 0x1fc   : > { %883 = vrot.lane.b32.xlu0 %v751_v45, %s2323_s18 }
 0x200   : > { %1134 = vrot.lane.b32.xlu0 %v751_v45, %s2324_s19 }
 0x26f   : > { %v814_v8 = vpop.xlane.xlu0 %813 }
 0x270   : > { %v818_v9 = vsub.f32 %v809_v3, %v814_v8 }
 0x272   : > { %v820_v10 = vmul.f32 1.442695, %v818_v9 }
 0x273   : > { %v817_v11 = vpop.xlane.xlu0 %816 }
 0x274   : > { %2264 = vpow2.f32 %v820_v10  ;;  %v819_v12 = vsub.f32 %v810_v6, %v817_v11 }
 0x276   : > { %v822_v13 = vmul.f32 1.442695, %v819_v12 }
 0x277   : > { %v884_v21 = vpop.permute.xlu0 %883 }
 0x278   : > { %2266 = vpow2.f32 %v822_v13  ;;  %v889_v35 = vsel %vm753_vm1, %v884_v21, 0 }
 0x27b   : > { %v1135_v32 = vpop.permute.xlu0 %1134 }
 0x27c   : > { %v1140_v37 = vsel %vm753_vm1, %v1135_v32, 0 }
 0x27e   : > { %v2265_v14 = vpop.eup %2264 }
 0x27f   : > { %v824_v15 = vsel %vm811_vm2, %v2265_v14, 0.0 }
 0x280   : > { %825 = vadd.xlane.f32.xlu1 %v824_v15 }
 0x282   : > { %v2267_v16 = vpop.eup %2266 }
 0x283   : > { %v827_v17 = vsel %vm811_vm2, %v2267_v16, 0.0 }
 0x284   : > { %828 = vadd.xlane.f32.xlu1 %v827_v17 }
 0x295   : > { %880 = vrot.lane.b32.xlu1 %v750_v44, %s2323_s18 }
 0x299   : > { %1009 = vrot.lane.b32.xlu1 %v751_v45, %s2325_s20 }
 0x29d   : > { %1007 = vrot.lane.b32.xlu1 %v750_v44, %s2325_s20 }
 0x2a1   : > { %1132 = vrot.lane.b32.xlu1 %v750_v44, %s2324_s19 }
 0x30d   : > { %v826_v18 = vpop.xlane.xlu1 %825 }
 0x30e   : > { %2268 = vrcp.f32 %v826_v18 }
 0x311   : > { %v829_v19 = vpop.xlane.xlu1 %828 }
 0x312   : > { %2270 = vrcp.f32 %v829_v19 }
 0x315   : > { %v881_v20 = vpop.permute.xlu1 %880 }
 0x318   : > { %v2269_v25 = vpop.eup %2268 }
 0x319   : > { %v1010_v22 = vpop.permute.xlu1 %1009  ;;  %v832_v28 = vmul.f32 %v2269_v25, %v2265_v14 }
 0x31a   : > { %v1015_v26 = vsel %vm753_vm1, %v1010_v22, 0 }
 0x31b   : > { %2112 = vmatpush3.bf16.xpose.msra.mxu0 %v1015_v26 }
 0x31c   : > { %v2271_v27 = vpop.eup %2270  ;;  %2123 = vmatprep.subr.bf16.mxu0 %v2321_v4 }
 0x31d   : > { %v833_v29 = vmul.f32 %v2271_v27, %v2267_v16  ;;  %v1008_v36 = vpop.permute.xlu1 %1007 }
 0x31f   : > { %v834_v34 = vpack.c.bf16 %v833_v29, %v832_v28 }
 0x321   : > { %2096 = vmatmul.mubr.msk.bf16.vlgmr.msra.gmra.mrb[8].mxu1 %vm811_vm2, %v834_v34  ;;  %v1133_v38 = vpop.permute.xlu1 %1132 }
 0x322   : > { %2100 = vmatpush3.bf16.xpose.msra.mxu1 %v889_v35  ;;  %2114 = vmatmul.mubr.msk.bf16.vlgmr.msra.gmra.mrb[4].mxu0 %vm753_vm1, %v1008_v36 }
 0x323   : > { %2124 = vmatpush3.bf16.xpose.msra.mxu0 %v1140_v37  ;;  %2101 = vmatprep.mubr.msk.bf16.mxu1 %vm2322_vm0, %v2321_v4 }
 0x324   : > { %2125 = vmatprep.mubr.msk.bf16.mxu0 %vm2322_vm0, %v2321_v4  ;;  %2105 = vmatprep.subr.bf16.mxu1 %v2321_v4 }
 0x325   : > { %2135 = vmatprep.subr.bf16.mxu0 %v2321_v4 }
 0x329   : > { %2102 = vmatmul.mubr.msk.bf16.vlgmr.msra.gmra.mrb[12].mxu1 %vm753_vm1, %v881_v20 }
 0x32a   : > { %2126 = vmatmul.mubr.msk.bf16.vlgmr.msra.gmra.mrb[8].mxu0 %vm753_vm1, %v1133_v38  ;;  %2107 = vmatprep.mubr.msk.bf16.mxu1 %vm2322_vm0, %v2321_v4 }
 0x32b   : > { %2151 = vmatprep.mubr.msk.bf16.mxu0 %vm2322_vm0, %v2321_v4 }
 0x3f4   : > { %v2571_v39 = vpop.f32.mrb[8].mxu1 }
 0x3f5   : > { %v2097_v40 = vpop.f32.mrb[9].mxu1  ;;  %v1051_v41 = vpop.f32.mrb[4].mxu0 }
 0x3f6   : > { %v2573_v42 = vpop.f32.mrb[10].mxu1  ;;  %v2115_v43 = vpop.f32.mrb[5].mxu0  ;;  %v1058_v48 = vmul.f32 0.17677669, %v1051_v41 }
 0x3f7   : > { %v2098_v44 = vpop.f32.mrb[11].mxu1  ;;  %v1054_v45 = vpop.f32.mrb[6].mxu0 }
 0x3f8   : > { %v2116_v46 = vpop.f32.mrb[7].mxu0  ;;  %v1059_v62 = vmul.f32 0.17677669, %v1054_v45  ;;  %v1060_v1 = vadd.f32 %v1058_v48, %v2539_v59 }
 0x3fa   : > { %v1062_v7 = vsel %vm811_vm2, %v1060_v1, -inf  ;;  %v1061_v8 = vadd.f32 %v1059_v62, %v2539_v59 }
 0x3fc   : > { %v925_v47 = vpop.f32.mrb[12].mxu1  ;;  %v1065_v10 = vsel %vm811_vm2, %v1061_v8, -inf }
 0x3fd   : > { %v932_v49 = vmul.f32 0.17677669, %v925_v47  ;;  %v2103_v50 = vpop.f32.mrb[13].mxu1  ;;  %v1176_v51 = vpop.f32.mrb[8].mxu0 }
 0x3fe   : > { %v928_v52 = vpop.f32.mrb[14].mxu1  ;;  %v2127_v53 = vpop.f32.mrb[9].mxu0  ;;  %v1183_v6 = vmul.f32 0.17677669, %v1176_v51 }
 0x3ff   : > { %v933_v54 = vmul.f32 0.17677669, %v928_v52  ;;  %v2104_v56 = vpop.f32.mrb[15].mxu1  ;;  %v1179_v57 = vpop.f32.mrb[10].mxu0  ;;  %v934_v58 = vadd.f32 %v932_v49, %v2539_v59 }
 0x400   : > { %v1184_v60 = vmul.f32 0.17677669, %v1179_v57  ;;  %v2128_v61 = vpop.f32.mrb[11].mxu0  ;;  %v1185_v11 = vadd.f32 %v1183_v6, %v2539_v59 }
 0x401   : > { %v936_v63 = vsel %vm811_vm2, %v934_v58, -inf  ;;  %v935_v0 = vadd.f32 %v933_v54, %v2539_v59 }
 0x402   : > { %937 = vmax.xlane.f32.xlu0 %v936_v63  ;;  %v1186_v5 = vadd.f32 %v1184_v60, %v2539_v59  ;;  %v1187_v12 = vsel %vm811_vm2, %v1185_v11, -inf }
 0x403   : > { %v939_v3 = vsel %vm811_vm2, %v935_v0, -inf }
 0x404   : > { %940 = vmax.xlane.f32.xlu1 %v939_v3  ;;  %v1190_v9 = vsel %vm811_vm2, %v1186_v5, -inf }
 0x406   : > { %1063 = vmax.xlane.f32.xlu0 %v1062_v7 }
 0x408   : > { %1191 = vmax.xlane.f32.xlu1 %v1190_v9 }
 0x40a   : > { %1066 = vmax.xlane.f32.xlu0 %v1065_v10 }
 0x40e   : > { %1188 = vmax.xlane.f32.xlu0 %v1187_v12  ;;  %v2216_v12 = vld [vmem:[%s2789_s4] sm:$0xff]  }
 0x40f   : > { %2136 = vmatpush3.bf16.msra.mxu0 %v2216_v12  ;;  %v2230_v12 = vld [vmem:[%s2793_s8 + $0x20] ss:$8 sps:$4 sm:$0xff]  }
 0x410   : > { %2137 = vmatprep.subr.bf16.mxu0 %v2321_v4 }
 0x48f   : > { %v938_v13 = vpop.xlane.xlu0 %937 }
 0x490   : > { %v942_v22 = vsub.f32 %v934_v58, %v938_v13  ;;  %v2217_v13 = vld [vmem:[%s2789_s4 + $0x8] sm:$0xff]  }
 0x491   : > { %v941_v14 = vpop.xlane.xlu1 %940  ;;  %2138 = vmatpush3.bf16.msra.mxu0 %v2217_v13  ;;  %v2235_v13 = vld [vmem:[%s2793_s8 + $0x34] ss:$8 sps:$4 sm:$0xff]  }
 0x492   : > { %v943_v25 = vsub.f32 %v935_v0, %v941_v14  ;;  %v944_v29 = vmul.f32 1.442695, %v942_v22  ;;  %v2218_v14 = vld [vmem:[%s2789_s4 + $0x10] sm:$0xff]   ;;  %2139 = vmatprep.subr.bf16.mxu0 %v2321_v4 }
 0x493   : > { %v1064_v15 = vpop.xlane.xlu0 %1063  ;;  %v2222_v22 = vld [vmem:[%s2789_s4 + $0x30] sm:$0xff]  }
 0x494   : > { %v1068_v16 = vsub.f32 %v1060_v1, %v1064_v15  ;;  %v946_v32 = vmul.f32 1.442695, %v943_v25  ;;  %v2220_v15 = vld [vmem:[%s2789_s4 + $0x20] sm:$0xff]  }
 0x495   : > { %v1192_v17 = vpop.xlane.xlu1 %1191  ;;  %2140 = vmatpush3.bf16.msra.mxu0 %v2218_v14  ;;  %v2233_v14 = vld [vmem:[%s2793_s8 + $0x30] ss:$8 sps:$4 sm:$0xff]  }
 0x496   : > { %v1070_v18 = vmul.f32 1.442695, %v1068_v16  ;;  %v1194_v19 = vsub.f32 %v1186_v5, %v1192_v17  ;;  %2141 = vmatprep.subr.bf16.mxu0 %v2321_v4 }
 0x497   : > { %v1067_v20 = vpop.xlane.xlu0 %1066 }
 0x498   : > { %2272 = vpow2.f32 %v1070_v18  ;;  %v1069_v21 = vsub.f32 %v1061_v8, %v1067_v20  ;;  %v1197_v26 = vmul.f32 1.442695, %v1194_v19  ;;  %v2221_v18 = vld [vmem:[%s2789_s4 + $0x28] sm:$0xff]  }
 0x49a   : > { %v1072_v27 = vmul.f32 1.442695, %v1069_v21 }
 0x49b   : > { %v1189_v28 = vpop.xlane.xlu0 %1188 }
 0x49c   : > { %2274 = vpow2.f32 %v1072_v27  ;;  %v1193_v59 = vsub.f32 %v1185_v11, %v1189_v28  ;;  %v2223_v27 = vld [vmem:[%s2789_s4 + $0x38] sm:$0xff]  }
 0x49d   : > { %2276 = vpow2.f32 %v1197_v26 }
 0x49e   : > { %v1195_v34 = vmul.f32 1.442695, %v1193_v59 }
 0x4a0   : > { %2278 = vpow2.f32 %v1195_v34 }
 0x4a1   : > { %2280 = vpow2.f32 %v944_v29 }
 0x4a2   : > { %v2273_v35 = vpop.eup %2272  ;;  %2282 = vpow2.f32 %v946_v32 }
 0x4a3   : > { %v1074_v36 = vsel %vm811_vm2, %v2273_v35, 0.0 }
 0x4a4   : > { %1075 = vadd.xlane.f32.xlu0 %v1074_v36 }
 0x4a6   : > { %v2275_v37 = vpop.eup %2274 }
 0x4a7   : > { %v1077_v38 = vsel %vm811_vm2, %v2275_v37, 0.0  ;;  %v2277_v40 = vpop.eup %2276 }
 0x4a8   : > { %1078 = vadd.xlane.f32.xlu1 %v1077_v38  ;;  %v1202_v45 = vsel %vm811_vm2, %v2277_v40, 0.0 }
 0x4aa   : > { %v2279_v41 = vpop.eup %2278 }
 0x4ab   : > { %v2281_v43 = vpop.eup %2280  ;;  %v1199_v44 = vsel %vm811_vm2, %v2279_v41, 0.0 }
 0x4ac   : > { %v2283_v46 = vpop.eup %2282  ;;  %1200 = vadd.xlane.f32.xlu0 %v1199_v44  ;;  %1203 = vadd.xlane.f32.xlu1 %v1202_v45  ;;  %v948_v47 = vsel %vm811_vm2, %v2281_v43, 0.0 }
 0x4ad   : > { %v951_v48 = vsel %vm811_vm2, %v2283_v46, 0.0 }
 0x4b0   : > { %949 = vadd.xlane.f32.xlu0 %v948_v47  ;;  %952 = vadd.xlane.f32.xlu1 %v951_v48 }
 0x4c1   : > { %1085 = vrot.lane.b32.xlu1 %v2530_v55, %s2325_s20 }
 0x4c5   : > { %1210 = vrot.lane.b32.xlu1 %v2530_v55, %s2324_s19 }
 0x4c6   : > { %960 = vrot.lane.b32.xlu0 %v2530_v55, %s2323_s18 }
 0x531   : > { %v1076_v49 = vpop.xlane.xlu0 %1075 }
 0x535   : > { %v1079_v50 = vpop.xlane.xlu1 %1078 }
 0x539   : > { %v1201_v51 = vpop.xlane.xlu0 %1200  ;;  %v1204_v52 = vpop.xlane.xlu1 %1203 }
 0x53d   : > { %v950_v53 = vpop.xlane.xlu0 %949  ;;  %v953_v54 = vpop.xlane.xlu1 %952 }
 0x53e   : > { %2284 = vrcp.f32 %v950_v53 }
 0x53f   : > { %2286 = vrcp.f32 %v953_v54 }
 0x540   : > { %2288 = vrcp.f32 %v1079_v50 }
 0x541   : > { %v961_v56 = vpop.permute.xlu0 %960  ;;  %2290 = vrcp.f32 %v1076_v49  ;;  %v1086_v63 = vpop.permute.xlu1 %1085 }
 0x542   : > { %2106 = vmatpush3.bf16.msra.mxu1 %v961_v56  ;;  %2292 = vrcp.f32 %v1201_v51  ;;  %v1961_v56 = vld [vmem:[%s2790_s5] ss:$0 sm:$0xff] }
 0x543   : > { %2117 = vmatprep.subr.bf16.mxu1 %v2321_v4  ;;  %2294 = vrcp.f32 %v1204_v52 }
 0x545   : > { %v1211_v8 = vpop.permute.xlu1 %1210 }
 0x548   : > { %v2285_v57 = vpop.eup %2284 }
 0x549   : > { %v2287_v58 = vpop.eup %2286  ;;  %v956_v60 = vmul.f32 %v2285_v57, %v2281_v43 }
 0x54a   : > { %v957_v61 = vmul.f32 %v2287_v58, %v2283_v46  ;;  %v2289_v62 = vpop.eup %2288 }
 0x54b   : > { %v2291_v0 = vpop.eup %2290  ;;  %v1083_v1 = vmul.f32 %v2289_v62, %v2275_v37 }
 0x54c   : > { %v958_v55 = vpack.c.bf16 %v957_v61, %v956_v60  ;;  %v1082_v3 = vmul.f32 %v2291_v0, %v2273_v35  ;;  %v2293_v5 = vpop.eup %2292  ;;  %v2226_v0 = vld [vmem:[%s2793_s8 + $0x4] ss:$8 sps:$4 sm:$0xff]  }
 0x54d   : > { %v2295_v7 = vpop.eup %2294  ;;  %v1207_v9 = vmul.f32 %v2293_v5, %v2279_v41 }
 0x54e   : > { %2108 = vmatmul.mubr.msk.bf16.vlgmr.msra.gmra.mrb[16].mxu1 %vm811_vm2, %v958_v55  ;;  %v1084_v6 = vpack.c.bf16 %v1083_v1, %v1082_v3  ;;  %v1208_v10 = vmul.f32 %v2295_v7, %v2277_v40  ;;  %v2229_v1 = vld [vmem:[%s2793_s8 + $0x14] ss:$8 sps:$4 sm:$0xff]  }
 0x54f   : > { %2118 = vmatpush3.bf16.msra.mxu1 %v1086_v63  ;;  %2119 = vmatprep.mubr.msk.bf16.mxu1 %vm2322_vm0, %v2321_v4  ;;  %v2224_v63 = vld [vmem:[%s2793_s8] ss:$8 sps:$4 sm:$0xff]  }
 0x550   : > { %2129 = vmatprep.subr.bf16.mxu1 %v2321_v4  ;;  %v1209_v11 = vpack.c.bf16 %v1208_v10, %v1207_v9 }
 0x556   : > { %2120 = vmatmul.mubr.msk.bf16.vlgmr.msra.gmra.mrb[20].mxu1 %vm811_vm2, %v1084_v6 }
 0x557   : > { %2130 = vmatpush3.bf16.msra.mxu1 %v1211_v8  ;;  %2131 = vmatprep.mubr.msk.bf16.mxu1 %vm2322_vm0, %v2321_v4 }
 0x558   : > { %1554 = vmatprep.subr.bf16.mxu1 %v2226_v0 }
 0x55e   : > { %2132 = vmatmul.mubr.msk.bf16.vlgmr.msra.gmra.mrb[24].mxu1 %vm811_vm2, %v1209_v11  ;;  %v2232_v11 = vld [vmem:[%s2793_s8 + $0x24] ss:$8 sps:$4 sm:$0xff]  }
 0x55f   : > { %1586 = vmatprep.mubr.bf16.mxu1 %v2320_v2  ;;  %v2219_v2 = vld [vmem:[%s2789_s4 + $0x18] sm:$0xff]   ;;  %1555 = vmatpush1.bf16.msra.mxu1 %v2224_v63 }
 0x560   : > { %2142 = vmatpush3.bf16.msra.mxu0 %v2219_v2  ;;  %1556 = vmatprep.subr.bf16.mxu1 %v2229_v1  ;;  %v2238_v2 = vld [vmem:[%s2793_s8 + $0x44] ss:$8 sps:$4 sm:$0xff]  }
 0x561   : > { %2143 = vmatprep.subr.bf16.mxu0 %v2321_v4 }
 0x564   : > { %2144 = vmatpush3.bf16.msra.mxu0 %v2220_v15  ;;  %v2236_v15 = vld [vmem:[%s2793_s8 + $0x40] ss:$8 sps:$4 sm:$0xff]  }
 0x565   : > { %2145 = vmatprep.subr.bf16.mxu0 %v2321_v4 }
 0x568   : > { %2146 = vmatpush3.bf16.msra.mxu0 %v2221_v18  ;;  %v2244_v18 = vld [vmem:[%s2793_s8 + $0x64] ss:$8 sps:$4 sm:$0xff]  }
 0x569   : > { %2147 = vmatprep.subr.bf16.mxu0 %v2321_v4 }
 0x56c   : > { %2148 = vmatpush3.bf16.msra.mxu0 %v2222_v22 }
 0x56d   : > { %2149 = vmatprep.subr.bf16.mxu0 %v2321_v4 }
 0x570   : > { %2150 = vmatpush3.bf16.msra.mxu0 %v2223_v27 }
 0x621   : > { %v1000_v16 = vpop.f32.mrb[16].mxu1 }
 0x622   : > { %v2109_v17 = vpop.f32.mrb[17].mxu1 }
 0x623   : > { %v1003_v19 = vpop.f32.mrb[18].mxu1  ;;  %v2239_v17 = vld [vmem:[%s2793_s8 + $0x50] ss:$8 sps:$4 sm:$0xff]  }
 0x624   : > { %v2169_v20 = vpack.i.bf16 %v1003_v19, %v1000_v16  ;;  %v2110_v21 = vpop.f32.mrb[19].mxu1  ;;  %v2241_v16 = vld [vmem:[%s2793_s8 + $0x54] ss:$8 sps:$4 sm:$0xff]   ;;  %v2242_v19 = vld [vmem:[%s2793_s8 + $0x60] ss:$8 sps:$4 sm:$0xff]  }
 0x625   : > { %v2245_v21 = vld [vmem:[%s2793_s8 + $0x70] ss:$8 sps:$4 sm:$0xff]  }
 0x626   : > { %2170 = vrot.lane.b32.xlu1 %v2169_v20, %s2324_s19  ;;  %v2247_v20 = vld [vmem:[%s2793_s8 + $0x74] ss:$8 sps:$4 sm:$0xff]  }
 0x629   : > { %v1125_v25 = vpop.f32.mrb[20].mxu1 }
 0x62a   : > { %v2121_v26 = vpop.f32.mrb[21].mxu1 }
 0x62b   : > { %v1128_v28 = vpop.f32.mrb[22].mxu1 }
 0x62c   : > { %v2174_v59 = vpack.i.bf16 %v1128_v28, %v1125_v25  ;;  %v2122_v29 = vpop.f32.mrb[23].mxu1 }
 0x62e   : > { %2175 = vrot.lane.b32.xlu0 %v2174_v59, %s2325_s20  ;;  %s481_s20 = scalar_lea.vmem %s2799_s14, %s2009_s27 }
 0x631   : > { %v1250_v32 = vpop.f32.mrb[24].mxu1 }
 0x632   : > { %v2133_v34 = vpop.f32.mrb[25].mxu1 }
 0x633   : > { %v1253_v35 = vpop.f32.mrb[26].mxu1  ;;  %v1970_v34 = vld [vmem:[%s2791_s6] ss:$0 sm:$0xff] }
 0x634   : > { %v2179_v36 = vpack.i.bf16 %v1253_v35, %v1250_v32  ;;  %v2134_v37 = vpop.f32.mrb[27].mxu1 }
 0x636   : > { %2180 = vrot.lane.b32.xlu1 %v2179_v36, %s2323_s18 }
 0x698   : > { %v2171_v38 = vpop.permute.xlu1 %2170 }
 0x699   : > { %v2173_v40 = vunpack.i.h.bf16 %v2171_v38  ;;  %v2172_v41 = vunpack.i.l.bf16 %v2171_v38  ;;  %v1971_v38 = vld [vmem:[%s2792_s7] ss:$0 sm:$0xff] }
 0x69b   : > { %v1282_v46 = vsel %vm753_vm1, %v2573_v42, %v2173_v40  ;;  %v1281_v47 = vsel %vm753_vm1, %v2571_v39, %v2172_v41 }
 0x6a0   : > { %v2176_v4 = vpop.permute.xlu0 %2175 }
 0x6a1   : > { %v2178_v43 = vunpack.i.h.bf16 %v2176_v4  ;;  %v2177_v44 = vunpack.i.l.bf16 %v2176_v4 }
 0x6a3   : > { %v1285_v50 = vsel %vm1283_vm3, %v1282_v46, %v2178_v43  ;;  %v1284_v51 = vsel %vm1283_vm3, %v1281_v47, %v2177_v44  ;;  %v2248_v44 = vld [vmem:[%s2795_s10 + $0x40] sm:$0xff]   ;;  %v2250_v46 = vld [vmem:[%s2795_s10 + $0x48] sm:$0xff]  }
 0x6a4   : > { %2045 = vmatprep.subr.bf16.mxu0 %v2248_v44  ;;  %v2251_v47 = vld [vmem:[%s2795_s10 + $0x8] sm:$0xff]  }
 0x6a8   : > { %v2181_v45 = vpop.permute.xlu1 %2180 }
 0x6a9   : > { %v2183_v48 = vunpack.i.h.bf16 %v2181_v45  ;;  %v2182_v49 = vunpack.i.l.bf16 %v2181_v45  ;;  %v2249_v45 = vld [vmem:[%s2795_s10] sm:$0xff]  }
 0x6ab   : > { %v1288_v52 = vsel %vm1286_vm4, %v1285_v50, %v2183_v48  ;;  %v1287_v53 = vsel %vm1286_vm4, %v1284_v51, %v2182_v49  ;;  %v2252_v48 = vld [vmem:[%s2795_s10 + $0x50] sm:$0xff]   ;;  %v2254_v50 = vld [vmem:[%s2795_s10 + $0x58] sm:$0xff]  }
 0x6ac   : > { %v1289_v54 = vpack.c.bf16 %v1288_v52, %v1287_v53  ;;  %v2253_v49 = vld [vmem:[%s2795_s10 + $0x10] sm:$0xff]   ;;  %v2255_v51 = vld [vmem:[%s2795_s10 + $0x18] sm:$0xff]   ;;  %v2256_v52 = vld [vmem:[%s2795_s10 + $0x60] sm:$0xff]  }
 0x6ad   : > { %v2257_v53 = vld [vmem:[%s2795_s10 + $0x20] sm:$0xff]  }
 0x6ae   : > { %2152 = vmatmul.mubr.bf16.vlgmr.msra.gmra.mrb[12].mxu0 %v1289_v54  ;;  %v2258_v54 = vld [vmem:[%s2795_s10 + $0x68] sm:$0xff]  }
 0x6af   : > { %2046 = vmatpush3.bf16.msra.mxu0 %v2249_v45 }
 0x6b0   : > { %2047 = vmatprep.subr.bf16.mxu0 %v2250_v46 }
 0x6b3   : > { %2048 = vmatpush3.bf16.msra.mxu0 %v2251_v47 }
 0x6b4   : > { %2049 = vmatprep.subr.bf16.mxu0 %v2252_v48  ;;  %v1988_v48 = vld [vmem:[%s2796_s11] ss:$0 sm:$0xff] }
 0x6b7   : > { %2050 = vmatpush3.bf16.msra.mxu0 %v2253_v49 }
 0x6b8   : > { %2051 = vmatprep.subr.bf16.mxu0 %v2254_v50 }
 0x6bb   : > { %2052 = vmatpush3.bf16.msra.mxu0 %v2255_v51 }
 0x6bc   : > { %2053 = vmatprep.subr.bf16.mxu0 %v2256_v52 }
 0x6bf   : > { %2054 = vmatpush3.bf16.msra.mxu0 %v2257_v53 }
 0x6c0   : > { %2055 = vmatprep.subr.bf16.mxu0 %v2258_v54 }
 0x781   : > { %v1395_v57 = vpop.f32.mrb[12].mxu0 }
 0x782   : > { %v1396_v58 = vadd.f32 %v1961_v56, %v1395_v57  ;;  %v2153_v60 = vpop.f32.mrb[13].mxu0  ;;  %v2260_v57 = vld [vmem:[%s2795_s10 + $0x70] sm:$0xff]  }
 0x783   : > { %v1398_v61 = vpop.f32.mrb[14].mxu0  ;;  %v2262_v60 = vld [vmem:[%s2795_s10 + $0x78] sm:$0xff]  }
 0x784   : > { %v1399_v42 = vadd.f32 %v1961_v56, %v1398_v61  ;;  %v2154_v55 = vpop.f32.mrb[15].mxu0  ;;  %v1402_v39 = vadd.f32 %v1396_v58, %v2485_v23  ;;  %v2227_v23 = vld [vmem:[%s2793_s8 + $0x10] ss:$8 sps:$4 sm:$0xff]   ;;  %v2259_v56 = vld [vmem:[%s2795_s10 + $0x28] sm:$0xff]  }
 0x785   : > { %1557 = vmatpush1.bf16.msra.mxu1 %v2227_v23  ;;  %2056 = vmatpush3.bf16.msra.mxu0 %v2259_v56  ;;  %v2261_v58 = vld [vmem:[%s2795_s10 + $0x30] sm:$0xff]   ;;  %v2263_v61 = vld [vmem:[%s2795_s10 + $0x38] sm:$0xff]  }
 0x786   : > { %1406 = vadd.xlane.f32.xlu0 %v1402_v39  ;;  %v1403_v62 = vadd.f32 %v1399_v42, %v2487_v24  ;;  %1558 = vmatprep.subr.bf16.mxu1 %v2232_v11  ;;  %v1462_v42 = vld [vmem:[%s2794_s9] sm:$0x3] }
 0x787   : > { %2057 = vmatprep.subr.bf16.mxu0 %v2260_v57  ;;  %v1467_v55 = vrot.slane %v1462_v42, %v2515_v31 }
 0x788   : > { %1408 = vadd.xlane.f32.xlu1 %v1403_v62 }
 0x789   : > { %1559 = vmatpush1.bf16.msra.mxu1 %v2230_v12  ;;  %2058 = vmatpush3.bf16.msra.mxu0 %v2261_v58 }
 0x78a   : > { %1560 = vmatprep.subr.bf16.mxu1 %v2235_v13  ;;  %2059 = vmatprep.subr.bf16.mxu0 %v2262_v60 }
 0x78d   : > { %1561 = vmatpush1.bf16.msra.mxu1 %v2233_v14  ;;  %2060 = vmatpush3.bf16.msra.mxu0 %v2263_v61 }
 0x78e   : > { %1562 = vmatprep.subr.bf16.mxu1 %v2238_v2 }
 0x791   : > { %1563 = vmatpush1.bf16.msra.mxu1 %v2236_v15 }
 0x792   : > { %1564 = vmatprep.subr.bf16.mxu1 %v2241_v16 }
 0x795   : > { %1565 = vmatpush1.bf16.msra.mxu1 %v2239_v17 }
 0x796   : > { %1566 = vmatprep.subr.bf16.mxu1 %v2244_v18 }
 0x799   : > { %1567 = vmatpush1.bf16.msra.mxu1 %v2242_v19 }
 0x79a   : > { %1568 = vmatprep.subr.bf16.mxu1 %v2247_v20 }
 0x79d   : > { %1569 = vmatpush1.bf16.msra.mxu1 %v2245_v21 }
 0x813   : > { %v1407_v24 = vpop.xlane.xlu0 %1406 }
 0x814   : > { %v1411_v3 = vmul.f32 0.0078125, %v1407_v24 }
 0x815   : > { %v1409_v5 = vpop.xlane.xlu1 %1408 }
 0x816   : > { %v1413_v6 = vsub.f32 %v1402_v39, %v1411_v3  ;;  %v1412_v7 = vmul.f32 0.0078125, %v1409_v5  ;;  %v1471_v39 = vrot.slane %v1462_v42, %v529_v33 }
 0x818   : > { %v1414_v8 = vsub.f32 %v1403_v62, %v1412_v7  ;;  %v1415_v9 = vmul.f32 %v1413_v6, %v1413_v6 }
 0x81a   : > { %1417 = vadd.xlane.f32.xlu0 %v1415_v9  ;;  %v1416_v10 = vmul.f32 %v1414_v8, %v1414_v8 }
 0x81e   : > { %1419 = vadd.xlane.f32.xlu0 %v1416_v10 }
 0x8a7   : > { %v1418_v22 = vpop.xlane.xlu0 %1417 }
 0x8a8   : > { %v1421_v25 = vmul.f32 0.0078125, %v1418_v22 }
 0x8aa   : > { %v1423_v26 = vadd.f32 1e-07, %v1421_v25 }
 0x8ab   : > { %v1420_v27 = vpop.xlane.xlu0 %1419 }
 0x8ac   : > { %2296 = vrsqrt.f32 %v1423_v26  ;;  %v1422_v28 = vmul.f32 0.0078125, %v1420_v27 }
 0x8ae   : > { %v1424_v59 = vadd.f32 1e-07, %v1422_v28 }
 0x8b0   : > { %2298 = vrsqrt.f32 %v1424_v59 }
 0x8b6   : > { %v2297_v29 = vpop.eup %2296 }
 0x8b7   : > { %v1427_v32 = vmul.f32 %v2297_v29, %v1413_v6 }
 0x8b9   : > { %v1435_v37 = vmul.f32 %v1970_v34, %v1427_v32 }
 0x8ba   : > { %v2299_v35 = vpop.eup %2298 }
 0x8bb   : > { %v1428_v36 = vmul.f32 %v2299_v35, %v1414_v8  ;;  %v2706_v40 = vadd.f32 %v1971_v38, %v1435_v37 }
 0x8bd   : > { %v1436_v4 = vmul.f32 %v1970_v34, %v1428_v36 }
 0x8bf   : > { %v2708_v41 = vadd.f32 %v1971_v38, %v1436_v4 }
 0x8c1   : > { %v1445_v43 = vpack.c.bf16 %v2708_v41, %v2706_v40 }
 0x8c3   : > { %1587 = vmatmul.mubr.bf16.vlgmr.msra.gmra.mrb[28].mxu1 %v1445_v43 }
 0x996   : > { %v1588_v62 = vpop.f32.mrb[28].mxu1 }
 0x997   : > { %v1589_v63 = vadd.f32 %v1588_v62, %v1467_v55  ;;  %v1590_v0 = vpop.f32.mrb[29].mxu1 }
 0x998   : > { %v1591_v1 = vadd.f32 %v1590_v0, %v1471_v39  ;;  %v1592_v23 = vpop.f32.mrb[30].mxu1 }
 0x999   : > { %v1597_v24 = vmul.f32 %v1589_v63, %v1589_v63  ;;  %v1593_v3 = vadd.f32 %v1592_v23, %v1467_v55  ;;  %v1594_v5 = vpop.f32.mrb[31].mxu1 }
 0x99a   : > { %v1598_v6 = vmul.f32 %v1591_v1, %v1591_v1  ;;  %v1595_v7 = vadd.f32 %v1594_v5, %v1471_v39 }
 0x99b   : > { %v1601_v8 = vmul.f32 %v1597_v24, %v1589_v63  ;;  %v1599_v9 = vmul.f32 %v1593_v3, %v1593_v3 }
 0x99c   : > { %v1602_v10 = vmul.f32 %v1598_v6, %v1591_v1  ;;  %v1600_v11 = vmul.f32 %v1595_v7, %v1595_v7  ;;  %v2005_v6 = vld [vmem:[%s2797_s12] ss:$0 sm:$0xff] }
 0x99d   : > { %v1605_v12 = vmul.f32 0.044715, %v1601_v8  ;;  %v1603_v13 = vmul.f32 %v1599_v9, %v1593_v3  ;;  %v2006_v9 = vld [vmem:[%s2798_s13] ss:$0 sm:$0xff] }
 0x99e   : > { %v1606_v31 = vmul.f32 0.044715, %v1602_v10  ;;  %v1604_v14 = vmul.f32 %v1600_v11, %v1595_v7 }
 0x99f   : > { %v1609_v30 = vadd.f32 %v1605_v12, %v1589_v63  ;;  %v1607_v33 = vmul.f32 0.044715, %v1603_v13 }
 0x9a0   : > { %v1610_v2 = vadd.f32 %v1606_v31, %v1591_v1  ;;  %v1608_v15 = vmul.f32 0.044715, %v1604_v14 }
 0x9a1   : > { %v1613_v16 = vmul.f32 0.7978846, %v1609_v30  ;;  %v1611_v17 = vadd.f32 %v1607_v33, %v1593_v3 }
 0x9a2   : > { %v1614_v18 = vmul.f32 0.7978846, %v1610_v2  ;;  %v1612_v19 = vadd.f32 %v1608_v15, %v1595_v7 }
 0x9a3   : > { %2300 = vtanh.f32 %v1613_v16  ;;  %v1615_v20 = vmul.f32 0.7978846, %v1611_v17 }
 0x9a4   : > { %2302 = vtanh.f32 %v1614_v18  ;;  %v1616_v21 = vmul.f32 0.7978846, %v1612_v19 }
 0x9a5   : > { %2304 = vtanh.f32 %v1615_v20 }
 0x9a6   : > { %2306 = vtanh.f32 %v1616_v21 }
 0x9ad   : > { %v2301_v22 = vpop.eup %2300 }
 0x9ae   : > { %v2303_v25 = vpop.eup %2302  ;;  %v1621_v26 = vadd.f32 1.0, %v2301_v22 }
 0x9af   : > { %v2305_v27 = vpop.eup %2304  ;;  %v1622_v28 = vadd.f32 1.0, %v2303_v25 }
 0x9b0   : > { %v2307_v59 = vpop.eup %2306  ;;  %v1625_v29 = vmul.f32 0.5, %v1621_v26  ;;  %v1623_v32 = vadd.f32 1.0, %v2305_v27 }
 0x9b1   : > { %v1624_v34 = vadd.f32 1.0, %v2307_v59  ;;  %v1626_v35 = vmul.f32 0.5, %v1622_v28 }
 0x9b2   : > { %v1627_v36 = vmul.f32 0.5, %v1623_v32  ;;  %v1629_v38 = vmul.f32 %v1625_v29, %v1589_v63 }
 0x9b3   : > { %v1628_v37 = vmul.f32 0.5, %v1624_v34  ;;  %v1630_v43 = vmul.f32 %v1626_v35, %v1591_v1 }
 0x9b4   : > { %v1631_v4 = vmul.f32 %v1627_v36, %v1593_v3 }
 0x9b5   : > { %v1632_v44 = vmul.f32 %v1628_v37, %v1595_v7 }
 0x9b6   : > { %v1633_v45 = vpack.c.bf16 %v1631_v4, %v1629_v38 }
 0x9b7   : > { %v1634_v46 = vpack.c.bf16 %v1632_v44, %v1630_v43 }
 0x9b9   : > { %1802 = vmatprep.mubr.bf16.mxu0 %v1634_v46 }
 0x9ba   : > { %1803 = vmatmul.mubr.bf16.vlgmr.msra.gmra.mrb[16].mxu0 %v1633_v45 }
 0xa8d   : > { %v2061_v47 = vpop.f32.mrb[16].mxu0 }
 0xa8e   : > { %v2062_v49 = vpop.f32.mrb[17].mxu0 }
 0xa8f   : > { %v2063_v50 = vadd.f32 %v2062_v49, %v2061_v47  ;;  %v2064_v51 = vpop.f32.mrb[18].mxu0 }
 0xa90   : > { %v2065_v52 = vpop.f32.mrb[19].mxu0 }
 0xa91   : > { %v1805_v53 = vadd.f32 %v2063_v50, %v1988_v48  ;;  %v2066_v54 = vadd.f32 %v2065_v52, %v2064_v51 }
 0xa93   : > { %v1808_v56 = vadd.f32 %v2066_v54, %v1988_v48  ;;  %v1811_v57 = vadd.f32 %v1805_v53, %v2706_v40 }
 0xa95   : > { %1815 = vadd.xlane.f32.xlu0 %v1811_v57  ;;  %v1812_v58 = vadd.f32 %v1808_v56, %v2708_v41 }
 0xa97   : > { %1817 = vadd.xlane.f32.xlu1 %v1812_v58 }
 0xb22   : > { %v1816_v60 = vpop.xlane.xlu0 %1815 }
 0xb23   : > { %v1819_v61 = vmul.f32 0.0078125, %v1816_v60 }
 0xb24   : > { %v1818_v42 = vpop.xlane.xlu1 %1817 }
 0xb25   : > { %v1821_v55 = vsub.f32 %v1811_v57, %v1819_v61  ;;  %v1820_v39 = vmul.f32 0.0078125, %v1818_v42 }
 0xb27   : > { %v1822_v62 = vsub.f32 %v1812_v58, %v1820_v39  ;;  %v1823_v63 = vmul.f32 %v1821_v55, %v1821_v55 }
 0xb29   : > { %1825 = vadd.xlane.f32.xlu0 %v1823_v63  ;;  %v1824_v0 = vmul.f32 %v1822_v62, %v1822_v62 }
 0xb2b   : > { %1827 = vadd.xlane.f32.xlu1 %v1824_v0 }
 0xbb6   : > { %v1826_v1 = vpop.xlane.xlu0 %1825 }
 0xbb7   : > { %v1829_v23 = vmul.f32 0.0078125, %v1826_v1 }
 0xbb8   : > { %v1828_v24 = vpop.xlane.xlu1 %1827 }
 0xbb9   : > { %v1831_v3 = vadd.f32 1e-07, %v1829_v23  ;;  %v1830_v40 = vmul.f32 0.0078125, %v1828_v24 }
 0xbbb   : > { %2308 = vrsqrt.f32 %v1831_v3  ;;  %v1832_v5 = vadd.f32 1e-07, %v1830_v40 }
 0xbbd   : > { %2310 = vrsqrt.f32 %v1832_v5 }
 0xbc5   : > { %v2309_v41 = vpop.eup %2308 }
 0xbc6   : > { %v1835_v7 = vmul.f32 %v2309_v41, %v1821_v55 }
 0xbc7   : > { %v2311_v8 = vpop.eup %2310 }
 0xbc8   : > { %v1843_v10 = vmul.f32 %v2005_v6, %v1835_v7  ;;  %v1836_v11 = vmul.f32 %v2311_v8, %v1822_v62 }
 0xbca   : > { %v1851_v12 = vadd.f32 %v2006_v9, %v1843_v10  ;;  %v1844_v13 = vmul.f32 %v2005_v6, %v1836_v11 }
 0xbcc   : > { %1853 = vst [vmem:[%s481_s20] sm:$0xff] %v1851_v12  ;;  %v1852_v31 = vadd.f32 %v2006_v9, %v1844_v13 }
 0xbce   : > { %1854 = vst [vmem:[%s481_s20 + $0x8] sm:$0xff] %v1852_v31 }
 0xbcf PF: > { %s24_s29 = sadd.s32 1, %s2318_s29  }
 0xbd0   : > { %p21_p4 = scmp.ge.s32.totalorder %s24_s29, 4  }
 0xbd2   :  { %23 = sbr.rel (!%p21_p4) target bundleno = 1 (0x1), region = 109 }

</bundles_post_ra>
